<compile_context>
chip_gen: v5e
topology: v5e:2x2
jax: 0.10.0
libtpu: 0.0.40
codegen_flags: <defaults>
</compile_context>

<pallas_src>
import math
import jax
import jax.numpy as jnp
from jax.experimental import pallas as pl
from jax.experimental.pallas import tpu as pltpu

L_LAYERS = 2
N_HEADS = 8
FF_DIM = 2048                   # nn.TransformerEncoderLayer default dim_feedforward
MATMUL_DTYPE = jnp.bfloat16     # MXU-native operand dtype; accumulation stays f32

PARAM_NAMES = [
    "wq", "wk", "wv", "bq", "bk", "bv", "wo", "bo",
    "w1", "b1", "w2", "b2", "ln1w", "ln1b", "ln2w", "ln2b",
]
LOWP_WEIGHT_NAMES = ("wq", "wk", "wv", "wo", "w1", "w2")   # stored bf16 (halves resident VMEM)


def _layer_norm(x, w, b, eps=1e-5):
    mu = jnp.mean(x, axis=-1, keepdims=True)
    xc = x - mu
    var = jnp.mean(xc * xc, axis=-1, keepdims=True)
    return xc * jax.lax.rsqrt(var + eps) * w + b


def _mm(a, b):
    # MXU matmul; bf16 operands, f32 accumulation.
    return jnp.dot(a.astype(MATMUL_DTYPE), b.astype(MATMUL_DTYPE),
                   preferred_element_type=jnp.float32)


def make_kernel(L, H, BB, T, C, Dh, F, FC):
    scale = 1.0 / math.sqrt(Dh)
    M = BB * T

    def kernel(x_ref, pe_ref, mask_ref,
               wq_ref, wk_ref, wv_ref, bq_ref, bk_ref, bv_ref,
               wo_ref, bo_ref, w1_ref, b1_ref, w2_ref, b2_ref,
               ln1w_ref, ln1b_ref, ln2w_ref, ln2b_ref,
               o_ref, ctx_ref):
        # positional encoding (dropout = identity in eval mode); flatten (BB,T,C) -> (BB*T,C):
        # every position-wise op (projections, FFN, layer norm) runs as one full-width matmul.
        h = (x_ref[...] + pe_ref[...]).reshape(M, C)

        # key-padding bias: materialize ONCE before the layer loop (JAX does not CSE broadcasts).
        neg = jnp.broadcast_to(mask_ref[...] * jnp.float32(-1e30), (BB, T, T))   # (BB, T, T)

        for l in range(L):
            # ----- multi-head self-attention: fused full-width projections -----
            # scale is applied once to the full (M,C) q (one VPU mul) instead of per-head slices.
            q = ((_mm(h, wq_ref[l]) + bq_ref[l]) * scale).astype(MATMUL_DTYPE).reshape(BB, T, C)
            k = (_mm(h, wk_ref[l]) + bk_ref[l]).astype(MATMUL_DTYPE).reshape(BB, T, C)
            v = (_mm(h, wv_ref[l]) + bv_ref[l]).astype(MATMUL_DTYPE).reshape(BB, T, C)

            # per-head attention; contexts are written directly into the VMEM scratch lane-slice
            # (no 8-way concat, no 8 live ctx arrays).
            for hd in range(H):
                sl = slice(hd * Dh, (hd + 1) * Dh)
                s = jnp.einsum("bqd,bkd->bqk", q[:, :, sl], k[:, :, sl],
                               preferred_element_type=jnp.float32)      # (BB, T, T) f32
                s = s + neg
                s = s - jnp.max(s, axis=-1, keepdims=True)
                p = jnp.exp(s)
                # EUP approx-reciprocal instead of a VALU divide
                p = p * pl.reciprocal(jnp.sum(p, axis=-1, keepdims=True), approx=True)
                ctx_ref[:, :, sl] = jnp.einsum(
                    "bqk,bkd->bqd", p.astype(MATMUL_DTYPE), v[:, :, sl],
                    preferred_element_type=jnp.float32).astype(ctx_ref.dtype)

            # concat-free: ONE full-width out-projection straight from the context scratch
            attn = _mm(ctx_ref[...].reshape(M, C), wo_ref[l]) + bo_ref[l]
            h = _layer_norm(h + attn, ln1w_ref[l], ln1b_ref[l])

            # ----- feed-forward -----
            if FC == F:
                # un-chunked: one (M,F) matmul + one (F,C) matmul (v5e/v6e, small M on v7x)
                a = jnp.maximum(_mm(h, w1_ref[l]) + b1_ref[l], 0.0)
                ff = _mm(a, w2_ref[l]) + b2_ref[l]
            else:
                # chunked over F so the (M,F) intermediate is never materialized (v7x / large M)
                ff = jnp.zeros((M, C), jnp.float32)
                for f0 in range(0, F, FC):
                    a = jnp.maximum(_mm(h, w1_ref[l, :, f0:f0 + FC]) + b1_ref[l, :, f0:f0 + FC], 0.0)
                    ff = ff + _mm(a, w2_ref[l, f0:f0 + FC, :])
                ff = ff + b2_ref[l]
            h = _layer_norm(h + ff, ln2w_ref[l], ln2b_ref[l])

        o_ref[...] = h.reshape(BB, T, C).astype(o_ref.dtype)

    return kernel


def init_params(key, C, H=N_HEADS, F=FF_DIM, L=L_LAYERS):
    """Deterministic synthetic weights, laid out fused (full-width) for the kernel (f32 master)."""
    layers = []
    for lkey in jax.random.split(key, L):
        ks = jax.random.split(lkey, 8)
        s = 0.05
        in_w = s * jax.random.normal(ks[0], (3 * C, C), jnp.float32)    # rows: q | k | v
        in_b = s * jax.random.normal(ks[1], (3 * C,), jnp.float32)
        out_w = s * jax.random.normal(ks[2], (C, C), jnp.float32)       # (out, in)
        out_b = s * jax.random.normal(ks[3], (C,), jnp.float32)
        w1 = s * jax.random.normal(ks[4], (F, C), jnp.float32)          # linear1 (out, in)
        b1 = s * jax.random.normal(ks[5], (F,), jnp.float32)
        w2 = s * jax.random.normal(ks[6], (C, F), jnp.float32)          # linear2 (out, in)
        b2 = s * jax.random.normal(ks[7], (C,), jnp.float32)
        layer = dict(
            wq=in_w[0:C].T, wk=in_w[C:2 * C].T, wv=in_w[2 * C:3 * C].T,  # (C_in, C_out)
            bq=in_b[0:C].reshape(1, C),
            bk=in_b[C:2 * C].reshape(1, C),
            bv=in_b[2 * C:3 * C].reshape(1, C),
            wo=out_w.T, bo=out_b.reshape(1, C),
            w1=w1.T, b1=b1.reshape(1, F),                                # (C, F), (1, F)
            w2=w2.T, b2=b2.reshape(1, C),                                # (F, C), (1, C)
            ln1w=jnp.ones((1, C), jnp.float32), ln1b=jnp.zeros((1, C), jnp.float32),
            ln2w=jnp.ones((1, C), jnp.float32), ln2b=jnp.zeros((1, C), jnp.float32),
        )
        layers.append(layer)
    return {k: jnp.stack([ly[k] for ly in layers], axis=0) for k in layers[0]}


def _vmem_limit_bytes():
    """Per-generation VMEM limit: ~48 MiB on v7x (64 MiB physical), ~96 MiB on v5e/v6e (128 MiB)."""
    try:
        cap = int(pltpu.get_tpu_info().vmem_capacity_bytes)
    except Exception:            # hardware query unavailable -> conservative, v7x-safe default
        cap = 64 << 20
    return min(cap * 3 // 4, 100 << 20)


def _pick_batch_block(B, Tp, C, H, F, act_budget_bytes, m_hi=1024, m_lo=256):
    """Largest divisor of B whose per-step activations fit the budget, targeting an MXU-friendly
    M = BB*Tp (<= m_hi); keeps >=2 grid steps when that doesn't drop M below m_lo so the
    'parallel' batch axis can shard across v7x's two TensorCores."""
    divisors = [d for d in range(1, B + 1) if B % d == 0]

    def act_bytes(bb):
        m = bb * Tp
        # f32-equivalent live activations: h/residual/q/k/v/ctx/ffn-out (~7*M*C),
        # one head's scores+probs (2*bb*Tp^2), un-chunked FFN intermediate (M*F).
        return 4 * (7 * m * C + 2 * bb * Tp * Tp + m * F)

    fitting = [d for d in divisors if act_bytes(d) <= act_budget_bytes]
    if not fitting:
        return 1
    capped = [d for d in fitting if d * Tp <= m_hi]
    bb = max(capped) if capped else min(fitting)
    if B // bb < 2:
        smaller = [d for d in fitting if d < bb and d * Tp >= m_lo]
        if smaller:
            bb = max(smaller)
    return bb


def transformer_forward(x, len_x, params, ret_type="feat"):
    """x: (B, T, C) float32; len_x: (B,) int32 valid lengths (max(len_x) must equal T)."""
    B, T, C = x.shape
    H = N_HEADS
    assert C % H == 0, "d_model must be divisible by nhead=8"
    Dh = C // H
    L = L_LAYERS
    F = FF_DIM

    # pad seq length to a sublane multiple so in-kernel (BB,T,C)<->(BB*T,C) reshapes are free
    Tp = ((T + 7) // 8) * 8
    if Tp != T:
        x = jnp.pad(x, ((0, 0), (0, Tp - T), (0, 0)))
    # TODO(synk): if production d_model is not a multiple of 128, pad C to 128 in the wrapper and
    #             mask the LayerNorm mean/var to the true C for lane-dense vregs / unmasked stores.

    # generate_mask: 1.0 where position is padding (includes the Tp-T pad rows)
    mask = (jnp.arange(Tp)[None, :] >= len_x[:, None]).astype(jnp.float32).reshape(B, 1, Tp)

    # sinusoidal positional-encoding table, same formula as PositionalEncoding.__init__
    pos = jnp.arange(Tp, dtype=jnp.float32)[:, None]
    div = jnp.exp(jnp.arange(0, C, 2, dtype=jnp.float32) * (-math.log(10000.0) / C))
    pe = jnp.zeros((Tp, C), jnp.float32)
    pe = pe.at[:, 0::2].set(jnp.sin(pos * div))
    pe = pe.at[:, 1::2].set(jnp.cos(pos * div))

    # matmul weights stored bf16 (halves resident weight VMEM); biases / LN params stay f32
    param_arrays = []
    for n in PARAM_NAMES:
        a = params[n]
        if n in LOWP_WEIGHT_NAMES and MATMUL_DTYPE != jnp.float32:
            a = a.astype(MATMUL_DTYPE)
        param_arrays.append(a)
    weight_bytes = sum(int(a.size) * a.dtype.itemsize for a in param_arrays)
    # TODO(synk): for very large d_model on v7x (weights no longer VMEM-resident) stream w1/w2 per
    #             layer via a grid axis / emit_pipeline and single-buffer them (pl.Buffered(1)).

    vmem_limit = _vmem_limit_bytes()
    # budget activations with the (double-buffered) resident weights and pipeline headroom removed
    act_budget = max((vmem_limit - 2 * weight_bytes) // 2, 2 << 20)
    BB = _pick_batch_block(B, Tp, C, H, F, act_budget)
    M = BB * Tp
    # un-chunk the FFN when the (M,F) intermediate fits; chunk only when it doesn't (v7x / big M)
    FC = F if (M * F * 6 <= act_budget) else (512 if F % 512 == 0 else F)

    def weight_spec(a):
        nd = a.ndim
        # constant index map: weights resident, not re-fetched per grid step
        return pl.BlockSpec(a.shape, lambda b, _nd=nd: (0,) * _nd)

    in_specs = [
        pl.BlockSpec((BB, Tp, C), lambda b: (b, 0, 0)),    # x: BB batch rows per step
        pl.BlockSpec((Tp, C), lambda b: (0, 0)),           # pe: shared
        pl.BlockSpec((BB, 1, Tp), lambda b: (b, 0, 0)),    # key-padding mask rows
    ] + [weight_spec(a) for a in param_arrays]

    # advisory cost estimate so XLA schedules surrounding ops around this long custom call
    steps = B // BB
    flops = steps * L * (8 * M * C * C + 4 * BB * Tp * Tp * C + 4 * M * C * F)
    transcendentals = steps * L * BB * H * Tp * Tp
    bytes_accessed = int(2 * x.size * 4 + pe.size * 4 + mask.size * 4 + weight_bytes)
    cost = pl.CostEstimate(flops=int(flops), transcendentals=int(transcendentals),
                           bytes_accessed=bytes_accessed)

    out = pl.pallas_call(
        make_kernel(L, H, BB, Tp, C, Dh, F, FC),
        out_shape=jax.ShapeDtypeStruct((B, Tp, C), jnp.float32),
        grid=(steps,),
        in_specs=in_specs,
        out_specs=pl.BlockSpec((BB, Tp, C), lambda b: (b, 0, 0)),
        scratch_shapes=[pltpu.VMEM((BB, Tp, C), MATMUL_DTYPE)],   # per-head context buffer
        compiler_params=pltpu.CompilerParams(
            dimension_semantics=("parallel",),   # batch blocks are independent (megacore on v7x)
            vmem_limit_bytes=vmem_limit,
        ),
        cost_estimate=cost,
    )(x, pe, mask, *param_arrays)

    out = out[:, :T, :]
    if ret_type == "feat":
        return {"transformer_feat": out}
    # TODO(synk): 'classify' path needs self.classifier, which the reference module never defines.
    raise NotImplementedError("only ret_type='feat' is supported")


if __name__ == "__main__":
    B, T, C = 2, 8, 32          # input_size = 32 (divisible by nhead=8)
    key = jax.random.PRNGKey(0)
    kx, kp = jax.random.split(key)

    x = jax.random.normal(kx, (B, T, C), jnp.float32)
    len_x = jnp.array([8, 5], dtype=jnp.int32)   # max(len_x) == T, second sequence padded
    params = init_params(kp, C)

    result = transformer_forward(x, len_x, params, ret_type="feat")
    feat = jax.block_until_ready(result["transformer_feat"])
    assert feat.shape == (B, T, C) and bool(jnp.all(jnp.isfinite(feat)))
    print("KERNEL_OK")
</pallas_src>

<mosaic_0001>
module attributes {stable_mosaic.version = 11 : i64} {
  func.func @kernel(%arg0: i32, %arg1: memref<2x8x32xf32, #tpu.memory_space<vmem>>, %arg2: memref<8x32xf32, #tpu.memory_space<vmem>>, %arg3: memref<2x1x8xf32, #tpu.memory_space<vmem>>, %arg4: memref<2x32x32xbf16, #tpu.memory_space<vmem>>, %arg5: memref<2x32x32xbf16, #tpu.memory_space<vmem>>, %arg6: memref<2x32x32xbf16, #tpu.memory_space<vmem>>, %arg7: memref<2x1x32xf32, #tpu.memory_space<vmem>>, %arg8: memref<2x1x32xf32, #tpu.memory_space<vmem>>, %arg9: memref<2x1x32xf32, #tpu.memory_space<vmem>>, %arg10: memref<2x32x32xbf16, #tpu.memory_space<vmem>>, %arg11: memref<2x1x32xf32, #tpu.memory_space<vmem>>, %arg12: memref<2x32x2048xbf16, #tpu.memory_space<vmem>>, %arg13: memref<2x1x2048xf32, #tpu.memory_space<vmem>>, %arg14: memref<2x2048x32xbf16, #tpu.memory_space<vmem>>, %arg15: memref<2x1x32xf32, #tpu.memory_space<vmem>>, %arg16: memref<2x1x32xf32, #tpu.memory_space<vmem>>, %arg17: memref<2x1x32xf32, #tpu.memory_space<vmem>>, %arg18: memref<2x1x32xf32, #tpu.memory_space<vmem>>, %arg19: memref<2x1x32xf32, #tpu.memory_space<vmem>>, %arg20: memref<2x8x32xf32, #tpu.memory_space<vmem>>, %arg21: memref<2x8x32xbf16, #tpu.memory_space<vmem>>) attributes {dimension_semantics = [#tpu.dimension_semantics<parallel>], iteration_bounds = array<i64: 1>, scalar_prefetch = 0 : i64, scratch_operands = 1 : i64, tpu.core_type = #tpu.core_type<tc>, window_params = [{transform_indices = @transform_0, window_bounds = array<i64: 2, 8, 32>}, {pipeline_mode = #tpu.pipeline_mode<synchronous>, transform_indices = @transform_1, window_bounds = array<i64: 8, 32>}, {transform_indices = @transform_2, window_bounds = array<i64: 2, 1, 8>}, {pipeline_mode = #tpu.pipeline_mode<synchronous>, transform_indices = @transform_3, window_bounds = array<i64: 2, 32, 32>}, {pipeline_mode = #tpu.pipeline_mode<synchronous>, transform_indices = @transform_4, window_bounds = array<i64: 2, 32, 32>}, {pipeline_mode = #tpu.pipeline_mode<synchronous>, transform_indices = @transform_5, window_bounds = array<i64: 2, 32, 32>}, {pipeline_mode = #tpu.pipeline_mode<synchronous>, transform_indices = @transform_6, window_bounds = array<i64: 2, 1, 32>}, {pipeline_mode = #tpu.pipeline_mode<synchronous>, transform_indices = @transform_7, window_bounds = array<i64: 2, 1, 32>}, {pipeline_mode = #tpu.pipeline_mode<synchronous>, transform_indices = @transform_8, window_bounds = array<i64: 2, 1, 32>}, {pipeline_mode = #tpu.pipeline_mode<synchronous>, transform_indices = @transform_9, window_bounds = array<i64: 2, 32, 32>}, {pipeline_mode = #tpu.pipeline_mode<synchronous>, transform_indices = @transform_10, window_bounds = array<i64: 2, 1, 32>}, {pipeline_mode = #tpu.pipeline_mode<synchronous>, transform_indices = @transform_11, window_bounds = array<i64: 2, 32, 2048>}, {pipeline_mode = #tpu.pipeline_mode<synchronous>, transform_indices = @transform_12, window_bounds = array<i64: 2, 1, 2048>}, {pipeline_mode = #tpu.pipeline_mode<synchronous>, transform_indices = @transform_13, window_bounds = array<i64: 2, 2048, 32>}, {pipeline_mode = #tpu.pipeline_mode<synchronous>, transform_indices = @transform_14, window_bounds = array<i64: 2, 1, 32>}, {pipeline_mode = #tpu.pipeline_mode<synchronous>, transform_indices = @transform_15, window_bounds = array<i64: 2, 1, 32>}, {pipeline_mode = #tpu.pipeline_mode<synchronous>, transform_indices = @transform_16, window_bounds = array<i64: 2, 1, 32>}, {pipeline_mode = #tpu.pipeline_mode<synchronous>, transform_indices = @transform_17, window_bounds = array<i64: 2, 1, 32>}, {pipeline_mode = #tpu.pipeline_mode<synchronous>, transform_indices = @transform_18, window_bounds = array<i64: 2, 1, 32>}, {transform_indices = @transform_19, window_bounds = array<i64: 2, 8, 32>}]} {
    %c0 = arith.constant 0 : index
    %c0_0 = arith.constant 0 : index
    %c0_1 = arith.constant 0 : index
    %0 = vector.load %arg1[%c0, %c0_0, %c0_1] : memref<2x8x32xf32, #tpu.memory_space<vmem>>, vector<2x8x32xf32>
    %c0_2 = arith.constant 0 : index
    %c0_3 = arith.constant 0 : index
    %1 = vector.load %arg2[%c0_2, %c0_3] : memref<8x32xf32, #tpu.memory_space<vmem>>, vector<8x32xf32>
    %2 = vector.shape_cast %1 : vector<8x32xf32> to vector<1x8x32xf32>
    %3 = vector.broadcast %2 : vector<1x8x32xf32> to vector<2x8x32xf32>
    %4 = arith.addf %0, %3 : vector<2x8x32xf32>
    %5 = vector.shape_cast %4 : vector<2x8x32xf32> to vector<16x32xf32>
    %c0_4 = arith.constant 0 : index
    %c0_5 = arith.constant 0 : index
    %c0_6 = arith.constant 0 : index
    %6 = vector.load %arg3[%c0_4, %c0_5, %c0_6] : memref<2x1x8xf32, #tpu.memory_space<vmem>>, vector<2x1x8xf32>
    %cst = arith.constant -1.000000e+30 : f32
    %7 = vector.broadcast %cst : f32 to vector<2x1x8xf32>
    %8 = arith.mulf %6, %7 : vector<2x1x8xf32>
    %9 = vector.shape_cast %8 : vector<2x1x8xf32> to vector<2x1x8xf32>
    %10 = vector.broadcast %9 : vector<2x1x8xf32> to vector<2x8x8xf32>
    %c0_7 = arith.constant 0 : index
    %c0_8 = arith.constant 0 : index
    %c0_9 = arith.constant 0 : index
    %11 = vector.load %arg4[%c0_7, %c0_8, %c0_9] : memref<2x32x32xbf16, #tpu.memory_space<vmem>>, vector<1x32x32xbf16>
    %12 = vector.shape_cast %11 : vector<1x32x32xbf16> to vector<32x32xbf16>
    %13 = arith.truncf %5 : vector<16x32xf32> to vector<16x32xbf16>
    %cst_10 = arith.constant dense<0.000000e+00> : vector<16x32xf32>
    %14 = tpu.matmul %13, %12, %cst_10 {dimension_numbers = #tpu.dot_dimension_numbers<[1], [0], [0], [1], [0, 0, 1, 1], [], []>} : vector<16x32xbf16>, vector<32x32xbf16>, vector<16x32xf32> -> vector<16x32xf32>
    %c0_11 = arith.constant 0 : index
    %c0_12 = arith.constant 0 : index
    %c0_13 = arith.constant 0 : index
    %15 = vector.load %arg7[%c0_11, %c0_12, %c0_13] : memref<2x1x32xf32, #tpu.memory_space<vmem>>, vector<1x1x32xf32>
    %16 = vector.shape_cast %15 : vector<1x1x32xf32> to vector<1x32xf32>
    %17 = vector.broadcast %16 : vector<1x32xf32> to vector<16x32xf32>
    %18 = arith.addf %14, %17 : vector<16x32xf32>
    %cst_14 = arith.constant 5.000000e-01 : f32
    %19 = vector.broadcast %cst_14 : f32 to vector<16x32xf32>
    %20 = arith.mulf %18, %19 : vector<16x32xf32>
    %21 = arith.truncf %20 : vector<16x32xf32> to vector<16x32xbf16>
    %22 = vector.shape_cast %21 : vector<16x32xbf16> to vector<2x8x32xbf16>
    %c0_15 = arith.constant 0 : index
    %c0_16 = arith.constant 0 : index
    %c0_17 = arith.constant 0 : index
    %23 = vector.load %arg5[%c0_15, %c0_16, %c0_17] : memref<2x32x32xbf16, #tpu.memory_space<vmem>>, vector<1x32x32xbf16>
    %24 = vector.shape_cast %23 : vector<1x32x32xbf16> to vector<32x32xbf16>
    %25 = arith.truncf %5 : vector<16x32xf32> to vector<16x32xbf16>
    %cst_18 = arith.constant dense<0.000000e+00> : vector<16x32xf32>
    %26 = tpu.matmul %25, %24, %cst_18 {dimension_numbers = #tpu.dot_dimension_numbers<[1], [0], [0], [1], [0, 0, 1, 1], [], []>} : vector<16x32xbf16>, vector<32x32xbf16>, vector<16x32xf32> -> vector<16x32xf32>
    %c0_19 = arith.constant 0 : index
    %c0_20 = arith.constant 0 : index
    %c0_21 = arith.constant 0 : index
    %27 = vector.load %arg8[%c0_19, %c0_20, %c0_21] : memref<2x1x32xf32, #tpu.memory_space<vmem>>, vector<1x1x32xf32>
    %28 = vector.shape_cast %27 : vector<1x1x32xf32> to vector<1x32xf32>
    %29 = vector.broadcast %28 : vector<1x32xf32> to vector<16x32xf32>
    %30 = arith.addf %26, %29 : vector<16x32xf32>
    %31 = arith.truncf %30 : vector<16x32xf32> to vector<16x32xbf16>
    %32 = vector.shape_cast %31 : vector<16x32xbf16> to vector<2x8x32xbf16>
    %c0_22 = arith.constant 0 : index
    %c0_23 = arith.constant 0 : index
    %c0_24 = arith.constant 0 : index
    %33 = vector.load %arg6[%c0_22, %c0_23, %c0_24] : memref<2x32x32xbf16, #tpu.memory_space<vmem>>, vector<1x32x32xbf16>
    %34 = vector.shape_cast %33 : vector<1x32x32xbf16> to vector<32x32xbf16>
    %35 = arith.truncf %5 : vector<16x32xf32> to vector<16x32xbf16>
    %cst_25 = arith.constant dense<0.000000e+00> : vector<16x32xf32>
    %36 = tpu.matmul %35, %34, %cst_25 {dimension_numbers = #tpu.dot_dimension_numbers<[1], [0], [0], [1], [0, 0, 1, 1], [], []>} : vector<16x32xbf16>, vector<32x32xbf16>, vector<16x32xf32> -> vector<16x32xf32>
    %c0_26 = arith.constant 0 : index
    %c0_27 = arith.constant 0 : index
    %c0_28 = arith.constant 0 : index
    %37 = vector.load %arg9[%c0_26, %c0_27, %c0_28] : memref<2x1x32xf32, #tpu.memory_space<vmem>>, vector<1x1x32xf32>
    %38 = vector.shape_cast %37 : vector<1x1x32xf32> to vector<1x32xf32>
    %39 = vector.broadcast %38 : vector<1x32xf32> to vector<16x32xf32>
    %40 = arith.addf %36, %39 : vector<16x32xf32>
    %41 = arith.truncf %40 : vector<16x32xf32> to vector<16x32xbf16>
    %42 = vector.shape_cast %41 : vector<16x32xbf16> to vector<2x8x32xbf16>
    %43 = vector.extract_strided_slice %22 {offsets = [0, 0, 0], sizes = [2, 8, 4], strides = [1, 1, 1]} : vector<2x8x32xbf16> to vector<2x8x4xbf16>
    %44 = vector.extract_strided_slice %32 {offsets = [0, 0, 0], sizes = [2, 8, 4], strides = [1, 1, 1]} : vector<2x8x32xbf16> to vector<2x8x4xbf16>
    "tpu.trace_start"() <{level = 10 : i32, message = "bqd,bkd->bqk"}> : () -> ()
    %cst_29 = arith.constant dense<0.000000e+00> : vector<2x8x8xf32>
    %45 = tpu.matmul %43, %44, %cst_29 {dimension_numbers = #tpu.dot_dimension_numbers<[2], [2], [1], [1], [0, 0, 0, 1, 1, 1], [0], [0]>} : vector<2x8x4xbf16>, vector<2x8x4xbf16>, vector<2x8x8xf32> -> vector<2x8x8xf32>
    "tpu.trace_stop"() : () -> ()
    %46 = arith.addf %45, %10 : vector<2x8x8xf32>
    %cst_30 = arith.constant dense<0xFF800000> : vector<2x8xf32>
    %47 = vector.multi_reduction <maximumf>, %46, %cst_30 [2] : vector<2x8x8xf32> to vector<2x8xf32>
    %48 = vector.shape_cast %47 : vector<2x8xf32> to vector<2x8x1xf32>
    %49 = vector.broadcast %48 : vector<2x8x1xf32> to vector<2x8x8xf32>
    %50 = arith.subf %46, %49 : vector<2x8x8xf32>
    %51 = math.exp %50 : vector<2x8x8xf32>
    %cst_31 = arith.constant dense<0.000000e+00> : vector<2x8xf32>
    %52 = vector.multi_reduction <add>, %51, %cst_31 [2] : vector<2x8x8xf32> to vector<2x8xf32>
    %53 = vector.shape_cast %52 : vector<2x8xf32> to vector<2x8x1xf32>
    %54 = tpu.reciprocal %53 {approx = true} : vector<2x8x1xf32> -> vector<2x8x1xf32>
    %55 = vector.broadcast %54 : vector<2x8x1xf32> to vector<2x8x8xf32>
    %56 = arith.mulf %51, %55 : vector<2x8x8xf32>
    %57 = arith.truncf %56 : vector<2x8x8xf32> to vector<2x8x8xbf16>
    %58 = vector.extract_strided_slice %42 {offsets = [0, 0, 0], sizes = [2, 8, 4], strides = [1, 1, 1]} : vector<2x8x32xbf16> to vector<2x8x4xbf16>
    "tpu.trace_start"() <{level = 10 : i32, message = "bqk,bkd->bqd"}> : () -> ()
    %cst_32 = arith.constant dense<0.000000e+00> : vector<2x8x4xf32>
    %59 = tpu.matmul %57, %58, %cst_32 {dimension_numbers = #tpu.dot_dimension_numbers<[2], [1], [1], [2], [0, 0, 0, 1, 1, 2], [0], [0]>} : vector<2x8x8xbf16>, vector<2x8x4xbf16>, vector<2x8x4xf32> -> vector<2x8x4xf32>
    "tpu.trace_stop"() : () -> ()
    %60 = arith.truncf %59 : vector<2x8x4xf32> to vector<2x8x4xbf16>
    %c0_33 = arith.constant 0 : index
    %c0_34 = arith.constant 0 : index
    %c0_35 = arith.constant 0 : index
    %61 = vector.load %arg21[%c0_33, %c0_34, %c0_35] : memref<2x8x32xbf16, #tpu.memory_space<vmem>>, vector<2x8x4xbf16>
    tpu.vector_store %arg21[%c0_33, %c0_34, %c0_35], %60 {strides = array<i32>} : memref<2x8x32xbf16, #tpu.memory_space<vmem>>, vector<2x8x4xbf16>,
    %62 = vector.extract_strided_slice %22 {offsets = [0, 0, 4], sizes = [2, 8, 4], strides = [1, 1, 1]} : vector<2x8x32xbf16> to vector<2x8x4xbf16>
    %63 = vector.extract_strided_slice %32 {offsets = [0, 0, 4], sizes = [2, 8, 4], strides = [1, 1, 1]} : vector<2x8x32xbf16> to vector<2x8x4xbf16>
    "tpu.trace_start"() <{level = 10 : i32, message = "bqd,bkd->bqk"}> : () -> ()
    %cst_36 = arith.constant dense<0.000000e+00> : vector<2x8x8xf32>
    %64 = tpu.matmul %62, %63, %cst_36 {dimension_numbers = #tpu.dot_dimension_numbers<[2], [2], [1], [1], [0, 0, 0, 1, 1, 1], [0], [0]>} : vector<2x8x4xbf16>, vector<2x8x4xbf16>, vector<2x8x8xf32> -> vector<2x8x8xf32>
    "tpu.trace_stop"() : () -> ()
    %65 = arith.addf %64, %10 : vector<2x8x8xf32>
    %cst_37 = arith.constant dense<0xFF800000> : vector<2x8xf32>
    %66 = vector.multi_reduction <maximumf>, %65, %cst_37 [2] : vector<2x8x8xf32> to vector<2x8xf32>
    %67 = vector.shape_cast %66 : vector<2x8xf32> to vector<2x8x1xf32>
    %68 = vector.broadcast %67 : vector<2x8x1xf32> to vector<2x8x8xf32>
    %69 = arith.subf %65, %68 : vector<2x8x8xf32>
    %70 = math.exp %69 : vector<2x8x8xf32>
    %cst_38 = arith.constant dense<0.000000e+00> : vector<2x8xf32>
    %71 = vector.multi_reduction <add>, %70, %cst_38 [2] : vector<2x8x8xf32> to vector<2x8xf32>
    %72 = vector.shape_cast %71 : vector<2x8xf32> to vector<2x8x1xf32>
    %73 = tpu.reciprocal %72 {approx = true} : vector<2x8x1xf32> -> vector<2x8x1xf32>
    %74 = vector.broadcast %73 : vector<2x8x1xf32> to vector<2x8x8xf32>
    %75 = arith.mulf %70, %74 : vector<2x8x8xf32>
    %76 = arith.truncf %75 : vector<2x8x8xf32> to vector<2x8x8xbf16>
    %77 = vector.extract_strided_slice %42 {offsets = [0, 0, 4], sizes = [2, 8, 4], strides = [1, 1, 1]} : vector<2x8x32xbf16> to vector<2x8x4xbf16>
    "tpu.trace_start"() <{level = 10 : i32, message = "bqk,bkd->bqd"}> : () -> ()
    %cst_39 = arith.constant dense<0.000000e+00> : vector<2x8x4xf32>
    %78 = tpu.matmul %76, %77, %cst_39 {dimension_numbers = #tpu.dot_dimension_numbers<[2], [1], [1], [2], [0, 0, 0, 1, 1, 2], [0], [0]>} : vector<2x8x8xbf16>, vector<2x8x4xbf16>, vector<2x8x4xf32> -> vector<2x8x4xf32>
    "tpu.trace_stop"() : () -> ()
    %79 = arith.truncf %78 : vector<2x8x4xf32> to vector<2x8x4xbf16>
    %c0_40 = arith.constant 0 : index
    %c0_41 = arith.constant 0 : index
    %c4 = arith.constant 4 : index
    %80 = vector.load %arg21[%c0_40, %c0_41, %c4] : memref<2x8x32xbf16, #tpu.memory_space<vmem>>, vector<2x8x4xbf16>
    tpu.vector_store %arg21[%c0_40, %c0_41, %c4], %79 {strides = array<i32>} : memref<2x8x32xbf16, #tpu.memory_space<vmem>>, vector<2x8x4xbf16>,
    %81 = vector.extract_strided_slice %22 {offsets = [0, 0, 8], sizes = [2, 8, 4], strides = [1, 1, 1]} : vector<2x8x32xbf16> to vector<2x8x4xbf16>
    %82 = vector.extract_strided_slice %32 {offsets = [0, 0, 8], sizes = [2, 8, 4], strides = [1, 1, 1]} : vector<2x8x32xbf16> to vector<2x8x4xbf16>
    "tpu.trace_start"() <{level = 10 : i32, message = "bqd,bkd->bqk"}> : () -> ()
    %cst_42 = arith.constant dense<0.000000e+00> : vector<2x8x8xf32>
    %83 = tpu.matmul %81, %82, %cst_42 {dimension_numbers = #tpu.dot_dimension_numbers<[2], [2], [1], [1], [0, 0, 0, 1, 1, 1], [0], [0]>} : vector<2x8x4xbf16>, vector<2x8x4xbf16>, vector<2x8x8xf32> -> vector<2x8x8xf32>
    "tpu.trace_stop"() : () -> ()
    %84 = arith.addf %83, %10 : vector<2x8x8xf32>
    %cst_43 = arith.constant dense<0xFF800000> : vector<2x8xf32>
    %85 = vector.multi_reduction <maximumf>, %84, %cst_43 [2] : vector<2x8x8xf32> to vector<2x8xf32>
    %86 = vector.shape_cast %85 : vector<2x8xf32> to vector<2x8x1xf32>
    %87 = vector.broadcast %86 : vector<2x8x1xf32> to vector<2x8x8xf32>
    %88 = arith.subf %84, %87 : vector<2x8x8xf32>
    %89 = math.exp %88 : vector<2x8x8xf32>
    %cst_44 = arith.constant dense<0.000000e+00> : vector<2x8xf32>
    %90 = vector.multi_reduction <add>, %89, %cst_44 [2] : vector<2x8x8xf32> to vector<2x8xf32>
    %91 = vector.shape_cast %90 : vector<2x8xf32> to vector<2x8x1xf32>
    %92 = tpu.reciprocal %91 {approx = true} : vector<2x8x1xf32> -> vector<2x8x1xf32>
    %93 = vector.broadcast %92 : vector<2x8x1xf32> to vector<2x8x8xf32>
    %94 = arith.mulf %89, %93 : vector<2x8x8xf32>
    %95 = arith.truncf %94 : vector<2x8x8xf32> to vector<2x8x8xbf16>
    %96 = vector.extract_strided_slice %42 {offsets = [0, 0, 8], sizes = [2, 8, 4], strides = [1, 1, 1]} : vector<2x8x32xbf16> to vector<2x8x4xbf16>
    "tpu.trace_start"() <{level = 10 : i32, message = "bqk,bkd->bqd"}> : () -> ()
    %cst_45 = arith.constant dense<0.000000e+00> : vector<2x8x4xf32>
    %97 = tpu.matmul %95, %96, %cst_45 {dimension_numbers = #tpu.dot_dimension_numbers<[2], [1], [1], [2], [0, 0, 0, 1, 1, 2], [0], [0]>} : vector<2x8x8xbf16>, vector<2x8x4xbf16>, vector<2x8x4xf32> -> vector<2x8x4xf32>
    "tpu.trace_stop"() : () -> ()
    %98 = arith.truncf %97 : vector<2x8x4xf32> to vector<2x8x4xbf16>
    %c0_46 = arith.constant 0 : index
    %c0_47 = arith.constant 0 : index
    %c8 = arith.constant 8 : index
    %99 = vector.load %arg21[%c0_46, %c0_47, %c8] : memref<2x8x32xbf16, #tpu.memory_space<vmem>>, vector<2x8x4xbf16>
    tpu.vector_store %arg21[%c0_46, %c0_47, %c8], %98 {strides = array<i32>} : memref<2x8x32xbf16, #tpu.memory_space<vmem>>, vector<2x8x4xbf16>,
    %100 = vector.extract_strided_slice %22 {offsets = [0, 0, 12], sizes = [2, 8, 4], strides = [1, 1, 1]} : vector<2x8x32xbf16> to vector<2x8x4xbf16>
    %101 = vector.extract_strided_slice %32 {offsets = [0, 0, 12], sizes = [2, 8, 4], strides = [1, 1, 1]} : vector<2x8x32xbf16> to vector<2x8x4xbf16>
    "tpu.trace_start"() <{level = 10 : i32, message = "bqd,bkd->bqk"}> : () -> ()
    %cst_48 = arith.constant dense<0.000000e+00> : vector<2x8x8xf32>
    %102 = tpu.matmul %100, %101, %cst_48 {dimension_numbers = #tpu.dot_dimension_numbers<[2], [2], [1], [1], [0, 0, 0, 1, 1, 1], [0], [0]>} : vector<2x8x4xbf16>, vector<2x8x4xbf16>, vector<2x8x8xf32> -> vector<2x8x8xf32>
    "tpu.trace_stop"() : () -> ()
    %103 = arith.addf %102, %10 : vector<2x8x8xf32>
    %cst_49 = arith.constant dense<0xFF800000> : vector<2x8xf32>
    %104 = vector.multi_reduction <maximumf>, %103, %cst_49 [2] : vector<2x8x8xf32> to vector<2x8xf32>
    %105 = vector.shape_cast %104 : vector<2x8xf32> to vector<2x8x1xf32>
    %106 = vector.broadcast %105 : vector<2x8x1xf32> to vector<2x8x8xf32>
    %107 = arith.subf %103, %106 : vector<2x8x8xf32>
    %108 = math.exp %107 : vector<2x8x8xf32>
    %cst_50 = arith.constant dense<0.000000e+00> : vector<2x8xf32>
    %109 = vector.multi_reduction <add>, %108, %cst_50 [2] : vector<2x8x8xf32> to vector<2x8xf32>
    %110 = vector.shape_cast %109 : vector<2x8xf32> to vector<2x8x1xf32>
    %111 = tpu.reciprocal %110 {approx = true} : vector<2x8x1xf32> -> vector<2x8x1xf32>
    %112 = vector.broadcast %111 : vector<2x8x1xf32> to vector<2x8x8xf32>
    %113 = arith.mulf %108, %112 : vector<2x8x8xf32>
    %114 = arith.truncf %113 : vector<2x8x8xf32> to vector<2x8x8xbf16>
    %115 = vector.extract_strided_slice %42 {offsets = [0, 0, 12], sizes = [2, 8, 4], strides = [1, 1, 1]} : vector<2x8x32xbf16> to vector<2x8x4xbf16>
    "tpu.trace_start"() <{level = 10 : i32, message = "bqk,bkd->bqd"}> : () -> ()
    %cst_51 = arith.constant dense<0.000000e+00> : vector<2x8x4xf32>
    %116 = tpu.matmul %114, %115, %cst_51 {dimension_numbers = #tpu.dot_dimension_numbers<[2], [1], [1], [2], [0, 0, 0, 1, 1, 2], [0], [0]>} : vector<2x8x8xbf16>, vector<2x8x4xbf16>, vector<2x8x4xf32> -> vector<2x8x4xf32>
    "tpu.trace_stop"() : () -> ()
    %117 = arith.truncf %116 : vector<2x8x4xf32> to vector<2x8x4xbf16>
    %c0_52 = arith.constant 0 : index
    %c0_53 = arith.constant 0 : index
    %c12 = arith.constant 12 : index
    %118 = vector.load %arg21[%c0_52, %c0_53, %c12] : memref<2x8x32xbf16, #tpu.memory_space<vmem>>, vector<2x8x4xbf16>
    tpu.vector_store %arg21[%c0_52, %c0_53, %c12], %117 {strides = array<i32>} : memref<2x8x32xbf16, #tpu.memory_space<vmem>>, vector<2x8x4xbf16>,
    %119 = vector.extract_strided_slice %22 {offsets = [0, 0, 16], sizes = [2, 8, 4], strides = [1, 1, 1]} : vector<2x8x32xbf16> to vector<2x8x4xbf16>
    %120 = vector.extract_strided_slice %32 {offsets = [0, 0, 16], sizes = [2, 8, 4], strides = [1, 1, 1]} : vector<2x8x32xbf16> to vector<2x8x4xbf16>
    "tpu.trace_start"() <{level = 10 : i32, message = "bqd,bkd->bqk"}> : () -> ()
    %cst_54 = arith.constant dense<0.000000e+00> : vector<2x8x8xf32>
    %121 = tpu.matmul %119, %120, %cst_54 {dimension_numbers = #tpu.dot_dimension_numbers<[2], [2], [1], [1], [0, 0, 0, 1, 1, 1], [0], [0]>} : vector<2x8x4xbf16>, vector<2x8x4xbf16>, vector<2x8x8xf32> -> vector<2x8x8xf32>
    "tpu.trace_stop"() : () -> ()
    %122 = arith.addf %121, %10 : vector<2x8x8xf32>
    %cst_55 = arith.constant dense<0xFF800000> : vector<2x8xf32>
    %123 = vector.multi_reduction <maximumf>, %122, %cst_55 [2] : vector<2x8x8xf32> to vector<2x8xf32>
    %124 = vector.shape_cast %123 : vector<2x8xf32> to vector<2x8x1xf32>
    %125 = vector.broadcast %124 : vector<2x8x1xf32> to vector<2x8x8xf32>
    %126 = arith.subf %122, %125 : vector<2x8x8xf32>
    %127 = math.exp %126 : vector<2x8x8xf32>
    %cst_56 = arith.constant dense<0.000000e+00> : vector<2x8xf32>
    %128 = vector.multi_reduction <add>, %127, %cst_56 [2] : vector<2x8x8xf32> to vector<2x8xf32>
    %129 = vector.shape_cast %128 : vector<2x8xf32> to vector<2x8x1xf32>
    %130 = tpu.reciprocal %129 {approx = true} : vector<2x8x1xf32> -> vector<2x8x1xf32>
    %131 = vector.broadcast %130 : vector<2x8x1xf32> to vector<2x8x8xf32>
    %132 = arith.mulf %127, %131 : vector<2x8x8xf32>
    %133 = arith.truncf %132 : vector<2x8x8xf32> to vector<2x8x8xbf16>
    %134 = vector.extract_strided_slice %42 {offsets = [0, 0, 16], sizes = [2, 8, 4], strides = [1, 1, 1]} : vector<2x8x32xbf16> to vector<2x8x4xbf16>
    "tpu.trace_start"() <{level = 10 : i32, message = "bqk,bkd->bqd"}> : () -> ()
    %cst_57 = arith.constant dense<0.000000e+00> : vector<2x8x4xf32>
    %135 = tpu.matmul %133, %134, %cst_57 {dimension_numbers = #tpu.dot_dimension_numbers<[2], [1], [1], [2], [0, 0, 0, 1, 1, 2], [0], [0]>} : vector<2x8x8xbf16>, vector<2x8x4xbf16>, vector<2x8x4xf32> -> vector<2x8x4xf32>
    "tpu.trace_stop"() : () -> ()
    %136 = arith.truncf %135 : vector<2x8x4xf32> to vector<2x8x4xbf16>
    %c0_58 = arith.constant 0 : index
    %c0_59 = arith.constant 0 : index
    %c16 = arith.constant 16 : index
    %137 = vector.load %arg21[%c0_58, %c0_59, %c16] : memref<2x8x32xbf16, #tpu.memory_space<vmem>>, vector<2x8x4xbf16>
    tpu.vector_store %arg21[%c0_58, %c0_59, %c16], %136 {strides = array<i32>} : memref<2x8x32xbf16, #tpu.memory_space<vmem>>, vector<2x8x4xbf16>,
    %138 = vector.extract_strided_slice %22 {offsets = [0, 0, 20], sizes = [2, 8, 4], strides = [1, 1, 1]} : vector<2x8x32xbf16> to vector<2x8x4xbf16>
    %139 = vector.extract_strided_slice %32 {offsets = [0, 0, 20], sizes = [2, 8, 4], strides = [1, 1, 1]} : vector<2x8x32xbf16> to vector<2x8x4xbf16>
    "tpu.trace_start"() <{level = 10 : i32, message = "bqd,bkd->bqk"}> : () -> ()
    %cst_60 = arith.constant dense<0.000000e+00> : vector<2x8x8xf32>
    %140 = tpu.matmul %138, %139, %cst_60 {dimension_numbers = #tpu.dot_dimension_numbers<[2], [2], [1], [1], [0, 0, 0, 1, 1, 1], [0], [0]>} : vector<2x8x4xbf16>, vector<2x8x4xbf16>, vector<2x8x8xf32> -> vector<2x8x8xf32>
    "tpu.trace_stop"() : () -> ()
    %141 = arith.addf %140, %10 : vector<2x8x8xf32>
    %cst_61 = arith.constant dense<0xFF800000> : vector<2x8xf32>
    %142 = vector.multi_reduction <maximumf>, %141, %cst_61 [2] : vector<2x8x8xf32> to vector<2x8xf32>
    %143 = vector.shape_cast %142 : vector<2x8xf32> to vector<2x8x1xf32>
    %144 = vector.broadcast %143 : vector<2x8x1xf32> to vector<2x8x8xf32>
    %145 = arith.subf %141, %144 : vector<2x8x8xf32>
    %146 = math.exp %145 : vector<2x8x8xf32>
    %cst_62 = arith.constant dense<0.000000e+00> : vector<2x8xf32>
    %147 = vector.multi_reduction <add>, %146, %cst_62 [2] : vector<2x8x8xf32> to vector<2x8xf32>
    %148 = vector.shape_cast %147 : vector<2x8xf32> to vector<2x8x1xf32>
    %149 = tpu.reciprocal %148 {approx = true} : vector<2x8x1xf32> -> vector<2x8x1xf32>
    %150 = vector.broadcast %149 : vector<2x8x1xf32> to vector<2x8x8xf32>
    %151 = arith.mulf %146, %150 : vector<2x8x8xf32>
    %152 = arith.truncf %151 : vector<2x8x8xf32> to vector<2x8x8xbf16>
    %153 = vector.extract_strided_slice %42 {offsets = [0, 0, 20], sizes = [2, 8, 4], strides = [1, 1, 1]} : vector<2x8x32xbf16> to vector<2x8x4xbf16>
    "tpu.trace_start"() <{level = 10 : i32, message = "bqk,bkd->bqd"}> : () -> ()
    %cst_63 = arith.constant dense<0.000000e+00> : vector<2x8x4xf32>
    %154 = tpu.matmul %152, %153, %cst_63 {dimension_numbers = #tpu.dot_dimension_numbers<[2], [1], [1], [2], [0, 0, 0, 1, 1, 2], [0], [0]>} : vector<2x8x8xbf16>, vector<2x8x4xbf16>, vector<2x8x4xf32> -> vector<2x8x4xf32>
    "tpu.trace_stop"() : () -> ()
    %155 = arith.truncf %154 : vector<2x8x4xf32> to vector<2x8x4xbf16>
    %c0_64 = arith.constant 0 : index
    %c0_65 = arith.constant 0 : index
    %c20 = arith.constant 20 : index
    %156 = vector.load %arg21[%c0_64, %c0_65, %c20] : memref<2x8x32xbf16, #tpu.memory_space<vmem>>, vector<2x8x4xbf16>
    tpu.vector_store %arg21[%c0_64, %c0_65, %c20], %155 {strides = array<i32>} : memref<2x8x32xbf16, #tpu.memory_space<vmem>>, vector<2x8x4xbf16>,
    %157 = vector.extract_strided_slice %22 {offsets = [0, 0, 24], sizes = [2, 8, 4], strides = [1, 1, 1]} : vector<2x8x32xbf16> to vector<2x8x4xbf16>
    %158 = vector.extract_strided_slice %32 {offsets = [0, 0, 24], sizes = [2, 8, 4], strides = [1, 1, 1]} : vector<2x8x32xbf16> to vector<2x8x4xbf16>
    "tpu.trace_start"() <{level = 10 : i32, message = "bqd,bkd->bqk"}> : () -> ()
    %cst_66 = arith.constant dense<0.000000e+00> : vector<2x8x8xf32>
    %159 = tpu.matmul %157, %158, %cst_66 {dimension_numbers = #tpu.dot_dimension_numbers<[2], [2], [1], [1], [0, 0, 0, 1, 1, 1], [0], [0]>} : vector<2x8x4xbf16>, vector<2x8x4xbf16>, vector<2x8x8xf32> -> vector<2x8x8xf32>
    "tpu.trace_stop"() : () -> ()
    %160 = arith.addf %159, %10 : vector<2x8x8xf32>
    %cst_67 = arith.constant dense<0xFF800000> : vector<2x8xf32>
    %161 = vector.multi_reduction <maximumf>, %160, %cst_67 [2] : vector<2x8x8xf32> to vector<2x8xf32>
    %162 = vector.shape_cast %161 : vector<2x8xf32> to vector<2x8x1xf32>
    %163 = vector.broadcast %162 : vector<2x8x1xf32> to vector<2x8x8xf32>
    %164 = arith.subf %160, %163 : vector<2x8x8xf32>
    %165 = math.exp %164 : vector<2x8x8xf32>
    %cst_68 = arith.constant dense<0.000000e+00> : vector<2x8xf32>
    %166 = vector.multi_reduction <add>, %165, %cst_68 [2] : vector<2x8x8xf32> to vector<2x8xf32>
    %167 = vector.shape_cast %166 : vector<2x8xf32> to vector<2x8x1xf32>
    %168 = tpu.reciprocal %167 {approx = true} : vector<2x8x1xf32> -> vector<2x8x1xf32>
    %169 = vector.broadcast %168 : vector<2x8x1xf32> to vector<2x8x8xf32>
    %170 = arith.mulf %165, %169 : vector<2x8x8xf32>
    %171 = arith.truncf %170 : vector<2x8x8xf32> to vector<2x8x8xbf16>
    %172 = vector.extract_strided_slice %42 {offsets = [0, 0, 24], sizes = [2, 8, 4], strides = [1, 1, 1]} : vector<2x8x32xbf16> to vector<2x8x4xbf16>
    "tpu.trace_start"() <{level = 10 : i32, message = "bqk,bkd->bqd"}> : () -> ()
    %cst_69 = arith.constant dense<0.000000e+00> : vector<2x8x4xf32>
    %173 = tpu.matmul %171, %172, %cst_69 {dimension_numbers = #tpu.dot_dimension_numbers<[2], [1], [1], [2], [0, 0, 0, 1, 1, 2], [0], [0]>} : vector<2x8x8xbf16>, vector<2x8x4xbf16>, vector<2x8x4xf32> -> vector<2x8x4xf32>
    "tpu.trace_stop"() : () -> ()
    %174 = arith.truncf %173 : vector<2x8x4xf32> to vector<2x8x4xbf16>
    %c0_70 = arith.constant 0 : index
    %c0_71 = arith.constant 0 : index
    %c24 = arith.constant 24 : index
    %175 = vector.load %arg21[%c0_70, %c0_71, %c24] : memref<2x8x32xbf16, #tpu.memory_space<vmem>>, vector<2x8x4xbf16>
    tpu.vector_store %arg21[%c0_70, %c0_71, %c24], %174 {strides = array<i32>} : memref<2x8x32xbf16, #tpu.memory_space<vmem>>, vector<2x8x4xbf16>,
    %176 = vector.extract_strided_slice %22 {offsets = [0, 0, 28], sizes = [2, 8, 4], strides = [1, 1, 1]} : vector<2x8x32xbf16> to vector<2x8x4xbf16>
    %177 = vector.extract_strided_slice %32 {offsets = [0, 0, 28], sizes = [2, 8, 4], strides = [1, 1, 1]} : vector<2x8x32xbf16> to vector<2x8x4xbf16>
    "tpu.trace_start"() <{level = 10 : i32, message = "bqd,bkd->bqk"}> : () -> ()
    %cst_72 = arith.constant dense<0.000000e+00> : vector<2x8x8xf32>
    %178 = tpu.matmul %176, %177, %cst_72 {dimension_numbers = #tpu.dot_dimension_numbers<[2], [2], [1], [1], [0, 0, 0, 1, 1, 1], [0], [0]>} : vector<2x8x4xbf16>, vector<2x8x4xbf16>, vector<2x8x8xf32> -> vector<2x8x8xf32>
    "tpu.trace_stop"() : () -> ()
    %179 = arith.addf %178, %10 : vector<2x8x8xf32>
    %cst_73 = arith.constant dense<0xFF800000> : vector<2x8xf32>
    %180 = vector.multi_reduction <maximumf>, %179, %cst_73 [2] : vector<2x8x8xf32> to vector<2x8xf32>
    %181 = vector.shape_cast %180 : vector<2x8xf32> to vector<2x8x1xf32>
    %182 = vector.broadcast %181 : vector<2x8x1xf32> to vector<2x8x8xf32>
    %183 = arith.subf %179, %182 : vector<2x8x8xf32>
    %184 = math.exp %183 : vector<2x8x8xf32>
    %cst_74 = arith.constant dense<0.000000e+00> : vector<2x8xf32>
    %185 = vector.multi_reduction <add>, %184, %cst_74 [2] : vector<2x8x8xf32> to vector<2x8xf32>
    %186 = vector.shape_cast %185 : vector<2x8xf32> to vector<2x8x1xf32>
    %187 = tpu.reciprocal %186 {approx = true} : vector<2x8x1xf32> -> vector<2x8x1xf32>
    %188 = vector.broadcast %187 : vector<2x8x1xf32> to vector<2x8x8xf32>
    %189 = arith.mulf %184, %188 : vector<2x8x8xf32>
    %190 = arith.truncf %189 : vector<2x8x8xf32> to vector<2x8x8xbf16>
    %191 = vector.extract_strided_slice %42 {offsets = [0, 0, 28], sizes = [2, 8, 4], strides = [1, 1, 1]} : vector<2x8x32xbf16> to vector<2x8x4xbf16>
    "tpu.trace_start"() <{level = 10 : i32, message = "bqk,bkd->bqd"}> : () -> ()
    %cst_75 = arith.constant dense<0.000000e+00> : vector<2x8x4xf32>
    %192 = tpu.matmul %190, %191, %cst_75 {dimension_numbers = #tpu.dot_dimension_numbers<[2], [1], [1], [2], [0, 0, 0, 1, 1, 2], [0], [0]>} : vector<2x8x8xbf16>, vector<2x8x4xbf16>, vector<2x8x4xf32> -> vector<2x8x4xf32>
    "tpu.trace_stop"() : () -> ()
    %193 = arith.truncf %192 : vector<2x8x4xf32> to vector<2x8x4xbf16>
    %c0_76 = arith.constant 0 : index
    %c0_77 = arith.constant 0 : index
    %c28 = arith.constant 28 : index
    %194 = vector.load %arg21[%c0_76, %c0_77, %c28] : memref<2x8x32xbf16, #tpu.memory_space<vmem>>, vector<2x8x4xbf16>
    tpu.vector_store %arg21[%c0_76, %c0_77, %c28], %193 {strides = array<i32>} : memref<2x8x32xbf16, #tpu.memory_space<vmem>>, vector<2x8x4xbf16>,
    %c0_78 = arith.constant 0 : index
    %c0_79 = arith.constant 0 : index
    %c0_80 = arith.constant 0 : index
    %195 = vector.load %arg21[%c0_78, %c0_79, %c0_80] : memref<2x8x32xbf16, #tpu.memory_space<vmem>>, vector<2x8x32xbf16>
    %196 = vector.shape_cast %195 : vector<2x8x32xbf16> to vector<16x32xbf16>
    %c0_81 = arith.constant 0 : index
    %c0_82 = arith.constant 0 : index
    %c0_83 = arith.constant 0 : index
    %197 = vector.load %arg10[%c0_81, %c0_82, %c0_83] : memref<2x32x32xbf16, #tpu.memory_space<vmem>>, vector<1x32x32xbf16>
    %198 = vector.shape_cast %197 : vector<1x32x32xbf16> to vector<32x32xbf16>
    %cst_84 = arith.constant dense<0.000000e+00> : vector<16x32xf32>
    %199 = tpu.matmul %196, %198, %cst_84 {dimension_numbers = #tpu.dot_dimension_numbers<[1], [0], [0], [1], [0, 0, 1, 1], [], []>} : vector<16x32xbf16>, vector<32x32xbf16>, vector<16x32xf32> -> vector<16x32xf32>
    %c0_85 = arith.constant 0 : index
    %c0_86 = arith.constant 0 : index
    %c0_87 = arith.constant 0 : index
    %200 = vector.load %arg11[%c0_85, %c0_86, %c0_87] : memref<2x1x32xf32, #tpu.memory_space<vmem>>, vector<1x1x32xf32>
    %201 = vector.shape_cast %200 : vector<1x1x32xf32> to vector<1x32xf32>
    %202 = vector.broadcast %201 : vector<1x32xf32> to vector<16x32xf32>
    %203 = arith.addf %199, %202 : vector<16x32xf32>
    %204 = arith.addf %5, %203 : vector<16x32xf32>
    %c0_88 = arith.constant 0 : index
    %c0_89 = arith.constant 0 : index
    %c0_90 = arith.constant 0 : index
    %205 = vector.load %arg16[%c0_88, %c0_89, %c0_90] : memref<2x1x32xf32, #tpu.memory_space<vmem>>, vector<1x1x32xf32>
    %206 = vector.shape_cast %205 : vector<1x1x32xf32> to vector<1x32xf32>
    %c0_91 = arith.constant 0 : index
    %c0_92 = arith.constant 0 : index
    %c0_93 = arith.constant 0 : index
    %207 = vector.load %arg17[%c0_91, %c0_92, %c0_93] : memref<2x1x32xf32, #tpu.memory_space<vmem>>, vector<1x1x32xf32>
    %208 = vector.shape_cast %207 : vector<1x1x32xf32> to vector<1x32xf32>
    %cst_94 = arith.constant dense<0.000000e+00> : vector<16xf32>
    %209 = vector.multi_reduction <add>, %204, %cst_94 [1] : vector<16x32xf32> to vector<16xf32>
    %210 = vector.shape_cast %209 : vector<16xf32> to vector<16x1xf32>
    %cst_95 = arith.constant 3.200000e+01 : f32
    %211 = vector.broadcast %cst_95 : f32 to vector<16x1xf32>
    %212 = arith.divf %210, %211 : vector<16x1xf32>
    %213 = vector.broadcast %212 : vector<16x1xf32> to vector<16x32xf32>
    %214 = arith.subf %204, %213 : vector<16x32xf32>
    %215 = arith.mulf %214, %214 : vector<16x32xf32>
    %cst_96 = arith.constant dense<0.000000e+00> : vector<16xf32>
    %216 = vector.multi_reduction <add>, %215, %cst_96 [1] : vector<16x32xf32> to vector<16xf32>
    %217 = vector.shape_cast %216 : vector<16xf32> to vector<16x1xf32>
    %cst_97 = arith.constant 3.200000e+01 : f32
    %218 = vector.broadcast %cst_97 : f32 to vector<16x1xf32>
    %219 = arith.divf %217, %218 : vector<16x1xf32>
    %cst_98 = arith.constant 9.99999974E-6 : f32
    %220 = vector.broadcast %cst_98 : f32 to vector<16x1xf32>
    %221 = arith.addf %219, %220 : vector<16x1xf32>
    %222 = math.rsqrt %221 : vector<16x1xf32>
    %223 = vector.broadcast %222 : vector<16x1xf32> to vector<16x32xf32>
    %224 = arith.mulf %214, %223 : vector<16x32xf32>
    %225 = vector.broadcast %206 : vector<1x32xf32> to vector<16x32xf32>
    %226 = arith.mulf %224, %225 : vector<16x32xf32>
    %227 = vector.broadcast %208 : vector<1x32xf32> to vector<16x32xf32>
    %228 = arith.addf %226, %227 : vector<16x32xf32>
    %c0_99 = arith.constant 0 : index
    %c0_100 = arith.constant 0 : index
    %c0_101 = arith.constant 0 : index
    %229 = vector.load %arg12[%c0_99, %c0_100, %c0_101] : memref<2x32x2048xbf16, #tpu.memory_space<vmem>>, vector<1x32x2048xbf16>
    %230 = vector.shape_cast %229 : vector<1x32x2048xbf16> to vector<32x2048xbf16>
    %231 = arith.truncf %228 : vector<16x32xf32> to vector<16x32xbf16>
    %cst_102 = arith.constant dense<0.000000e+00> : vector<16x2048xf32>
    %232 = tpu.matmul %231, %230, %cst_102 {dimension_numbers = #tpu.dot_dimension_numbers<[1], [0], [0], [1], [0, 0, 1, 1], [], []>} : vector<16x32xbf16>, vector<32x2048xbf16>, vector<16x2048xf32> -> vector<16x2048xf32>
    %c0_103 = arith.constant 0 : index
    %c0_104 = arith.constant 0 : index
    %c0_105 = arith.constant 0 : index
    %233 = vector.load %arg13[%c0_103, %c0_104, %c0_105] : memref<2x1x2048xf32, #tpu.memory_space<vmem>>, vector<1x1x2048xf32>
    %234 = vector.shape_cast %233 : vector<1x1x2048xf32> to vector<1x2048xf32>
    %235 = vector.broadcast %234 : vector<1x2048xf32> to vector<16x2048xf32>
    %236 = arith.addf %232, %235 : vector<16x2048xf32>
    %cst_106 = arith.constant 0.000000e+00 : f32
    %237 = vector.broadcast %cst_106 : f32 to vector<16x2048xf32>
    %238 = arith.maximumf %236, %237 : vector<16x2048xf32>
    %c0_107 = arith.constant 0 : index
    %c0_108 = arith.constant 0 : index
    %c0_109 = arith.constant 0 : index
    %239 = vector.load %arg14[%c0_107, %c0_108, %c0_109] : memref<2x2048x32xbf16, #tpu.memory_space<vmem>>, vector<1x2048x32xbf16>
    %240 = vector.shape_cast %239 : vector<1x2048x32xbf16> to vector<2048x32xbf16>
    %241 = arith.truncf %238 : vector<16x2048xf32> to vector<16x2048xbf16>
    %cst_110 = arith.constant dense<0.000000e+00> : vector<16x32xf32>
    %242 = tpu.matmul %241, %240, %cst_110 {dimension_numbers = #tpu.dot_dimension_numbers<[1], [0], [0], [1], [0, 0, 1, 1], [], []>} : vector<16x2048xbf16>, vector<2048x32xbf16>, vector<16x32xf32> -> vector<16x32xf32>
    %c0_111 = arith.constant 0 : index
    %c0_112 = arith.constant 0 : index
    %c0_113 = arith.constant 0 : index
    %243 = vector.load %arg15[%c0_111, %c0_112, %c0_113] : memref<2x1x32xf32, #tpu.memory_space<vmem>>, vector<1x1x32xf32>
    %244 = vector.shape_cast %243 : vector<1x1x32xf32> to vector<1x32xf32>
    %245 = vector.broadcast %244 : vector<1x32xf32> to vector<16x32xf32>
    %246 = arith.addf %242, %245 : vector<16x32xf32>
    %247 = arith.addf %228, %246 : vector<16x32xf32>
    %c0_114 = arith.constant 0 : index
    %c0_115 = arith.constant 0 : index
    %c0_116 = arith.constant 0 : index
    %248 = vector.load %arg18[%c0_114, %c0_115, %c0_116] : memref<2x1x32xf32, #tpu.memory_space<vmem>>, vector<1x1x32xf32>
    %249 = vector.shape_cast %248 : vector<1x1x32xf32> to vector<1x32xf32>
    %c0_117 = arith.constant 0 : index
    %c0_118 = arith.constant 0 : index
    %c0_119 = arith.constant 0 : index
    %250 = vector.load %arg19[%c0_117, %c0_118, %c0_119] : memref<2x1x32xf32, #tpu.memory_space<vmem>>, vector<1x1x32xf32>
    %251 = vector.shape_cast %250 : vector<1x1x32xf32> to vector<1x32xf32>
    %cst_120 = arith.constant dense<0.000000e+00> : vector<16xf32>
    %252 = vector.multi_reduction <add>, %247, %cst_120 [1] : vector<16x32xf32> to vector<16xf32>
    %253 = vector.shape_cast %252 : vector<16xf32> to vector<16x1xf32>
    %cst_121 = arith.constant 3.200000e+01 : f32
    %254 = vector.broadcast %cst_121 : f32 to vector<16x1xf32>
    %255 = arith.divf %253, %254 : vector<16x1xf32>
    %256 = vector.broadcast %255 : vector<16x1xf32> to vector<16x32xf32>
    %257 = arith.subf %247, %256 : vector<16x32xf32>
    %258 = arith.mulf %257, %257 : vector<16x32xf32>
    %cst_122 = arith.constant dense<0.000000e+00> : vector<16xf32>
    %259 = vector.multi_reduction <add>, %258, %cst_122 [1] : vector<16x32xf32> to vector<16xf32>
    %260 = vector.shape_cast %259 : vector<16xf32> to vector<16x1xf32>
    %cst_123 = arith.constant 3.200000e+01 : f32
    %261 = vector.broadcast %cst_123 : f32 to vector<16x1xf32>
    %262 = arith.divf %260, %261 : vector<16x1xf32>
    %cst_124 = arith.constant 9.99999974E-6 : f32
    %263 = vector.broadcast %cst_124 : f32 to vector<16x1xf32>
    %264 = arith.addf %262, %263 : vector<16x1xf32>
    %265 = math.rsqrt %264 : vector<16x1xf32>
    %266 = vector.broadcast %265 : vector<16x1xf32> to vector<16x32xf32>
    %267 = arith.mulf %257, %266 : vector<16x32xf32>
    %268 = vector.broadcast %249 : vector<1x32xf32> to vector<16x32xf32>
    %269 = arith.mulf %267, %268 : vector<16x32xf32>
    %270 = vector.broadcast %251 : vector<1x32xf32> to vector<16x32xf32>
    %271 = arith.addf %269, %270 : vector<16x32xf32>
    %c1 = arith.constant 1 : index
    %c0_125 = arith.constant 0 : index
    %c0_126 = arith.constant 0 : index
    %272 = vector.load %arg4[%c1, %c0_125, %c0_126] : memref<2x32x32xbf16, #tpu.memory_space<vmem>>, vector<1x32x32xbf16>
    %273 = vector.shape_cast %272 : vector<1x32x32xbf16> to vector<32x32xbf16>
    %274 = arith.truncf %271 : vector<16x32xf32> to vector<16x32xbf16>
    %cst_127 = arith.constant dense<0.000000e+00> : vector<16x32xf32>
    %275 = tpu.matmul %274, %273, %cst_127 {dimension_numbers = #tpu.dot_dimension_numbers<[1], [0], [0], [1], [0, 0, 1, 1], [], []>} : vector<16x32xbf16>, vector<32x32xbf16>, vector<16x32xf32> -> vector<16x32xf32>
    %c1_128 = arith.constant 1 : index
    %c0_129 = arith.constant 0 : index
    %c0_130 = arith.constant 0 : index
    %276 = vector.load %arg7[%c1_128, %c0_129, %c0_130] : memref<2x1x32xf32, #tpu.memory_space<vmem>>, vector<1x1x32xf32>
    %277 = vector.shape_cast %276 : vector<1x1x32xf32> to vector<1x32xf32>
    %278 = vector.broadcast %277 : vector<1x32xf32> to vector<16x32xf32>
    %279 = arith.addf %275, %278 : vector<16x32xf32>
    %cst_131 = arith.constant 5.000000e-01 : f32
    %280 = vector.broadcast %cst_131 : f32 to vector<16x32xf32>
    %281 = arith.mulf %279, %280 : vector<16x32xf32>
    %282 = arith.truncf %281 : vector<16x32xf32> to vector<16x32xbf16>
    %283 = vector.shape_cast %282 : vector<16x32xbf16> to vector<2x8x32xbf16>
    %c1_132 = arith.constant 1 : index
    %c0_133 = arith.constant 0 : index
    %c0_134 = arith.constant 0 : index
    %284 = vector.load %arg5[%c1_132, %c0_133, %c0_134] : memref<2x32x32xbf16, #tpu.memory_space<vmem>>, vector<1x32x32xbf16>
    %285 = vector.shape_cast %284 : vector<1x32x32xbf16> to vector<32x32xbf16>
    %286 = arith.truncf %271 : vector<16x32xf32> to vector<16x32xbf16>
    %cst_135 = arith.constant dense<0.000000e+00> : vector<16x32xf32>
    %287 = tpu.matmul %286, %285, %cst_135 {dimension_numbers = #tpu.dot_dimension_numbers<[1], [0], [0], [1], [0, 0, 1, 1], [], []>} : vector<16x32xbf16>, vector<32x32xbf16>, vector<16x32xf32> -> vector<16x32xf32>
    %c1_136 = arith.constant 1 : index
    %c0_137 = arith.constant 0 : index
    %c0_138 = arith.constant 0 : index
    %288 = vector.load %arg8[%c1_136, %c0_137, %c0_138] : memref<2x1x32xf32, #tpu.memory_space<vmem>>, vector<1x1x32xf32>
    %289 = vector.shape_cast %288 : vector<1x1x32xf32> to vector<1x32xf32>
    %290 = vector.broadcast %289 : vector<1x32xf32> to vector<16x32xf32>
    %291 = arith.addf %287, %290 : vector<16x32xf32>
    %292 = arith.truncf %291 : vector<16x32xf32> to vector<16x32xbf16>
    %293 = vector.shape_cast %292 : vector<16x32xbf16> to vector<2x8x32xbf16>
    %c1_139 = arith.constant 1 : index
    %c0_140 = arith.constant 0 : index
    %c0_141 = arith.constant 0 : index
    %294 = vector.load %arg6[%c1_139, %c0_140, %c0_141] : memref<2x32x32xbf16, #tpu.memory_space<vmem>>, vector<1x32x32xbf16>
    %295 = vector.shape_cast %294 : vector<1x32x32xbf16> to vector<32x32xbf16>
    %296 = arith.truncf %271 : vector<16x32xf32> to vector<16x32xbf16>
    %cst_142 = arith.constant dense<0.000000e+00> : vector<16x32xf32>
    %297 = tpu.matmul %296, %295, %cst_142 {dimension_numbers = #tpu.dot_dimension_numbers<[1], [0], [0], [1], [0, 0, 1, 1], [], []>} : vector<16x32xbf16>, vector<32x32xbf16>, vector<16x32xf32> -> vector<16x32xf32>
    %c1_143 = arith.constant 1 : index
    %c0_144 = arith.constant 0 : index
    %c0_145 = arith.constant 0 : index
    %298 = vector.load %arg9[%c1_143, %c0_144, %c0_145] : memref<2x1x32xf32, #tpu.memory_space<vmem>>, vector<1x1x32xf32>
    %299 = vector.shape_cast %298 : vector<1x1x32xf32> to vector<1x32xf32>
    %300 = vector.broadcast %299 : vector<1x32xf32> to vector<16x32xf32>
    %301 = arith.addf %297, %300 : vector<16x32xf32>
    %302 = arith.truncf %301 : vector<16x32xf32> to vector<16x32xbf16>
    %303 = vector.shape_cast %302 : vector<16x32xbf16> to vector<2x8x32xbf16>
    %304 = vector.extract_strided_slice %283 {offsets = [0, 0, 0], sizes = [2, 8, 4], strides = [1, 1, 1]} : vector<2x8x32xbf16> to vector<2x8x4xbf16>
    %305 = vector.extract_strided_slice %293 {offsets = [0, 0, 0], sizes = [2, 8, 4], strides = [1, 1, 1]} : vector<2x8x32xbf16> to vector<2x8x4xbf16>
    "tpu.trace_start"() <{level = 10 : i32, message = "bqd,bkd->bqk"}> : () -> ()
    %cst_146 = arith.constant dense<0.000000e+00> : vector<2x8x8xf32>
    %306 = tpu.matmul %304, %305, %cst_146 {dimension_numbers = #tpu.dot_dimension_numbers<[2], [2], [1], [1], [0, 0, 0, 1, 1, 1], [0], [0]>} : vector<2x8x4xbf16>, vector<2x8x4xbf16>, vector<2x8x8xf32> -> vector<2x8x8xf32>
    "tpu.trace_stop"() : () -> ()
    %307 = arith.addf %306, %10 : vector<2x8x8xf32>
    %cst_147 = arith.constant dense<0xFF800000> : vector<2x8xf32>
    %308 = vector.multi_reduction <maximumf>, %307, %cst_147 [2] : vector<2x8x8xf32> to vector<2x8xf32>
    %309 = vector.shape_cast %308 : vector<2x8xf32> to vector<2x8x1xf32>
    %310 = vector.broadcast %309 : vector<2x8x1xf32> to vector<2x8x8xf32>
    %311 = arith.subf %307, %310 : vector<2x8x8xf32>
    %312 = math.exp %311 : vector<2x8x8xf32>
    %cst_148 = arith.constant dense<0.000000e+00> : vector<2x8xf32>
    %313 = vector.multi_reduction <add>, %312, %cst_148 [2] : vector<2x8x8xf32> to vector<2x8xf32>
    %314 = vector.shape_cast %313 : vector<2x8xf32> to vector<2x8x1xf32>
    %315 = tpu.reciprocal %314 {approx = true} : vector<2x8x1xf32> -> vector<2x8x1xf32>
    %316 = vector.broadcast %315 : vector<2x8x1xf32> to vector<2x8x8xf32>
    %317 = arith.mulf %312, %316 : vector<2x8x8xf32>
    %318 = arith.truncf %317 : vector<2x8x8xf32> to vector<2x8x8xbf16>
    %319 = vector.extract_strided_slice %303 {offsets = [0, 0, 0], sizes = [2, 8, 4], strides = [1, 1, 1]} : vector<2x8x32xbf16> to vector<2x8x4xbf16>
    "tpu.trace_start"() <{level = 10 : i32, message = "bqk,bkd->bqd"}> : () -> ()
    %cst_149 = arith.constant dense<0.000000e+00> : vector<2x8x4xf32>
    %320 = tpu.matmul %318, %319, %cst_149 {dimension_numbers = #tpu.dot_dimension_numbers<[2], [1], [1], [2], [0, 0, 0, 1, 1, 2], [0], [0]>} : vector<2x8x8xbf16>, vector<2x8x4xbf16>, vector<2x8x4xf32> -> vector<2x8x4xf32>
    "tpu.trace_stop"() : () -> ()
    %321 = arith.truncf %320 : vector<2x8x4xf32> to vector<2x8x4xbf16>
    %c0_150 = arith.constant 0 : index
    %c0_151 = arith.constant 0 : index
    %c0_152 = arith.constant 0 : index
    %322 = vector.load %arg21[%c0_150, %c0_151, %c0_152] : memref<2x8x32xbf16, #tpu.memory_space<vmem>>, vector<2x8x4xbf16>
    tpu.vector_store %arg21[%c0_150, %c0_151, %c0_152], %321 {strides = array<i32>} : memref<2x8x32xbf16, #tpu.memory_space<vmem>>, vector<2x8x4xbf16>,
    %323 = vector.extract_strided_slice %283 {offsets = [0, 0, 4], sizes = [2, 8, 4], strides = [1, 1, 1]} : vector<2x8x32xbf16> to vector<2x8x4xbf16>
    %324 = vector.extract_strided_slice %293 {offsets = [0, 0, 4], sizes = [2, 8, 4], strides = [1, 1, 1]} : vector<2x8x32xbf16> to vector<2x8x4xbf16>
    "tpu.trace_start"() <{level = 10 : i32, message = "bqd,bkd->bqk"}> : () -> ()
    %cst_153 = arith.constant dense<0.000000e+00> : vector<2x8x8xf32>
    %325 = tpu.matmul %323, %324, %cst_153 {dimension_numbers = #tpu.dot_dimension_numbers<[2], [2], [1], [1], [0, 0, 0, 1, 1, 1], [0], [0]>} : vector<2x8x4xbf16>, vector<2x8x4xbf16>, vector<2x8x8xf32> -> vector<2x8x8xf32>
    "tpu.trace_stop"() : () -> ()
    %326 = arith.addf %325, %10 : vector<2x8x8xf32>
    %cst_154 = arith.constant dense<0xFF800000> : vector<2x8xf32>
    %327 = vector.multi_reduction <maximumf>, %326, %cst_154 [2] : vector<2x8x8xf32> to vector<2x8xf32>
    %328 = vector.shape_cast %327 : vector<2x8xf32> to vector<2x8x1xf32>
    %329 = vector.broadcast %328 : vector<2x8x1xf32> to vector<2x8x8xf32>
    %330 = arith.subf %326, %329 : vector<2x8x8xf32>
    %331 = math.exp %330 : vector<2x8x8xf32>
    %cst_155 = arith.constant dense<0.000000e+00> : vector<2x8xf32>
    %332 = vector.multi_reduction <add>, %331, %cst_155 [2] : vector<2x8x8xf32> to vector<2x8xf32>
    %333 = vector.shape_cast %332 : vector<2x8xf32> to vector<2x8x1xf32>
    %334 = tpu.reciprocal %333 {approx = true} : vector<2x8x1xf32> -> vector<2x8x1xf32>
    %335 = vector.broadcast %334 : vector<2x8x1xf32> to vector<2x8x8xf32>
    %336 = arith.mulf %331, %335 : vector<2x8x8xf32>
    %337 = arith.truncf %336 : vector<2x8x8xf32> to vector<2x8x8xbf16>
    %338 = vector.extract_strided_slice %303 {offsets = [0, 0, 4], sizes = [2, 8, 4], strides = [1, 1, 1]} : vector<2x8x32xbf16> to vector<2x8x4xbf16>
    "tpu.trace_start"() <{level = 10 : i32, message = "bqk,bkd->bqd"}> : () -> ()
    %cst_156 = arith.constant dense<0.000000e+00> : vector<2x8x4xf32>
    %339 = tpu.matmul %337, %338, %cst_156 {dimension_numbers = #tpu.dot_dimension_numbers<[2], [1], [1], [2], [0, 0, 0, 1, 1, 2], [0], [0]>} : vector<2x8x8xbf16>, vector<2x8x4xbf16>, vector<2x8x4xf32> -> vector<2x8x4xf32>
    "tpu.trace_stop"() : () -> ()
    %340 = arith.truncf %339 : vector<2x8x4xf32> to vector<2x8x4xbf16>
    %c0_157 = arith.constant 0 : index
    %c0_158 = arith.constant 0 : index
    %c4_159 = arith.constant 4 : index
    %341 = vector.load %arg21[%c0_157, %c0_158, %c4_159] : memref<2x8x32xbf16, #tpu.memory_space<vmem>>, vector<2x8x4xbf16>
    tpu.vector_store %arg21[%c0_157, %c0_158, %c4_159], %340 {strides = array<i32>} : memref<2x8x32xbf16, #tpu.memory_space<vmem>>, vector<2x8x4xbf16>,
    %342 = vector.extract_strided_slice %283 {offsets = [0, 0, 8], sizes = [2, 8, 4], strides = [1, 1, 1]} : vector<2x8x32xbf16> to vector<2x8x4xbf16>
    %343 = vector.extract_strided_slice %293 {offsets = [0, 0, 8], sizes = [2, 8, 4], strides = [1, 1, 1]} : vector<2x8x32xbf16> to vector<2x8x4xbf16>
    "tpu.trace_start"() <{level = 10 : i32, message = "bqd,bkd->bqk"}> : () -> ()
    %cst_160 = arith.constant dense<0.000000e+00> : vector<2x8x8xf32>
    %344 = tpu.matmul %342, %343, %cst_160 {dimension_numbers = #tpu.dot_dimension_numbers<[2], [2], [1], [1], [0, 0, 0, 1, 1, 1], [0], [0]>} : vector<2x8x4xbf16>, vector<2x8x4xbf16>, vector<2x8x8xf32> -> vector<2x8x8xf32>
    "tpu.trace_stop"() : () -> ()
    %345 = arith.addf %344, %10 : vector<2x8x8xf32>
    %cst_161 = arith.constant dense<0xFF800000> : vector<2x8xf32>
    %346 = vector.multi_reduction <maximumf>, %345, %cst_161 [2] : vector<2x8x8xf32> to vector<2x8xf32>
    %347 = vector.shape_cast %346 : vector<2x8xf32> to vector<2x8x1xf32>
    %348 = vector.broadcast %347 : vector<2x8x1xf32> to vector<2x8x8xf32>
    %349 = arith.subf %345, %348 : vector<2x8x8xf32>
    %350 = math.exp %349 : vector<2x8x8xf32>
    %cst_162 = arith.constant dense<0.000000e+00> : vector<2x8xf32>
    %351 = vector.multi_reduction <add>, %350, %cst_162 [2] : vector<2x8x8xf32> to vector<2x8xf32>
    %352 = vector.shape_cast %351 : vector<2x8xf32> to vector<2x8x1xf32>
    %353 = tpu.reciprocal %352 {approx = true} : vector<2x8x1xf32> -> vector<2x8x1xf32>
    %354 = vector.broadcast %353 : vector<2x8x1xf32> to vector<2x8x8xf32>
    %355 = arith.mulf %350, %354 : vector<2x8x8xf32>
    %356 = arith.truncf %355 : vector<2x8x8xf32> to vector<2x8x8xbf16>
    %357 = vector.extract_strided_slice %303 {offsets = [0, 0, 8], sizes = [2, 8, 4], strides = [1, 1, 1]} : vector<2x8x32xbf16> to vector<2x8x4xbf16>
    "tpu.trace_start"() <{level = 10 : i32, message = "bqk,bkd->bqd"}> : () -> ()
    %cst_163 = arith.constant dense<0.000000e+00> : vector<2x8x4xf32>
    %358 = tpu.matmul %356, %357, %cst_163 {dimension_numbers = #tpu.dot_dimension_numbers<[2], [1], [1], [2], [0, 0, 0, 1, 1, 2], [0], [0]>} : vector<2x8x8xbf16>, vector<2x8x4xbf16>, vector<2x8x4xf32> -> vector<2x8x4xf32>
    "tpu.trace_stop"() : () -> ()
    %359 = arith.truncf %358 : vector<2x8x4xf32> to vector<2x8x4xbf16>
    %c0_164 = arith.constant 0 : index
    %c0_165 = arith.constant 0 : index
    %c8_166 = arith.constant 8 : index
    %360 = vector.load %arg21[%c0_164, %c0_165, %c8_166] : memref<2x8x32xbf16, #tpu.memory_space<vmem>>, vector<2x8x4xbf16>
    tpu.vector_store %arg21[%c0_164, %c0_165, %c8_166], %359 {strides = array<i32>} : memref<2x8x32xbf16, #tpu.memory_space<vmem>>, vector<2x8x4xbf16>,
    %361 = vector.extract_strided_slice %283 {offsets = [0, 0, 12], sizes = [2, 8, 4], strides = [1, 1, 1]} : vector<2x8x32xbf16> to vector<2x8x4xbf16>
    %362 = vector.extract_strided_slice %293 {offsets = [0, 0, 12], sizes = [2, 8, 4], strides = [1, 1, 1]} : vector<2x8x32xbf16> to vector<2x8x4xbf16>
    "tpu.trace_start"() <{level = 10 : i32, message = "bqd,bkd->bqk"}> : () -> ()
    %cst_167 = arith.constant dense<0.000000e+00> : vector<2x8x8xf32>
    %363 = tpu.matmul %361, %362, %cst_167 {dimension_numbers = #tpu.dot_dimension_numbers<[2], [2], [1], [1], [0, 0, 0, 1, 1, 1], [0], [0]>} : vector<2x8x4xbf16>, vector<2x8x4xbf16>, vector<2x8x8xf32> -> vector<2x8x8xf32>
    "tpu.trace_stop"() : () -> ()
    %364 = arith.addf %363, %10 : vector<2x8x8xf32>
    %cst_168 = arith.constant dense<0xFF800000> : vector<2x8xf32>
    %365 = vector.multi_reduction <maximumf>, %364, %cst_168 [2] : vector<2x8x8xf32> to vector<2x8xf32>
    %366 = vector.shape_cast %365 : vector<2x8xf32> to vector<2x8x1xf32>
    %367 = vector.broadcast %366 : vector<2x8x1xf32> to vector<2x8x8xf32>
    %368 = arith.subf %364, %367 : vector<2x8x8xf32>
    %369 = math.exp %368 : vector<2x8x8xf32>
    %cst_169 = arith.constant dense<0.000000e+00> : vector<2x8xf32>
    %370 = vector.multi_reduction <add>, %369, %cst_169 [2] : vector<2x8x8xf32> to vector<2x8xf32>
    %371 = vector.shape_cast %370 : vector<2x8xf32> to vector<2x8x1xf32>
    %372 = tpu.reciprocal %371 {approx = true} : vector<2x8x1xf32> -> vector<2x8x1xf32>
    %373 = vector.broadcast %372 : vector<2x8x1xf32> to vector<2x8x8xf32>
    %374 = arith.mulf %369, %373 : vector<2x8x8xf32>
    %375 = arith.truncf %374 : vector<2x8x8xf32> to vector<2x8x8xbf16>
    %376 = vector.extract_strided_slice %303 {offsets = [0, 0, 12], sizes = [2, 8, 4], strides = [1, 1, 1]} : vector<2x8x32xbf16> to vector<2x8x4xbf16>
    "tpu.trace_start"() <{level = 10 : i32, message = "bqk,bkd->bqd"}> : () -> ()
    %cst_170 = arith.constant dense<0.000000e+00> : vector<2x8x4xf32>
    %377 = tpu.matmul %375, %376, %cst_170 {dimension_numbers = #tpu.dot_dimension_numbers<[2], [1], [1], [2], [0, 0, 0, 1, 1, 2], [0], [0]>} : vector<2x8x8xbf16>, vector<2x8x4xbf16>, vector<2x8x4xf32> -> vector<2x8x4xf32>
    "tpu.trace_stop"() : () -> ()
    %378 = arith.truncf %377 : vector<2x8x4xf32> to vector<2x8x4xbf16>
    %c0_171 = arith.constant 0 : index
    %c0_172 = arith.constant 0 : index
    %c12_173 = arith.constant 12 : index
    %379 = vector.load %arg21[%c0_171, %c0_172, %c12_173] : memref<2x8x32xbf16, #tpu.memory_space<vmem>>, vector<2x8x4xbf16>
    tpu.vector_store %arg21[%c0_171, %c0_172, %c12_173], %378 {strides = array<i32>} : memref<2x8x32xbf16, #tpu.memory_space<vmem>>, vector<2x8x4xbf16>,
    %380 = vector.extract_strided_slice %283 {offsets = [0, 0, 16], sizes = [2, 8, 4], strides = [1, 1, 1]} : vector<2x8x32xbf16> to vector<2x8x4xbf16>
    %381 = vector.extract_strided_slice %293 {offsets = [0, 0, 16], sizes = [2, 8, 4], strides = [1, 1, 1]} : vector<2x8x32xbf16> to vector<2x8x4xbf16>
    "tpu.trace_start"() <{level = 10 : i32, message = "bqd,bkd->bqk"}> : () -> ()
    %cst_174 = arith.constant dense<0.000000e+00> : vector<2x8x8xf32>
    %382 = tpu.matmul %380, %381, %cst_174 {dimension_numbers = #tpu.dot_dimension_numbers<[2], [2], [1], [1], [0, 0, 0, 1, 1, 1], [0], [0]>} : vector<2x8x4xbf16>, vector<2x8x4xbf16>, vector<2x8x8xf32> -> vector<2x8x8xf32>
    "tpu.trace_stop"() : () -> ()
    %383 = arith.addf %382, %10 : vector<2x8x8xf32>
    %cst_175 = arith.constant dense<0xFF800000> : vector<2x8xf32>
    %384 = vector.multi_reduction <maximumf>, %383, %cst_175 [2] : vector<2x8x8xf32> to vector<2x8xf32>
    %385 = vector.shape_cast %384 : vector<2x8xf32> to vector<2x8x1xf32>
    %386 = vector.broadcast %385 : vector<2x8x1xf32> to vector<2x8x8xf32>
    %387 = arith.subf %383, %386 : vector<2x8x8xf32>
    %388 = math.exp %387 : vector<2x8x8xf32>
    %cst_176 = arith.constant dense<0.000000e+00> : vector<2x8xf32>
    %389 = vector.multi_reduction <add>, %388, %cst_176 [2] : vector<2x8x8xf32> to vector<2x8xf32>
    %390 = vector.shape_cast %389 : vector<2x8xf32> to vector<2x8x1xf32>
    %391 = tpu.reciprocal %390 {approx = true} : vector<2x8x1xf32> -> vector<2x8x1xf32>
    %392 = vector.broadcast %391 : vector<2x8x1xf32> to vector<2x8x8xf32>
    %393 = arith.mulf %388, %392 : vector<2x8x8xf32>
    %394 = arith.truncf %393 : vector<2x8x8xf32> to vector<2x8x8xbf16>
    %395 = vector.extract_strided_slice %303 {offsets = [0, 0, 16], sizes = [2, 8, 4], strides = [1, 1, 1]} : vector<2x8x32xbf16> to vector<2x8x4xbf16>
    "tpu.trace_start"() <{level = 10 : i32, message = "bqk,bkd->bqd"}> : () -> ()
    %cst_177 = arith.constant dense<0.000000e+00> : vector<2x8x4xf32>
    %396 = tpu.matmul %394, %395, %cst_177 {dimension_numbers = #tpu.dot_dimension_numbers<[2], [1], [1], [2], [0, 0, 0, 1, 1, 2], [0], [0]>} : vector<2x8x8xbf16>, vector<2x8x4xbf16>, vector<2x8x4xf32> -> vector<2x8x4xf32>
    "tpu.trace_stop"() : () -> ()
    %397 = arith.truncf %396 : vector<2x8x4xf32> to vector<2x8x4xbf16>
    %c0_178 = arith.constant 0 : index
    %c0_179 = arith.constant 0 : index
    %c16_180 = arith.constant 16 : index
    %398 = vector.load %arg21[%c0_178, %c0_179, %c16_180] : memref<2x8x32xbf16, #tpu.memory_space<vmem>>, vector<2x8x4xbf16>
    tpu.vector_store %arg21[%c0_178, %c0_179, %c16_180], %397 {strides = array<i32>} : memref<2x8x32xbf16, #tpu.memory_space<vmem>>, vector<2x8x4xbf16>,
    %399 = vector.extract_strided_slice %283 {offsets = [0, 0, 20], sizes = [2, 8, 4], strides = [1, 1, 1]} : vector<2x8x32xbf16> to vector<2x8x4xbf16>
    %400 = vector.extract_strided_slice %293 {offsets = [0, 0, 20], sizes = [2, 8, 4], strides = [1, 1, 1]} : vector<2x8x32xbf16> to vector<2x8x4xbf16>
    "tpu.trace_start"() <{level = 10 : i32, message = "bqd,bkd->bqk"}> : () -> ()
    %cst_181 = arith.constant dense<0.000000e+00> : vector<2x8x8xf32>
    %401 = tpu.matmul %399, %400, %cst_181 {dimension_numbers = #tpu.dot_dimension_numbers<[2], [2], [1], [1], [0, 0, 0, 1, 1, 1], [0], [0]>} : vector<2x8x4xbf16>, vector<2x8x4xbf16>, vector<2x8x8xf32> -> vector<2x8x8xf32>
    "tpu.trace_stop"() : () -> ()
    %402 = arith.addf %401, %10 : vector<2x8x8xf32>
    %cst_182 = arith.constant dense<0xFF800000> : vector<2x8xf32>
    %403 = vector.multi_reduction <maximumf>, %402, %cst_182 [2] : vector<2x8x8xf32> to vector<2x8xf32>
    %404 = vector.shape_cast %403 : vector<2x8xf32> to vector<2x8x1xf32>
    %405 = vector.broadcast %404 : vector<2x8x1xf32> to vector<2x8x8xf32>
    %406 = arith.subf %402, %405 : vector<2x8x8xf32>
    %407 = math.exp %406 : vector<2x8x8xf32>
    %cst_183 = arith.constant dense<0.000000e+00> : vector<2x8xf32>
    %408 = vector.multi_reduction <add>, %407, %cst_183 [2] : vector<2x8x8xf32> to vector<2x8xf32>
    %409 = vector.shape_cast %408 : vector<2x8xf32> to vector<2x8x1xf32>
    %410 = tpu.reciprocal %409 {approx = true} : vector<2x8x1xf32> -> vector<2x8x1xf32>
    %411 = vector.broadcast %410 : vector<2x8x1xf32> to vector<2x8x8xf32>
    %412 = arith.mulf %407, %411 : vector<2x8x8xf32>
    %413 = arith.truncf %412 : vector<2x8x8xf32> to vector<2x8x8xbf16>
    %414 = vector.extract_strided_slice %303 {offsets = [0, 0, 20], sizes = [2, 8, 4], strides = [1, 1, 1]} : vector<2x8x32xbf16> to vector<2x8x4xbf16>
    "tpu.trace_start"() <{level = 10 : i32, message = "bqk,bkd->bqd"}> : () -> ()
    %cst_184 = arith.constant dense<0.000000e+00> : vector<2x8x4xf32>
    %415 = tpu.matmul %413, %414, %cst_184 {dimension_numbers = #tpu.dot_dimension_numbers<[2], [1], [1], [2], [0, 0, 0, 1, 1, 2], [0], [0]>} : vector<2x8x8xbf16>, vector<2x8x4xbf16>, vector<2x8x4xf32> -> vector<2x8x4xf32>
    "tpu.trace_stop"() : () -> ()
    %416 = arith.truncf %415 : vector<2x8x4xf32> to vector<2x8x4xbf16>
    %c0_185 = arith.constant 0 : index
    %c0_186 = arith.constant 0 : index
    %c20_187 = arith.constant 20 : index
    %417 = vector.load %arg21[%c0_185, %c0_186, %c20_187] : memref<2x8x32xbf16, #tpu.memory_space<vmem>>, vector<2x8x4xbf16>
    tpu.vector_store %arg21[%c0_185, %c0_186, %c20_187], %416 {strides = array<i32>} : memref<2x8x32xbf16, #tpu.memory_space<vmem>>, vector<2x8x4xbf16>,
    %418 = vector.extract_strided_slice %283 {offsets = [0, 0, 24], sizes = [2, 8, 4], strides = [1, 1, 1]} : vector<2x8x32xbf16> to vector<2x8x4xbf16>
    %419 = vector.extract_strided_slice %293 {offsets = [0, 0, 24], sizes = [2, 8, 4], strides = [1, 1, 1]} : vector<2x8x32xbf16> to vector<2x8x4xbf16>
    "tpu.trace_start"() <{level = 10 : i32, message = "bqd,bkd->bqk"}> : () -> ()
    %cst_188 = arith.constant dense<0.000000e+00> : vector<2x8x8xf32>
    %420 = tpu.matmul %418, %419, %cst_188 {dimension_numbers = #tpu.dot_dimension_numbers<[2], [2], [1], [1], [0, 0, 0, 1, 1, 1], [0], [0]>} : vector<2x8x4xbf16>, vector<2x8x4xbf16>, vector<2x8x8xf32> -> vector<2x8x8xf32>
    "tpu.trace_stop"() : () -> ()
    %421 = arith.addf %420, %10 : vector<2x8x8xf32>
    %cst_189 = arith.constant dense<0xFF800000> : vector<2x8xf32>
    %422 = vector.multi_reduction <maximumf>, %421, %cst_189 [2] : vector<2x8x8xf32> to vector<2x8xf32>
    %423 = vector.shape_cast %422 : vector<2x8xf32> to vector<2x8x1xf32>
    %424 = vector.broadcast %423 : vector<2x8x1xf32> to vector<2x8x8xf32>
    %425 = arith.subf %421, %424 : vector<2x8x8xf32>
    %426 = math.exp %425 : vector<2x8x8xf32>
    %cst_190 = arith.constant dense<0.000000e+00> : vector<2x8xf32>
    %427 = vector.multi_reduction <add>, %426, %cst_190 [2] : vector<2x8x8xf32> to vector<2x8xf32>
    %428 = vector.shape_cast %427 : vector<2x8xf32> to vector<2x8x1xf32>
    %429 = tpu.reciprocal %428 {approx = true} : vector<2x8x1xf32> -> vector<2x8x1xf32>
    %430 = vector.broadcast %429 : vector<2x8x1xf32> to vector<2x8x8xf32>
    %431 = arith.mulf %426, %430 : vector<2x8x8xf32>
    %432 = arith.truncf %431 : vector<2x8x8xf32> to vector<2x8x8xbf16>
    %433 = vector.extract_strided_slice %303 {offsets = [0, 0, 24], sizes = [2, 8, 4], strides = [1, 1, 1]} : vector<2x8x32xbf16> to vector<2x8x4xbf16>
    "tpu.trace_start"() <{level = 10 : i32, message = "bqk,bkd->bqd"}> : () -> ()
    %cst_191 = arith.constant dense<0.000000e+00> : vector<2x8x4xf32>
    %434 = tpu.matmul %432, %433, %cst_191 {dimension_numbers = #tpu.dot_dimension_numbers<[2], [1], [1], [2], [0, 0, 0, 1, 1, 2], [0], [0]>} : vector<2x8x8xbf16>, vector<2x8x4xbf16>, vector<2x8x4xf32> -> vector<2x8x4xf32>
    "tpu.trace_stop"() : () -> ()
    %435 = arith.truncf %434 : vector<2x8x4xf32> to vector<2x8x4xbf16>
    %c0_192 = arith.constant 0 : index
    %c0_193 = arith.constant 0 : index
    %c24_194 = arith.constant 24 : index
    %436 = vector.load %arg21[%c0_192, %c0_193, %c24_194] : memref<2x8x32xbf16, #tpu.memory_space<vmem>>, vector<2x8x4xbf16>
    tpu.vector_store %arg21[%c0_192, %c0_193, %c24_194], %435 {strides = array<i32>} : memref<2x8x32xbf16, #tpu.memory_space<vmem>>, vector<2x8x4xbf16>,
    %437 = vector.extract_strided_slice %283 {offsets = [0, 0, 28], sizes = [2, 8, 4], strides = [1, 1, 1]} : vector<2x8x32xbf16> to vector<2x8x4xbf16>
    %438 = vector.extract_strided_slice %293 {offsets = [0, 0, 28], sizes = [2, 8, 4], strides = [1, 1, 1]} : vector<2x8x32xbf16> to vector<2x8x4xbf16>
    "tpu.trace_start"() <{level = 10 : i32, message = "bqd,bkd->bqk"}> : () -> ()
    %cst_195 = arith.constant dense<0.000000e+00> : vector<2x8x8xf32>
    %439 = tpu.matmul %437, %438, %cst_195 {dimension_numbers = #tpu.dot_dimension_numbers<[2], [2], [1], [1], [0, 0, 0, 1, 1, 1], [0], [0]>} : vector<2x8x4xbf16>, vector<2x8x4xbf16>, vector<2x8x8xf32> -> vector<2x8x8xf32>
    "tpu.trace_stop"() : () -> ()
    %440 = arith.addf %439, %10 : vector<2x8x8xf32>
    %cst_196 = arith.constant dense<0xFF800000> : vector<2x8xf32>
    %441 = vector.multi_reduction <maximumf>, %440, %cst_196 [2] : vector<2x8x8xf32> to vector<2x8xf32>
    %442 = vector.shape_cast %441 : vector<2x8xf32> to vector<2x8x1xf32>
    %443 = vector.broadcast %442 : vector<2x8x1xf32> to vector<2x8x8xf32>
    %444 = arith.subf %440, %443 : vector<2x8x8xf32>
    %445 = math.exp %444 : vector<2x8x8xf32>
    %cst_197 = arith.constant dense<0.000000e+00> : vector<2x8xf32>
    %446 = vector.multi_reduction <add>, %445, %cst_197 [2] : vector<2x8x8xf32> to vector<2x8xf32>
    %447 = vector.shape_cast %446 : vector<2x8xf32> to vector<2x8x1xf32>
    %448 = tpu.reciprocal %447 {approx = true} : vector<2x8x1xf32> -> vector<2x8x1xf32>
    %449 = vector.broadcast %448 : vector<2x8x1xf32> to vector<2x8x8xf32>
    %450 = arith.mulf %445, %449 : vector<2x8x8xf32>
    %451 = arith.truncf %450 : vector<2x8x8xf32> to vector<2x8x8xbf16>
    %452 = vector.extract_strided_slice %303 {offsets = [0, 0, 28], sizes = [2, 8, 4], strides = [1, 1, 1]} : vector<2x8x32xbf16> to vector<2x8x4xbf16>
    "tpu.trace_start"() <{level = 10 : i32, message = "bqk,bkd->bqd"}> : () -> ()
    %cst_198 = arith.constant dense<0.000000e+00> : vector<2x8x4xf32>
    %453 = tpu.matmul %451, %452, %cst_198 {dimension_numbers = #tpu.dot_dimension_numbers<[2], [1], [1], [2], [0, 0, 0, 1, 1, 2], [0], [0]>} : vector<2x8x8xbf16>, vector<2x8x4xbf16>, vector<2x8x4xf32> -> vector<2x8x4xf32>
    "tpu.trace_stop"() : () -> ()
    %454 = arith.truncf %453 : vector<2x8x4xf32> to vector<2x8x4xbf16>
    %c0_199 = arith.constant 0 : index
    %c0_200 = arith.constant 0 : index
    %c28_201 = arith.constant 28 : index
    %455 = vector.load %arg21[%c0_199, %c0_200, %c28_201] : memref<2x8x32xbf16, #tpu.memory_space<vmem>>, vector<2x8x4xbf16>
    tpu.vector_store %arg21[%c0_199, %c0_200, %c28_201], %454 {strides = array<i32>} : memref<2x8x32xbf16, #tpu.memory_space<vmem>>, vector<2x8x4xbf16>,
    %c0_202 = arith.constant 0 : index
    %c0_203 = arith.constant 0 : index
    %c0_204 = arith.constant 0 : index
    %456 = vector.load %arg21[%c0_202, %c0_203, %c0_204] : memref<2x8x32xbf16, #tpu.memory_space<vmem>>, vector<2x8x32xbf16>
    %457 = vector.shape_cast %456 : vector<2x8x32xbf16> to vector<16x32xbf16>
    %c1_205 = arith.constant 1 : index
    %c0_206 = arith.constant 0 : index
    %c0_207 = arith.constant 0 : index
    %458 = vector.load %arg10[%c1_205, %c0_206, %c0_207] : memref<2x32x32xbf16, #tpu.memory_space<vmem>>, vector<1x32x32xbf16>
    %459 = vector.shape_cast %458 : vector<1x32x32xbf16> to vector<32x32xbf16>
    %cst_208 = arith.constant dense<0.000000e+00> : vector<16x32xf32>
    %460 = tpu.matmul %457, %459, %cst_208 {dimension_numbers = #tpu.dot_dimension_numbers<[1], [0], [0], [1], [0, 0, 1, 1], [], []>} : vector<16x32xbf16>, vector<32x32xbf16>, vector<16x32xf32> -> vector<16x32xf32>
    %c1_209 = arith.constant 1 : index
    %c0_210 = arith.constant 0 : index
    %c0_211 = arith.constant 0 : index
    %461 = vector.load %arg11[%c1_209, %c0_210, %c0_211] : memref<2x1x32xf32, #tpu.memory_space<vmem>>, vector<1x1x32xf32>
    %462 = vector.shape_cast %461 : vector<1x1x32xf32> to vector<1x32xf32>
    %463 = vector.broadcast %462 : vector<1x32xf32> to vector<16x32xf32>
    %464 = arith.addf %460, %463 : vector<16x32xf32>
    %465 = arith.addf %271, %464 : vector<16x32xf32>
    %c1_212 = arith.constant 1 : index
    %c0_213 = arith.constant 0 : index
    %c0_214 = arith.constant 0 : index
    %466 = vector.load %arg16[%c1_212, %c0_213, %c0_214] : memref<2x1x32xf32, #tpu.memory_space<vmem>>, vector<1x1x32xf32>
    %467 = vector.shape_cast %466 : vector<1x1x32xf32> to vector<1x32xf32>
    %c1_215 = arith.constant 1 : index
    %c0_216 = arith.constant 0 : index
    %c0_217 = arith.constant 0 : index
    %468 = vector.load %arg17[%c1_215, %c0_216, %c0_217] : memref<2x1x32xf32, #tpu.memory_space<vmem>>, vector<1x1x32xf32>
    %469 = vector.shape_cast %468 : vector<1x1x32xf32> to vector<1x32xf32>
    %cst_218 = arith.constant dense<0.000000e+00> : vector<16xf32>
    %470 = vector.multi_reduction <add>, %465, %cst_218 [1] : vector<16x32xf32> to vector<16xf32>
    %471 = vector.shape_cast %470 : vector<16xf32> to vector<16x1xf32>
    %cst_219 = arith.constant 3.200000e+01 : f32
    %472 = vector.broadcast %cst_219 : f32 to vector<16x1xf32>
    %473 = arith.divf %471, %472 : vector<16x1xf32>
    %474 = vector.broadcast %473 : vector<16x1xf32> to vector<16x32xf32>
    %475 = arith.subf %465, %474 : vector<16x32xf32>
    %476 = arith.mulf %475, %475 : vector<16x32xf32>
    %cst_220 = arith.constant dense<0.000000e+00> : vector<16xf32>
    %477 = vector.multi_reduction <add>, %476, %cst_220 [1] : vector<16x32xf32> to vector<16xf32>
    %478 = vector.shape_cast %477 : vector<16xf32> to vector<16x1xf32>
    %cst_221 = arith.constant 3.200000e+01 : f32
    %479 = vector.broadcast %cst_221 : f32 to vector<16x1xf32>
    %480 = arith.divf %478, %479 : vector<16x1xf32>
    %cst_222 = arith.constant 9.99999974E-6 : f32
    %481 = vector.broadcast %cst_222 : f32 to vector<16x1xf32>
    %482 = arith.addf %480, %481 : vector<16x1xf32>
    %483 = math.rsqrt %482 : vector<16x1xf32>
    %484 = vector.broadcast %483 : vector<16x1xf32> to vector<16x32xf32>
    %485 = arith.mulf %475, %484 : vector<16x32xf32>
    %486 = vector.broadcast %467 : vector<1x32xf32> to vector<16x32xf32>
    %487 = arith.mulf %485, %486 : vector<16x32xf32>
    %488 = vector.broadcast %469 : vector<1x32xf32> to vector<16x32xf32>
    %489 = arith.addf %487, %488 : vector<16x32xf32>
    %c1_223 = arith.constant 1 : index
    %c0_224 = arith.constant 0 : index
    %c0_225 = arith.constant 0 : index
    %490 = vector.load %arg12[%c1_223, %c0_224, %c0_225] : memref<2x32x2048xbf16, #tpu.memory_space<vmem>>, vector<1x32x2048xbf16>
    %491 = vector.shape_cast %490 : vector<1x32x2048xbf16> to vector<32x2048xbf16>
    %492 = arith.truncf %489 : vector<16x32xf32> to vector<16x32xbf16>
    %cst_226 = arith.constant dense<0.000000e+00> : vector<16x2048xf32>
    %493 = tpu.matmul %492, %491, %cst_226 {dimension_numbers = #tpu.dot_dimension_numbers<[1], [0], [0], [1], [0, 0, 1, 1], [], []>} : vector<16x32xbf16>, vector<32x2048xbf16>, vector<16x2048xf32> -> vector<16x2048xf32>
    %c1_227 = arith.constant 1 : index
    %c0_228 = arith.constant 0 : index
    %c0_229 = arith.constant 0 : index
    %494 = vector.load %arg13[%c1_227, %c0_228, %c0_229] : memref<2x1x2048xf32, #tpu.memory_space<vmem>>, vector<1x1x2048xf32>
    %495 = vector.shape_cast %494 : vector<1x1x2048xf32> to vector<1x2048xf32>
    %496 = vector.broadcast %495 : vector<1x2048xf32> to vector<16x2048xf32>
    %497 = arith.addf %493, %496 : vector<16x2048xf32>
    %cst_230 = arith.constant 0.000000e+00 : f32
    %498 = vector.broadcast %cst_230 : f32 to vector<16x2048xf32>
    %499 = arith.maximumf %497, %498 : vector<16x2048xf32>
    %c1_231 = arith.constant 1 : index
    %c0_232 = arith.constant 0 : index
    %c0_233 = arith.constant 0 : index
    %500 = vector.load %arg14[%c1_231, %c0_232, %c0_233] : memref<2x2048x32xbf16, #tpu.memory_space<vmem>>, vector<1x2048x32xbf16>
    %501 = vector.shape_cast %500 : vector<1x2048x32xbf16> to vector<2048x32xbf16>
    %502 = arith.truncf %499 : vector<16x2048xf32> to vector<16x2048xbf16>
    %cst_234 = arith.constant dense<0.000000e+00> : vector<16x32xf32>
    %503 = tpu.matmul %502, %501, %cst_234 {dimension_numbers = #tpu.dot_dimension_numbers<[1], [0], [0], [1], [0, 0, 1, 1], [], []>} : vector<16x2048xbf16>, vector<2048x32xbf16>, vector<16x32xf32> -> vector<16x32xf32>
    %c1_235 = arith.constant 1 : index
    %c0_236 = arith.constant 0 : index
    %c0_237 = arith.constant 0 : index
    %504 = vector.load %arg15[%c1_235, %c0_236, %c0_237] : memref<2x1x32xf32, #tpu.memory_space<vmem>>, vector<1x1x32xf32>
    %505 = vector.shape_cast %504 : vector<1x1x32xf32> to vector<1x32xf32>
    %506 = vector.broadcast %505 : vector<1x32xf32> to vector<16x32xf32>
    %507 = arith.addf %503, %506 : vector<16x32xf32>
    %508 = arith.addf %489, %507 : vector<16x32xf32>
    %c1_238 = arith.constant 1 : index
    %c0_239 = arith.constant 0 : index
    %c0_240 = arith.constant 0 : index
    %509 = vector.load %arg18[%c1_238, %c0_239, %c0_240] : memref<2x1x32xf32, #tpu.memory_space<vmem>>, vector<1x1x32xf32>
    %510 = vector.shape_cast %509 : vector<1x1x32xf32> to vector<1x32xf32>
    %c1_241 = arith.constant 1 : index
    %c0_242 = arith.constant 0 : index
    %c0_243 = arith.constant 0 : index
    %511 = vector.load %arg19[%c1_241, %c0_242, %c0_243] : memref<2x1x32xf32, #tpu.memory_space<vmem>>, vector<1x1x32xf32>
    %512 = vector.shape_cast %511 : vector<1x1x32xf32> to vector<1x32xf32>
    %cst_244 = arith.constant dense<0.000000e+00> : vector<16xf32>
    %513 = vector.multi_reduction <add>, %508, %cst_244 [1] : vector<16x32xf32> to vector<16xf32>
    %514 = vector.shape_cast %513 : vector<16xf32> to vector<16x1xf32>
    %cst_245 = arith.constant 3.200000e+01 : f32
    %515 = vector.broadcast %cst_245 : f32 to vector<16x1xf32>
    %516 = arith.divf %514, %515 : vector<16x1xf32>
    %517 = vector.broadcast %516 : vector<16x1xf32> to vector<16x32xf32>
    %518 = arith.subf %508, %517 : vector<16x32xf32>
    %519 = arith.mulf %518, %518 : vector<16x32xf32>
    %cst_246 = arith.constant dense<0.000000e+00> : vector<16xf32>
    %520 = vector.multi_reduction <add>, %519, %cst_246 [1] : vector<16x32xf32> to vector<16xf32>
    %521 = vector.shape_cast %520 : vector<16xf32> to vector<16x1xf32>
    %cst_247 = arith.constant 3.200000e+01 : f32
    %522 = vector.broadcast %cst_247 : f32 to vector<16x1xf32>
    %523 = arith.divf %521, %522 : vector<16x1xf32>
    %cst_248 = arith.constant 9.99999974E-6 : f32
    %524 = vector.broadcast %cst_248 : f32 to vector<16x1xf32>
    %525 = arith.addf %523, %524 : vector<16x1xf32>
    %526 = math.rsqrt %525 : vector<16x1xf32>
    %527 = vector.broadcast %526 : vector<16x1xf32> to vector<16x32xf32>
    %528 = arith.mulf %518, %527 : vector<16x32xf32>
    %529 = vector.broadcast %510 : vector<1x32xf32> to vector<16x32xf32>
    %530 = arith.mulf %528, %529 : vector<16x32xf32>
    %531 = vector.broadcast %512 : vector<1x32xf32> to vector<16x32xf32>
    %532 = arith.addf %530, %531 : vector<16x32xf32>
    %533 = vector.shape_cast %532 : vector<16x32xf32> to vector<2x8x32xf32>
    %c0_249 = arith.constant 0 : index
    %c0_250 = arith.constant 0 : index
    %c0_251 = arith.constant 0 : index
    %534 = vector.load %arg20[%c0_249, %c0_250, %c0_251] : memref<2x8x32xf32, #tpu.memory_space<vmem>>, vector<2x8x32xf32>
    tpu.vector_store %arg20[%c0_249, %c0_250, %c0_251], %533 {strides = array<i32>} : memref<2x8x32xf32, #tpu.memory_space<vmem>>, vector<2x8x32xf32>,
    return
  }
  func.func @transform_0(%arg0: i32) -> (i32, i32, i32) {
    %c0_i32 = arith.constant 0 : i32
    %c0_i32_0 = arith.constant 0 : i32
    %c0_i32_1 = arith.constant 0 : i32
    return %arg0, %c0_i32, %c0_i32_0 : i32, i32, i32
  }
  func.func @transform_1(%arg0: i32) -> (i32, i32) {
    %c0_i32 = arith.constant 0 : i32
    %c0_i32_0 = arith.constant 0 : i32
    %c0_i32_1 = arith.constant 0 : i32
    return %c0_i32, %c0_i32_0 : i32, i32
  }
  func.func @transform_2(%arg0: i32) -> (i32, i32, i32) {
    %c0_i32 = arith.constant 0 : i32
    %c0_i32_0 = arith.constant 0 : i32
    %c0_i32_1 = arith.constant 0 : i32
    return %arg0, %c0_i32, %c0_i32_0 : i32, i32, i32
  }
  func.func @transform_3(%arg0: i32) -> (i32, i32, i32) {
    %c0_i32 = arith.constant 0 : i32
    %c0_i32_0 = arith.constant 0 : i32
    %c0_i32_1 = arith.constant 0 : i32
    %c0_i32_2 = arith.constant 0 : i32
    return %c0_i32, %c0_i32_0, %c0_i32_1 : i32, i32, i32
  }
  func.func @transform_4(%arg0: i32) -> (i32, i32, i32) {
    %c0_i32 = arith.constant 0 : i32
    %c0_i32_0 = arith.constant 0 : i32
    %c0_i32_1 = arith.constant 0 : i32
    %c0_i32_2 = arith.constant 0 : i32
    return %c0_i32, %c0_i32_0, %c0_i32_1 : i32, i32, i32
  }
  func.func @transform_5(%arg0: i32) -> (i32, i32, i32) {
    %c0_i32 = arith.constant 0 : i32
    %c0_i32_0 = arith.constant 0 : i32
    %c0_i32_1 = arith.constant 0 : i32
    %c0_i32_2 = arith.constant 0 : i32
    return %c0_i32, %c0_i32_0, %c0_i32_1 : i32, i32, i32
  }
  func.func @transform_6(%arg0: i32) -> (i32, i32, i32) {
    %c0_i32 = arith.constant 0 : i32
    %c0_i32_0 = arith.constant 0 : i32
    %c0_i32_1 = arith.constant 0 : i32
    %c0_i32_2 = arith.constant 0 : i32
    return %c0_i32, %c0_i32_0, %c0_i32_1 : i32, i32, i32
  }
  func.func @transform_7(%arg0: i32) -> (i32, i32, i32) {
    %c0_i32 = arith.constant 0 : i32
    %c0_i32_0 = arith.constant 0 : i32
    %c0_i32_1 = arith.constant 0 : i32
    %c0_i32_2 = arith.constant 0 : i32
    return %c0_i32, %c0_i32_0, %c0_i32_1 : i32, i32, i32
  }
  func.func @transform_8(%arg0: i32) -> (i32, i32, i32) {
    %c0_i32 = arith.constant 0 : i32
    %c0_i32_0 = arith.constant 0 : i32
    %c0_i32_1 = arith.constant 0 : i32
    %c0_i32_2 = arith.constant 0 : i32
    return %c0_i32, %c0_i32_0, %c0_i32_1 : i32, i32, i32
  }
  func.func @transform_9(%arg0: i32) -> (i32, i32, i32) {
    %c0_i32 = arith.constant 0 : i32
    %c0_i32_0 = arith.constant 0 : i32
    %c0_i32_1 = arith.constant 0 : i32
    %c0_i32_2 = arith.constant 0 : i32
    return %c0_i32, %c0_i32_0, %c0_i32_1 : i32, i32, i32
  }
  func.func @transform_10(%arg0: i32) -> (i32, i32, i32) {
    %c0_i32 = arith.constant 0 : i32
    %c0_i32_0 = arith.constant 0 : i32
    %c0_i32_1 = arith.constant 0 : i32
    %c0_i32_2 = arith.constant 0 : i32
    return %c0_i32, %c0_i32_0, %c0_i32_1 : i32, i32, i32
  }
  func.func @transform_11(%arg0: i32) -> (i32, i32, i32) {
    %c0_i32 = arith.constant 0 : i32
    %c0_i32_0 = arith.constant 0 : i32
    %c0_i32_1 = arith.constant 0 : i32
    %c0_i32_2 = arith.constant 0 : i32
    return %c0_i32, %c0_i32_0, %c0_i32_1 : i32, i32, i32
  }
  func.func @transform_12(%arg0: i32) -> (i32, i32, i32) {
    %c0_i32 = arith.constant 0 : i32
    %c0_i32_0 = arith.constant 0 : i32
    %c0_i32_1 = arith.constant 0 : i32
    %c0_i32_2 = arith.constant 0 : i32
    return %c0_i32, %c0_i32_0, %c0_i32_1 : i32, i32, i32
  }
  func.func @transform_13(%arg0: i32) -> (i32, i32, i32) {
    %c0_i32 = arith.constant 0 : i32
    %c0_i32_0 = arith.constant 0 : i32
    %c0_i32_1 = arith.constant 0 : i32
    %c0_i32_2 = arith.constant 0 : i32
    return %c0_i32, %c0_i32_0, %c0_i32_1 : i32, i32, i32
  }
  func.func @transform_14(%arg0: i32) -> (i32, i32, i32) {
    %c0_i32 = arith.constant 0 : i32
    %c0_i32_0 = arith.constant 0 : i32
    %c0_i32_1 = arith.constant 0 : i32
    %c0_i32_2 = arith.constant 0 : i32
    return %c0_i32, %c0_i32_0, %c0_i32_1 : i32, i32, i32
  }
  func.func @transform_15(%arg0: i32) -> (i32, i32, i32) {
    %c0_i32 = arith.constant 0 : i32
    %c0_i32_0 = arith.constant 0 : i32
    %c0_i32_1 = arith.constant 0 : i32
    %c0_i32_2 = arith.constant 0 : i32
    return %c0_i32, %c0_i32_0, %c0_i32_1 : i32, i32, i32
  }
  func.func @transform_16(%arg0: i32) -> (i32, i32, i32) {
    %c0_i32 = arith.constant 0 : i32
    %c0_i32_0 = arith.constant 0 : i32
    %c0_i32_1 = arith.constant 0 : i32
    %c0_i32_2 = arith.constant 0 : i32
    return %c0_i32, %c0_i32_0, %c0_i32_1 : i32, i32, i32
  }
  func.func @transform_17(%arg0: i32) -> (i32, i32, i32) {
    %c0_i32 = arith.constant 0 : i32
    %c0_i32_0 = arith.constant 0 : i32
    %c0_i32_1 = arith.constant 0 : i32
    %c0_i32_2 = arith.constant 0 : i32
    return %c0_i32, %c0_i32_0, %c0_i32_1 : i32, i32, i32
  }
  func.func @transform_18(%arg0: i32) -> (i32, i32, i32) {
    %c0_i32 = arith.constant 0 : i32
    %c0_i32_0 = arith.constant 0 : i32
    %c0_i32_1 = arith.constant 0 : i32
    %c0_i32_2 = arith.constant 0 : i32
    return %c0_i32, %c0_i32_0, %c0_i32_1 : i32, i32, i32
  }
  func.func @transform_19(%arg0: i32) -> (i32, i32, i32) {
    %c0_i32 = arith.constant 0 : i32
    %c0_i32_0 = arith.constant 0 : i32
    %c0_i32_1 = arith.constant 0 : i32
    return %arg0, %c0_i32, %c0_i32_0 : i32, i32, i32
  }
}

</mosaic_0001>

<bundles_post_ra>
// kernel: tpu_custom_call.1
= control target key start
LH: loop header
LB: loop body
LE: loop exit
PB: predicated region body
PF: predicated region fallthrough
CT: control target
= control target key end

     0   :  { %s10803_s0 = inlined_call_operand.vmem [shape: f32[2,8,32], index: 0, kind: input, shape index: {}]   ;;  %s10804_s1 = inlined_call_operand.vmem [shape: f32[8,32], index: 1, kind: input, shape index: {}]   ;;  %s10805_s2 = inlined_call_operand.vmem [shape: f32[2,1,8], index: 2, kind: input, shape index: {}]   ;;  %s10806_s3 = inlined_call_operand.vmem [shape: bf16[2,32,32], index: 3, kind: input, shape index: {}]   ;;  %s10807_s4 = inlined_call_operand.vmem [shape: bf16[2,32,32], index: 4, kind: input, shape index: {}]   ;;  %s10808_s5 = inlined_call_operand.vmem [shape: bf16[2,32,32], index: 5, kind: input, shape index: {}]   ;;  %s10809_s6 = inlined_call_operand.vmem [shape: f32[2,1,32], index: 6, kind: input, shape index: {}]   ;;  %s10810_s7 = inlined_call_operand.vmem [shape: f32[2,1,32], index: 7, kind: input, shape index: {}]   ;;  %s10811_s8 = inlined_call_operand.vmem [shape: f32[2,1,32], index: 8, kind: input, shape index: {}]   ;;  %s10812_s9 = inlined_call_operand.vmem [shape: bf16[2,32,32], index: 9, kind: input, shape index: {}]   ;;  %s10813_s10 = inlined_call_operand.vmem [shape: f32[2,1,32], index: 10, kind: input, shape index: {}]   ;;  %s10814_s11 = inlined_call_operand.vmem [shape: bf16[2,32,2048], index: 11, kind: input, shape index: {}]   ;;  %s10815_s12 = inlined_call_operand.vmem [shape: f32[2,1,2048], index: 12, kind: input, shape index: {}]   ;;  %s10816_s13 = inlined_call_operand.vmem [shape: bf16[2,2048,32], index: 13, kind: input, shape index: {}]   ;;  %s10817_s14 = inlined_call_operand.vmem [shape: f32[2,1,32], index: 14, kind: input, shape index: {}]   ;;  %s10818_s15 = inlined_call_operand.vmem [shape: f32[2,1,32], index: 15, kind: input, shape index: {}]   ;;  %s10819_s16 = inlined_call_operand.vmem [shape: f32[2,1,32], index: 16, kind: input, shape index: {}]   ;;  %s10820_s17 = inlined_call_operand.vmem [shape: f32[2,1,32], index: 17, kind: input, shape index: {}]   ;;  %s10821_s18 = inlined_call_operand.vmem [shape: f32[2,1,32], index: 18, kind: input, shape index: {}]   ;;  %s10822_s19 = inlined_call_operand.hbm [shape: f32[2,8,32], index: 19, kind: output, shape index: {}]  }
   0x1   :  { %10852 = sst [smem:[#allocation6_spill]] %s10803_s0 }
   0x2   :  { %10853 = sst [smem:[#allocation7_spill]] %s10804_s1 }
   0x3   :  { %10854 = sst [smem:[#allocation8_spill]] %s10805_s2 }
   0x4   :  { %10855 = sst [smem:[#allocation9_spill]] %s10806_s3 }
   0x5   :  { %s10856_s20 = sld [smem:[#allocation9_spill]]  ;;  %v7948_v1 = vld [vmem:[%s10807_s4 + $0x8] sm:$0xff]  ;;  %v7947_v5 = vld [vmem:[%s10807_s4] sm:$0xff]  ;;  %vm100_vm0 = vcmask 261120  }
   0x6   :  { %s10857_s25 = sld [smem:[#allocation6_spill]]  ;;  %148 = vmatpush.bf16.msra.mxu1 %v7948_v1  ;;  %v7950_v7 = vld [vmem:[%s10808_s5 + $0x8] sm:$0xff]  ;;  %v7949_v10 = vld [vmem:[%s10808_s5] sm:$0xff] }
   0x7   :  { %s10858_s30 = sld [smem:[#allocation7_spill]]  ;;  %184 = vmatpush.bf16.msra.mxu2 %v7950_v7 }
   0xa   :  { %149 = vmatpush.bf16.msra.mxu1 %v7947_v5 }
   0xb   :  { %v7946_v0 = vld [vmem:[%s10856_s20 + $0x8] sm:$0xff]  ;;  %v7945_v2 = vld [vmem:[%s10856_s20] sm:$0xff]  ;;  %185 = vmatpush.bf16.msra.mxu2 %v7949_v10 }
   0xc   :  { %v64_v3 = vld [vmem:[%s10857_s25] sm:$0xff]  ;;  %v65_v4 = vld [vmem:[%s10857_s25 + $0x8] sm:$0xff]  ;;  %110 = vmatpush.bf16.msra.mxu0 %v7946_v0 }
   0xd   :  { %v66_v6 = vld [vmem:[%s10858_s30] sm:$0xff] }
   0xe   :  { %v8631_v8 = vadd.f32 %v66_v6, %v64_v3  ;;  %v8633_v9 = vadd.f32 %v66_v6, %v65_v4 }
  0x10   :  { %v83_v11 = vpack.c.bf16 %v8633_v9, %v8631_v8  ;;  %111 = vmatpush.bf16.msra.mxu0 %v7945_v2 }
  0x12   :  { %6191 = vmatmul.msk.bf16.vlgmr.msra.gmra.mxu1 %vm100_vm0, %v83_v11 }
  0x13   :  { %6182 = vmatmul.msk.bf16.vlgmr.msra.gmra.mxu0 %vm100_vm0, %v83_v11 }
  0x14   :  { %24 = vsyncpa [#allocation4], 0  ;;  %6200 = vmatmul.msk.bf16.vlgmr.msra.gmra.mxu2 %vm100_vm0, %v83_v11  ;;  %v8300_v12 = vld [vmem:[%s10809_s6] ss:$0 sm:$0xff]  ;;  %vm194_vm1 = vcmask 31744   ;;  %s8490_s26 = smov 120  }
  0x15   :  { %v8301_v13 = vld [vmem:[%s10810_s7] ss:$0 sm:$0xff]  ;;  %s8491_s27 = smov 124   ;;  %s10850_s28 = smov 116   ;;  %vm261_vm2 = vcmask 1043456   ;;  %vm233_vm3 = vcmask 64512  }
  0x16   :  { %s10846_s29 = smov 112   ;;  %s10844_s0 = smov 108   ;;  %v8302_v39 = vld [vmem:[%s10811_s8] ss:$0 sm:$0xff]  ;;  %vm299_vm4 = vcmask 27648   ;;  %vm442_vm5 = vcmask 60448  }
  0x17   :  { %s10842_s30 = smov 104   ;;  %s10840_s22 = smov 100   ;;  %vm567_vm6 = vcmask 93248   ;;  %vm692_vm7 = vcmask 126048   ;;  %vm817_vm8 = vcmask 158848   ;;  %vm942_vm9 = vcmask 191648  }
  0x18   :  { %s10859_s24 = sld [smem:[#allocation8_spill]]  ;;  %s10838_s21 = smov 4   ;;  %vm10849_vm10 = vcmask 224448   ;;  %vm10848_vm11 = vcmask 257248  }
  0x19   :  { %s10836_s1 = smov 8   ;;  %s10834_s2 = smov 12  }
  0x1a   :  { %s10832_s23 = smov 16   ;;  %s10828_s25 = smov 24  }
  0x1b   :  { %s10826_s3 = smov 28  }
  0x1e   :  { %v69_v63 = vld [vmem:[%s10859_s24] sm:$0x1]  ;;  %v70_v0 = vld [vmem:[%s10859_s24 + $0x1] sm:$0x1]  ;;  %s10830_s24 = smov 20  }
  0x1f   :  { %v71_v1 = vmul.f32 -1e+30, %v69_v63  ;;  %v72_v3 = vmul.f32 -1e+30, %v70_v0 }
  0x21   :  { %v8715_v5 = vperm.slane %v71_v1, 0  ;;  %v8717_v6 = vperm.slane %v72_v3, 0 }
  0x8f   :  { %v151_v15 = vpop.f32.mrf.mxu1 }
  0x90   :  { %v113_v14 = vpop.f32.mrf.mxu0  ;;  %v152_v17 = vadd.f32 %v8301_v13, %v151_v15 }
  0x91   :  { %v114_v16 = vadd.f32 %v8300_v12, %v113_v14 }
  0x92   :  { %v156_v19 = vpack.c.bf16 %v152_v17, %v152_v17 }
  0x93   :  { %v118_v18 = vmul.f32 0.5, %v114_v16 }
  0x94   :  { %v308_v21 = vunpack.c.l.b16 %v156_v19  ;;  %v199_v22 = vsel %vm194_vm1, %v156_v19, 0 }
  0x95   :  { %v120_v20 = vpack.c.bf16 %v118_v18, %v118_v18  ;;  %208 = vmatpush.bf16.xpose.msra.mxu3 %v199_v22 }
  0x96   :  { %v309_v24 = vpack.c.b16 %v308_v21, %v308_v21 }
  0x97   :  { %v303_v23 = vunpack.c.l.b16 %v120_v20  ;;  %v153_v26 = vpop.f32.mrf.mxu1  ;;  %v187_v38 = vpop.f32.mrf.mxu2 }
  0x98   :  { %v115_v25 = vpop.f32.mrf.mxu0  ;;  %v154_v29 = vadd.f32 %v8301_v13, %v153_v26  ;;  %447 = vrot.lane.b32.xlu2 %v309_v24, %s8490_s26  ;;  %310 = vrot.lane.b32.xlu0 %v309_v24, %s8491_s27  ;;  %v188_v41 = vadd.f32 %v8302_v39, %v187_v38 }
  0x99   :  { %v304_v27 = vpack.c.b16 %v303_v23, %v303_v23  ;;  %v116_v28 = vadd.f32 %v8300_v12, %v115_v25 }
  0x9a   :  { %v157_v31 = vpack.c.bf16 %v154_v29, %v154_v29  ;;  %v192_v43 = vpack.c.bf16 %v188_v41, %v188_v41 }
  0x9b   :  { %v119_v30 = vmul.f32 0.5, %v116_v28  ;;  %305 = vrot.lane.b32.xlu1 %v304_v27, %s8491_s27 }
  0x9c   :  { %v337_v33 = vunpack.c.l.b16 %v157_v31  ;;  %6201 = vmatmul.msk.bf16.vlgmr.msra.gmra.mxu3 %vm194_vm1, %v120_v20  ;;  %v218_v34 = vsel %vm194_vm1, %v157_v31, 0  ;;  %v385_v45 = vunpack.c.l.b16 %v192_v43  ;;  %v263_v50 = vsel %vm261_vm2, %v192_v43, 0 }
  0x9d   :  { %v121_v32 = vpack.c.bf16 %v119_v30, %v119_v30  ;;  %227 = vmatpush.bf16.xpose.msrb.mxu0 %v218_v34  ;;  %272 = vmatpush.bf16.msrb.mxu1 %v263_v50 }
  0x9e   :  { %v338_v36 = vpack.c.b16 %v337_v33, %v337_v33  ;;  %v8683_v47 = vpack.c.b16 %v385_v45, %v385_v45 }
  0x9f   :  { %v332_v35 = vunpack.c.l.b16 %v121_v32  ;;  %v189_v40 = vpop.f32.mrf.mxu2 }
  0xa0   :  { %470 = vrot.lane.b32.xlu2 %v338_v36, %s8490_s26  ;;  %339 = vrot.lane.b32.xlu0 %v338_v36, %s8491_s27  ;;  %v190_v42 = vadd.f32 %v8302_v39, %v189_v40 }
  0xa1   :  { %v333_v37 = vpack.c.b16 %v332_v35, %v332_v35 }
  0xa2   :  { %v193_v44 = vpack.c.bf16 %v190_v42, %v190_v42 }
  0xa3   :  { %334 = vrot.lane.b32.xlu1 %v333_v37, %s8491_s27 }
  0xa4   :  { %6202 = vmatmul.msk.bf16.vlgmr.msrb.gmra.mxu0 %vm194_vm1, %v121_v32  ;;  %v409_v46 = vunpack.c.l.b16 %v193_v44  ;;  %v282_v51 = vsel %vm261_vm2, %v193_v44, 0 }
  0xa5   :  { %291 = vmatpush.bf16.msrb.mxu2 %v282_v51 }
  0xa6   :  { %v8685_v48 = vpack.c.b16 %v409_v46, %v409_v46 }
  0xa8   :  { %572 = vrot.lane.b32.xlu2 %v309_v24, %s10850_s28  ;;  %445 = vrot.lane.b32.xlu0 %v304_v27, %s8490_s26 }
  0xab   :  { %468 = vrot.lane.b32.xlu1 %v333_v37, %s8490_s26 }
  0xb0   :  { %593 = vrot.lane.b32.xlu2 %v333_v37, %s10850_s28  ;;  %595 = vrot.lane.b32.xlu0 %v338_v36, %s10850_s28 }
  0xb3   :  { %570 = vrot.lane.b32.xlu1 %v304_v27, %s10850_s28 }
  0xb8   :  { %695 = vrot.lane.b32.xlu2 %v304_v27, %s10846_s29  ;;  %697 = vrot.lane.b32.xlu0 %v309_v24, %s10846_s29 }
  0xbb   :  { %720 = vrot.lane.b32.xlu1 %v338_v36, %s10846_s29 }
  0xc0   :  { %845 = vrot.lane.b32.xlu2 %v338_v36, %s10844_s0  ;;  %718 = vrot.lane.b32.xlu0 %v333_v37, %s10846_s29 }
  0xc3   :  { %822 = vrot.lane.b32.xlu1 %v309_v24, %s10844_s0 }
  0xc8   :  { %947 = vrot.lane.b32.xlu2 %v309_v24, %s10842_s30  ;;  %820 = vrot.lane.b32.xlu0 %v304_v27, %s10844_s0 }
  0xcb   :  { %843 = vrot.lane.b32.xlu1 %v333_v37, %s10844_s0 }
  0xd0   :  { %1070 = vrot.lane.b32.xlu2 %v304_v27, %s10840_s22  ;;  %970 = vrot.lane.b32.xlu0 %v338_v36, %s10842_s30 }
  0xd3   :  { %945 = vrot.lane.b32.xlu1 %v304_v27, %s10842_s30 }
  0xd8   :  { %968 = vrot.lane.b32.xlu2 %v333_v37, %s10842_s30  ;;  %1072 = vrot.lane.b32.xlu0 %v309_v24, %s10840_s22 }
  0xdb   :  { %1095 = vrot.lane.b32.xlu1 %v338_v36, %s10840_s22 }
  0xe0   :  { %515 = vrot.lane.b32.xlu0 %v8683_v47, %s8490_s26  ;;  %411 = vrot.lane.b32.xlu2 %v8685_v48, %s8491_s27 }
  0xe3   :  { %387 = vrot.lane.b32.xlu1 %v8683_v47, %s8491_s27 }
  0xe8   :  { %1093 = vrot.lane.b32.xlu0 %v333_v37, %s10840_s22 }
  0xeb   :  { %640 = vrot.lane.b32.xlu1 %v8683_v47, %s10850_s28 }
  0xf0   :  { %536 = vrot.lane.b32.xlu0 %v8685_v48, %s8490_s26 }
  0xf2   :  { %v448_v49 = vpop.permute.xlu2 %447 }
  0xf3   :  { %786 = vrot.lane.b32.xlu1 %v8685_v48, %s10846_s29  ;;  %v453_v55 = vsel %vm194_vm1, %v448_v49, 0 }
  0xfa   :  { %v471_v52 = vpop.permute.xlu2 %470 }
  0xfb   :  { %v476_v61 = vsel %vm194_vm1, %v471_v52, 0 }
 0x102   :  { %v573_v57 = vpop.permute.xlu2 %572 }
 0x103   :  { %v578_v59 = vsel %vm194_vm1, %v573_v57, 0 }
 0x10a   :  { %v311_v53 = vpop.permute.xlu0 %310  ;;  %v594_v11 = vpop.permute.xlu2 %593 }
 0x10b   :  { %v316_v54 = vsel %vm194_vm1, %v311_v53, 0 }
 0x10c   :  { %325 = vmatpush.bf16.xpose.msrb.mxu3 %v316_v54 }
 0x10d   :  { %v306_v56 = vpop.permute.xlu1 %305 }
 0x112   :  { %v340_v58 = vpop.permute.xlu0 %339  ;;  %v696_v22 = vpop.permute.xlu2 %695 }
 0x113   :  { %v345_v60 = vsel %vm194_vm1, %v340_v58, 0  ;;  %6205 = vmatmul.msk.bf16.vlgmr.msrb.gmra.mxu3 %vm194_vm1, %v306_v56 }
 0x114   :  { %462 = vmatpush.bf16.xpose.msra.mxu3 %v453_v55  ;;  %354 = vmatpush.bf16.xpose.msra.mxu0 %v345_v60 }
 0x115   :  { %v335_v62 = vpop.permute.xlu1 %334 }
 0x11a   :  { %v446_v2 = vpop.permute.xlu0 %445  ;;  %v846_v28 = vpop.permute.xlu2 %845 }
 0x11b   :  { %6206 = vmatmul.msk.bf16.vlgmr.msra.gmra.mxu0 %vm194_vm1, %v335_v62  ;;  %v851_v30 = vsel %vm194_vm1, %v846_v28, 0 }
 0x11c   :  { %587 = vmatpush.bf16.xpose.msrb.mxu3 %v578_v59  ;;  %485 = vmatpush.bf16.xpose.msrb.mxu0 %v476_v61 }
 0x11d   :  { %v469_v4 = vpop.permute.xlu1 %468 }
 0x11f   :  { %v210_v7 = vpop.f32.mrf.mxu3 }
 0x120   :  { %v8720_v10 = vadd.f32 %v210_v7, %v8715_v5 }
 0x121   :  { %v229_v12 = vpop.f32.mrf.mxu0 }
 0x122   :  { %v8723_v13 = vadd.f32 %v229_v12, %v8717_v6  ;;  %v596_v14 = vpop.permute.xlu0 %595  ;;  %v234_v15 = vsel %vm233_vm3, %v8720_v10, -inf  ;;  %v948_v32 = vpop.permute.xlu2 %947 }
 0x123   :  { %v601_v16 = vsel %vm194_vm1, %v596_v14, 0  ;;  %6209 = vmatmul.msk.bf16.vlgmr.msra.gmra.mxu3 %vm194_vm1, %v446_v2  ;;  %235 = vmax.xlane.f32.xlu2 %v234_v15  ;;  %v953_v34 = vsel %vm194_vm1, %v948_v32, 0 }
 0x124   :  { %610 = vmatpush.bf16.xpose.msra.mxu0 %v601_v16  ;;  %v237_v18 = vsel %vm233_vm3, %v8723_v13, -inf }
 0x125   :  { %v571_v17 = vpop.permute.xlu1 %570  ;;  %238 = vmax.xlane.f32.xlu1 %v237_v18 }
 0x127   :  { %v212_v19 = vpop.f32.mrf.mxu3 }
 0x129   :  { %v231_v20 = vpop.f32.mrf.mxu0 }
 0x12a   :  { %v698_v21 = vpop.permute.xlu0 %697  ;;  %v1071_v36 = vpop.permute.xlu2 %1070 }
 0x12b   :  { %v703_v23 = vsel %vm194_vm1, %v698_v21, 0  ;;  %6210 = vmatmul.msk.bf16.vlgmr.msrb.gmra.mxu0 %vm194_vm1, %v469_v4 }
 0x12c   :  { %712 = vmatpush.bf16.xpose.msra.mxu3 %v703_v23 }
 0x12d   :  { %v721_v24 = vpop.permute.xlu1 %720 }
 0x12e   :  { %v726_v25 = vsel %vm194_vm1, %v721_v24, 0 }
 0x12f   :  { %735 = vmatpush.bf16.xpose.msrb.mxu0 %v726_v25 }
 0x132   :  { %v719_v26 = vpop.permute.xlu0 %718  ;;  %v969_v40 = vpop.permute.xlu2 %968 }
 0x133   :  { %6213 = vmatmul.msk.bf16.vlgmr.msrb.gmra.mxu3 %vm194_vm1, %v571_v17 }
 0x135   :  { %v823_v27 = vpop.permute.xlu1 %822 }
 0x136   :  { %v828_v29 = vsel %vm194_vm1, %v823_v27, 0 }
 0x137   :  { %837 = vmatpush.bf16.xpose.msrb.mxu3 %v828_v29 }
 0x13a   :  { %v821_v31 = vpop.permute.xlu0 %820  ;;  %v412_v45 = vpop.permute.xlu2 %411 }
 0x13b   :  { %6214 = vmatmul.msk.bf16.vlgmr.msra.gmra.mxu0 %vm194_vm1, %v594_v11  ;;  %661 = vrot.lane.b32.xlu2 %v8685_v48, %s10850_s28  ;;  %v417_v49 = vsel %vm261_vm2, %v412_v45, 0 }
 0x13c   :  { %860 = vmatpush.bf16.xpose.msra.mxu0 %v851_v30  ;;  %426 = vmatpush.bf16.msra.mxu2 %v417_v49 }
 0x13d   :  { %v844_v33 = vpop.permute.xlu1 %843 }
 0x142   :  { %v971_v35 = vpop.permute.xlu0 %970 }
 0x143   :  { %6217 = vmatmul.msk.bf16.vlgmr.msra.gmra.mxu3 %vm194_vm1, %v696_v22  ;;  %v976_v38 = vsel %vm194_vm1, %v971_v35, 0 }
 0x144   :  { %962 = vmatpush.bf16.xpose.msra.mxu3 %v953_v34 }
 0x145   :  { %v946_v37 = vpop.permute.xlu1 %945 }
 0x14a   :  { %v1073_v39 = vpop.permute.xlu0 %1072 }
 0x14b   :  { %6218 = vmatmul.msk.bf16.vlgmr.msrb.gmra.mxu0 %vm194_vm1, %v719_v26  ;;  %v1078_v41 = vsel %vm194_vm1, %v1073_v39, 0 }
 0x14c   :  { %985 = vmatpush.bf16.xpose.msrb.mxu0 %v976_v38 }
 0x14d   :  { %v1096_v42 = vpop.permute.xlu1 %1095 }
 0x14e   :  { %v1101_v43 = vsel %vm194_vm1, %v1096_v42, 0 }
 0x152   :  { %v8752_v50 = vpop.permute.xlu0 %515 }
 0x153   :  { %6221 = vmatmul.msk.bf16.vlgmr.msrb.gmra.mxu3 %vm194_vm1, %v821_v31 }
 0x154   :  { %1087 = vmatpush.bf16.xpose.msrb.mxu3 %v1078_v41 }
 0x155   :  { %v388_v44 = vpop.permute.xlu1 %387 }
 0x156   :  { %v393_v46 = vsel %vm261_vm2, %v388_v44, 0 }
 0x157   :  { %402 = vmatpush.bf16.msra.mxu1 %v393_v46 }
 0x15a   :  { %v1094_v51 = vpop.permute.xlu0 %1093 }
 0x15b   :  { %6222 = vmatmul.msk.bf16.vlgmr.msra.gmra.mxu0 %vm194_vm1, %v844_v33 }
 0x15c   :  { %1110 = vmatpush.bf16.xpose.msra.mxu0 %v1101_v43 }
 0x15d   :  { %v8756_v52 = vpop.permute.xlu1 %640 }
 0x163   :  { %6225 = vmatmul.msk.bf16.vlgmr.msra.gmra.mxu3 %vm194_vm1, %v946_v37 }
 0x165   :  { %v8758_v53 = vpop.permute.xlu1 %786 }
 0x16b   :  { %6226 = vmatmul.msk.bf16.vlgmr.msrb.gmra.mxu0 %vm194_vm1, %v969_v40 }
 0x173   :  { %6229 = vmatmul.msk.bf16.vlgmr.msrb.gmra.mxu3 %vm194_vm1, %v1071_v36 }
 0x17b   :  { %6230 = vmatmul.msk.bf16.vlgmr.msra.gmra.mxu0 %vm194_vm1, %v1094_v51 }
 0x196   :  { %v327_v54 = vpop.f32.mrf.mxu3  ;;  %v236_v22 = vpop.xlane.xlu2 %235 }
 0x197   :  { %v8761_v55 = vadd.f32 %v327_v54, %v8715_v5  ;;  %v240_v24 = vsub.f32 %v8720_v10, %v236_v22 }
 0x198   :  { %v356_v56 = vpop.f32.mrf.mxu0  ;;  %v239_v57 = vpop.xlane.xlu1 %238 }
 0x199   :  { %v8764_v58 = vadd.f32 %v356_v56, %v8717_v6  ;;  %v241_v59 = vsub.f32 %v8723_v13, %v239_v57  ;;  %v360_v60 = vsel %vm233_vm3, %v8761_v55, -inf  ;;  %v242_v28 = vmul.f32 1.442695, %v240_v24 }
 0x19a   :  { %361 = vmax.xlane.f32.xlu2 %v360_v60 }
 0x19b   :  { %v244_v61 = vmul.f32 1.442695, %v241_v59  ;;  %v363_v62 = vsel %vm233_vm3, %v8764_v58, -inf }
 0x19c   :  { %364 = vmax.xlane.f32.xlu0 %v363_v62 }
 0x19d   :  { %8318 = vpow2.f32 %v244_v61 }
 0x19e   :  { %v329_v63 = vpop.f32.mrf.mxu3  ;;  %8320 = vpow2.f32 %v242_v28 }
 0x1a0   :  { %v358_v0 = vpop.f32.mrf.mxu0 }
 0x1a3   :  { %v8771_v1 = vpop.eup %8318 }
 0x1a4   :  { %v249_v2 = vsel %vm233_vm3, %v8771_v1, 0.0  ;;  %v8798_v31 = vpop.eup %8320 }
 0x1a5   :  { %250 = vadd.xlane.f32.xlu1 %v249_v2  ;;  %v246_v34 = vsel %vm233_vm3, %v8798_v31, 0.0 }
 0x1a6   :  { %v464_v3 = vpop.f32.mrf.mxu3 }
 0x1a7   :  { %v8776_v4 = vadd.f32 %v464_v3, %v8715_v5 }
 0x1a8   :  { %v487_v7 = vpop.f32.mrf.mxu0 }
 0x1a9   :  { %v8779_v11 = vadd.f32 %v487_v7, %v8717_v6  ;;  %v491_v12 = vsel %vm233_vm3, %v8776_v4, -inf  ;;  %v8842_v7 = vpop.permute.xlu2 %661 }
 0x1aa   :  { %492 = vmax.xlane.f32.xlu2 %v491_v12  ;;  %v537_v12 = vpop.permute.xlu0 %536 }
 0x1ab   :  { %v494_v13 = vsel %vm233_vm3, %v8779_v11, -inf }
 0x1ad   :  { %495 = vmax.xlane.f32.xlu1 %v494_v13 }
 0x1ae   :  { %v466_v14 = vpop.f32.mrf.mxu3 }
 0x1b0   :  { %765 = vrot.lane.b32.xlu0 %v8683_v47, %s10846_s29  ;;  %v489_v15 = vpop.f32.mrf.mxu0  ;;  %s10869_s29 = smov 20  }
 0x1b6   :  { %v589_v16 = vpop.f32.mrf.mxu3 }
 0x1b7   :  { %v8788_v17 = vadd.f32 %v589_v16, %v8715_v5 }
 0x1b8   :  { %v612_v18 = vpop.f32.mrf.mxu0 }
 0x1b9   :  { %v616_v19 = vsel %vm233_vm3, %v8788_v17, -inf  ;;  %v8803_v10 = vadd.f32 %v612_v18, %v8717_v6 }
 0x1ba   :  { %617 = vmax.xlane.f32.xlu2 %v616_v19 }
 0x1bb   :  { %v619_v37 = vsel %vm233_vm3, %v8803_v10, -inf }
 0x1be   :  { %v591_v20 = vpop.f32.mrf.mxu3 }
 0x1c0   :  { %v614_v21 = vpop.f32.mrf.mxu0 }
 0x1c6   :  { %v714_v23 = vpop.f32.mrf.mxu3 }
 0x1c7   :  { %v8808_v38 = vadd.f32 %v714_v23, %v8715_v5 }
 0x1c8   :  { %v737_v25 = vpop.f32.mrf.mxu0 }
 0x1c9   :  { %v8794_v26 = vadd.f32 %v737_v25, %v8717_v6  ;;  %v741_v44 = vsel %vm233_vm3, %v8808_v38, -inf }
 0x1cb   :  { %v744_v27 = vsel %vm233_vm3, %v8794_v26, -inf }
 0x1cc   :  { %745 = vmax.xlane.f32.xlu1 %v744_v27 }
 0x1ce   :  { %v716_v29 = vpop.f32.mrf.mxu3 }
 0x1d0   :  { %v739_v30 = vpop.f32.mrf.mxu0 }
 0x1d6   :  { %v839_v32 = vpop.f32.mrf.mxu3 }
 0x1d7   :  { %v8823_v46 = vadd.f32 %v839_v32, %v8715_v5 }
 0x1d8   :  { %v862_v33 = vpop.f32.mrf.mxu0 }
 0x1d9   :  { %v866_v54 = vsel %vm233_vm3, %v8823_v46, -inf  ;;  %v8828_v56 = vadd.f32 %v862_v33, %v8717_v6 }
 0x1da   :  { %247 = vadd.xlane.f32.xlu0 %v246_v34  ;;  %v542_v34 = vsel %vm261_vm2, %v537_v12, 0 }
 0x1db   :  { %v869_v63 = vsel %vm233_vm3, %v8828_v56, -inf }
 0x1de   :  { %v841_v35 = vpop.f32.mrf.mxu3 }
 0x1e0   :  { %v864_v36 = vpop.f32.mrf.mxu0 }
 0x1e2   :  { %620 = vmax.xlane.f32.xlu0 %v619_v37 }
 0x1e6   :  { %v964_v39 = vpop.f32.mrf.mxu3 }
 0x1e7   :  { %v8811_v40 = vadd.f32 %v964_v39, %v8715_v5 }
 0x1e8   :  { %v987_v41 = vpop.f32.mrf.mxu0 }
 0x1e9   :  { %v8814_v42 = vadd.f32 %v987_v41, %v8717_v6  ;;  %v991_v43 = vsel %vm233_vm3, %v8811_v40, -inf }
 0x1ea   :  { %992 = vmax.xlane.f32.xlu2 %v991_v43  ;;  %742 = vmax.xlane.f32.xlu0 %v741_v44 }
 0x1eb   :  { %v994_v45 = vsel %vm233_vm3, %v8814_v42, -inf }
 0x1ec   :  { %995 = vmax.xlane.f32.xlu1 %v994_v45 }
 0x1ee   :  { %v966_v49 = vpop.f32.mrf.mxu3 }
 0x1f0   :  { %v989_v51 = vpop.f32.mrf.mxu0 }
 0x1f2   :  { %867 = vmax.xlane.f32.xlu0 %v866_v54 }
 0x1f6   :  { %v1089_v57 = vpop.f32.mrf.mxu3 }
 0x1f7   :  { %v8831_v59 = vadd.f32 %v1089_v57, %v8715_v5 }
 0x1f8   :  { %v1112_v60 = vpop.f32.mrf.mxu0 }
 0x1f9   :  { %v8834_v61 = vadd.f32 %v1112_v60, %v8717_v6  ;;  %v1116_v62 = vsel %vm233_vm3, %v8831_v59, -inf }
 0x1fa   :  { %1117 = vmax.xlane.f32.xlu2 %v1116_v62  ;;  %870 = vmax.xlane.f32.xlu0 %v869_v63  ;;  %v521_v63 = vsel %vm261_vm2, %v8752_v50, 0 }
 0x1fb   :  { %v1119_v0 = vsel %vm233_vm3, %v8834_v61, -inf }
 0x1fc   :  { %1120 = vmax.xlane.f32.xlu1 %v1119_v0 }
 0x1fe   :  { %v1091_v2 = vpop.f32.mrf.mxu3 }
 0x200   :  { %v1114_v3 = vpop.f32.mrf.mxu0 }
 0x20d   :  { %v362_v13 = vpop.xlane.xlu2 %361 }
 0x20e   :  { %v366_v14 = vsub.f32 %v8761_v55, %v362_v13 }
 0x20f   :  { %v365_v15 = vpop.xlane.xlu0 %364 }
 0x210   :  { %v368_v16 = vmul.f32 1.442695, %v366_v14  ;;  %v367_v18 = vsub.f32 %v8764_v58, %v365_v15 }
 0x212   :  { %8322 = vpow2.f32 %v368_v16  ;;  %v370_v19 = vmul.f32 1.442695, %v367_v18 }
 0x214   :  { %8324 = vpow2.f32 %v370_v19 }
 0x218   :  { %v8846_v20 = vpop.eup %8322  ;;  %v251_v21 = vpop.xlane.xlu1 %250 }
 0x219   :  { %8326 = vrcp.f32 %v251_v21  ;;  %v372_v22 = vsel %vm233_vm3, %v8846_v20, 0.0 }
 0x21a   :  { %v8850_v23 = vpop.eup %8324  ;;  %373 = vadd.xlane.f32.xlu1 %v372_v22 }
 0x21b   :  { %v375_v55 = vsel %vm233_vm3, %v8850_v23, 0.0 }
 0x21c   :  { %376 = vadd.xlane.f32.xlu2 %v375_v55 }
 0x21d   :  { %v493_v24 = vpop.xlane.xlu2 %492 }
 0x21e   :  { %v497_v58 = vsub.f32 %v8776_v4, %v493_v24 }
 0x21f   :  { %v8327_v25 = vpop.eup %8326 }
 0x220   :  { %v255_v27 = vmul.f32 %v8327_v25, %v8771_v1  ;;  %v499_v28 = vmul.f32 1.442695, %v497_v58  ;;  %v496_v29 = vpop.xlane.xlu1 %495 }
 0x221   :  { %v498_v30 = vsub.f32 %v8779_v11, %v496_v29 }
 0x222   :  { %8328 = vpow2.f32 %v499_v28  ;;  %v257_v32 = vpack.c.bf16 %v255_v27, %v255_v27  ;;  %v8871_v36 = vpop.permute.xlu0 %765 }
 0x223   :  { %v501_v33 = vmul.f32 1.442695, %v498_v30 }
 0x224   :  { %6204 = vmatmul.msk.bf16.vlgmr.msrb.gmra.mxu2 %vm233_vm3, %v257_v32 }
 0x225   :  { %8330 = vpow2.f32 %v501_v33  ;;  %551 = vmatpush.bf16.msrb.mxu2 %v542_v34 }
 0x228   :  { %v8859_v35 = vpop.eup %8328 }
 0x229   :  { %v503_v4 = vsel %vm233_vm3, %v8859_v35, 0.0 }
 0x22a   :  { %504 = vadd.xlane.f32.xlu2 %v503_v4 }
 0x22b   :  { %v8863_v1 = vpop.eup %8330 }
 0x22c   :  { %v506_v11 = vsel %vm233_vm3, %v8863_v1, 0.0 }
 0x22d   :  { %507 = vadd.xlane.f32.xlu0 %v506_v11  ;;  %v618_v37 = vpop.xlane.xlu2 %617 }
 0x22e   :  { %v622_v39 = vsub.f32 %v8788_v17, %v618_v37 }
 0x230   :  { %v624_v43 = vmul.f32 1.442695, %v622_v39 }
 0x233   :  { %890 = vrot.lane.b32.xlu1 %v8683_v47, %s10844_s0 }
 0x23f   :  { %v746_v54 = vpop.xlane.xlu1 %745 }
 0x240   :  { %v748_v3 = vsub.f32 %v8794_v26, %v746_v54 }
 0x242   :  { %911 = vrot.lane.b32.xlu2 %v8685_v48, %s10844_s0  ;;  %v751_v15 = vmul.f32 1.442695, %v748_v3  ;;  %s10868_s0 = smov 16  }
 0x24d   :  { %v248_v41 = vpop.xlane.xlu0 %247 }
 0x24e   :  { %8332 = vrcp.f32 %v248_v41 }
 0x24f   :  { %8334 = vpow2.f32 %v624_v43 }
 0x254   :  { %v8333_v44 = vpop.eup %8332 }
 0x255   :  { %v621_v45 = vpop.xlane.xlu0 %620  ;;  %v254_v49 = vmul.f32 %v8333_v44, %v8798_v31  ;;  %v8876_v62 = vpop.eup %8334 }
 0x256   :  { %v623_v51 = vsub.f32 %v8803_v10, %v621_v45  ;;  %v628_v17 = vsel %vm233_vm3, %v8876_v62, 0.0 }
 0x257   :  { %v256_v57 = vpack.c.bf16 %v254_v49, %v254_v49  ;;  %v646_v49 = vsel %vm261_vm2, %v8756_v52, 0 }
 0x258   :  { %v626_v60 = vmul.f32 1.442695, %v623_v51 }
 0x259   :  { %6203 = vmatmul.msk.bf16.vlgmr.msrb.gmra.mxu1 %vm233_vm3, %v256_v57 }
 0x25a   :  { %8336 = vpow2.f32 %v626_v60  ;;  %530 = vmatpush.bf16.msrb.mxu1 %v521_v63 }
 0x25d   :  { %v743_v0 = vpop.xlane.xlu0 %742  ;;  %629 = vadd.xlane.f32.xlu1 %v628_v17  ;;  %v993_v22 = vpop.xlane.xlu2 %992 }
 0x25e   :  { %v747_v31 = vsub.f32 %v8808_v38, %v743_v0  ;;  %v997_v25 = vsub.f32 %v8811_v40, %v993_v22 }
 0x25f   :  { %v996_v10 = vpop.xlane.xlu1 %995 }
 0x260   :  { %v8884_v2 = vpop.eup %8336  ;;  %v749_v12 = vmul.f32 1.442695, %v747_v31  ;;  %v998_v13 = vsub.f32 %v8814_v42, %v996_v10  ;;  %v999_v28 = vmul.f32 1.442695, %v997_v25 }
 0x261   :  { %v631_v50 = vsel %vm233_vm3, %v8884_v2, 0.0 }
 0x262   :  { %8338 = vpow2.f32 %v749_v12  ;;  %v1001_v14 = vmul.f32 1.442695, %v998_v13  ;;  %632 = vadd.xlane.f32.xlu0 %v631_v50 }
 0x264   :  { %8340 = vpow2.f32 %v1001_v14 }
 0x265   :  { %v868_v16 = vpop.xlane.xlu0 %867  ;;  %8342 = vpow2.f32 %v751_v15 }
 0x266   :  { %v872_v38 = vsub.f32 %v8823_v46, %v868_v16 }
 0x268   :  { %v8890_v18 = vpop.eup %8338  ;;  %v874_v21 = vmul.f32 1.442695, %v872_v38 }
 0x269   :  { %v753_v26 = vsel %vm233_vm3, %v8890_v18, 0.0 }
 0x26a   :  { %v8895_v19 = vpop.eup %8340  ;;  %754 = vadd.xlane.f32.xlu0 %v753_v26  ;;  %8344 = vpow2.f32 %v874_v21 }
 0x26b   :  { %v1006_v42 = vsel %vm233_vm3, %v8895_v19, 0.0  ;;  %v8899_v24 = vpop.eup %8342 }
 0x26c   :  { %1007 = vadd.xlane.f32.xlu2 %v1006_v42  ;;  %v756_v27 = vsel %vm233_vm3, %v8899_v24, 0.0 }
 0x26d   :  { %v871_v55 = vpop.xlane.xlu0 %870  ;;  %v1118_v4 = vpop.xlane.xlu2 %1117 }
 0x26e   :  { %v873_v58 = vsub.f32 %v8828_v56, %v871_v55 }
 0x26f   :  { %v1121_v34 = vpop.xlane.xlu1 %1120 }
 0x270   :  { %v876_v46 = vmul.f32 1.442695, %v873_v58  ;;  %v8905_v29 = vpop.eup %8344  ;;  %v1123_v31 = vsub.f32 %v8834_v61, %v1121_v34 }
 0x271   :  { %v878_v32 = vsel %vm233_vm3, %v8905_v29, 0.0 }
 0x272   :  { %8346 = vpow2.f32 %v876_v46  ;;  %757 = vadd.xlane.f32.xlu0 %v756_v27  ;;  %v1126_v10 = vmul.f32 1.442695, %v1123_v31 }
 0x273   :  { %8348 = vpow2.f32 %v999_v28 }
 0x278   :  { %v8907_v30 = vpop.eup %8346 }
 0x279   :  { %v881_v56 = vsel %vm233_vm3, %v8907_v30, 0.0  ;;  %v8913_v40 = vpop.eup %8348 }
 0x27a   :  { %879 = vadd.xlane.f32.xlu0 %v878_v32  ;;  %882 = vadd.xlane.f32.xlu1 %v881_v56  ;;  %v1003_v33 = vsel %vm233_vm3, %v8913_v40, 0.0 }
 0x282   :  { %1004 = vadd.xlane.f32.xlu0 %v1003_v33 }
 0x284   :  { %1161 = vrot.lane.b32.xlu2 %v8685_v48, %s10840_s22 }
 0x28c   :  { %1140 = vrot.lane.b32.xlu2 %v8683_v47, %s10840_s22 }
 0x28d   :  { %v374_v11 = vpop.xlane.xlu1 %373 }
 0x28e   :  { %8350 = vrcp.f32 %v374_v11 }
 0x28f   :  { %v377_v37 = vpop.xlane.xlu2 %376 }
 0x290   :  { %8352 = vrcp.f32 %v377_v37 }
 0x293   :  { %1015 = vrot.lane.b32.xlu1 %v8683_v47, %s10842_s30  ;;  %v667_v47 = vsel %vm261_vm2, %v8842_v7, 0  ;;  %v771_v7 = vsel %vm261_vm2, %v8871_v36, 0 }
 0x294   :  { %v8351_v39 = vpop.eup %8350 }
 0x295   :  { %v380_v41 = vmul.f32 %v8351_v39, %v8846_v20 }
 0x296   :  { %v8353_v43 = vpop.eup %8352  ;;  %1036 = vrot.lane.b32.xlu0 %v8685_v48, %s10842_s30 }
 0x297   :  { %v382_v44 = vpack.c.bf16 %v380_v41, %v380_v41  ;;  %v381_v45 = vmul.f32 %v8353_v43, %v8850_v23 }
 0x299   :  { %v383_v51 = vpack.c.bf16 %v381_v45, %v381_v45  ;;  %6207 = vmatmul.msk.bf16.vlgmr.msra.gmra.mxu1 %vm233_vm3, %v382_v44 }
 0x29a   :  { %655 = vmatpush.bf16.msra.mxu1 %v646_v49 }
 0x29b   :  { %6208 = vmatmul.msk.bf16.vlgmr.msra.gmra.mxu2 %vm233_vm3, %v383_v51 }
 0x29c   :  { %676 = vmatpush.bf16.msra.mxu2 %v667_v47 }
 0x29d   :  { %v505_v20 = vpop.xlane.xlu2 %504 }
 0x29e   :  { %8354 = vrcp.f32 %v505_v20 }
 0x2a0   :  { %v508_v54 = vpop.xlane.xlu0 %507 }
 0x2a1   :  { %8356 = vrcp.f32 %v508_v54 }
 0x2a2   :  { %8358 = vpow2.f32 %v1126_v10 }
 0x2a4   :  { %v8355_v48 = vpop.eup %8354 }
 0x2a5   :  { %v511_v23 = vmul.f32 %v8355_v48, %v8859_v35  ;;  %v792_v35 = vsel %vm261_vm2, %v8758_v53, 0  ;;  %v891_v50 = vpop.permute.xlu1 %890  ;;  %v912_v25 = vpop.permute.xlu2 %911 }
 0x2a6   :  { %v896_v22 = vsel %vm261_vm2, %v891_v50, 0  ;;  %v917_v28 = vsel %vm261_vm2, %v912_v25, 0 }
 0x2a7   :  { %v8357_v57 = vpop.eup %8356  ;;  %v513_v60 = vpack.c.bf16 %v511_v23, %v511_v23  ;;  %v293_v52 = vpop.f32.mrf.mxu2 }
 0x2a8   :  { %v512_v63 = vmul.f32 %v8357_v57, %v8863_v1  ;;  %v298_v17 = vpack.c.bf16 %v293_v52, %v293_v52  ;;  %v1122_v1 = vsub.f32 %v8831_v59, %v1118_v4  ;;  %v8944_v36 = vpop.eup %8358 }
 0x2a9   :  { %6211 = vmatmul.msk.bf16.vlgmr.msrb.gmra.mxu1 %vm233_vm3, %v513_v60  ;;  %v1131_v61 = vsel %vm233_vm3, %v8944_v36, 0.0 }
 0x2aa   :  { %v514_v0 = vpack.c.bf16 %v512_v63, %v512_v63  ;;  %301 = vst.msk [vmem:[#allocation2 + $0x4] sm:$0xf] %vm299_vm4, %v298_v17  ;;  %780 = vmatpush.bf16.msrb.mxu1 %v771_v7  ;;  %v1124_v12 = vmul.f32 1.442695, %v1122_v1 }
 0x2ac   :  { %6212 = vmatmul.msk.bf16.vlgmr.msrb.gmra.mxu2 %vm233_vm3, %v514_v0  ;;  %8360 = vpow2.f32 %v1124_v12 }
 0x2ad   :  { %801 = vmatpush.bf16.msrb.mxu2 %v792_v35 }
 0x2af   :  { %v295_v3 = vpop.f32.mrf.mxu2 }
 0x2b2   :  { %v8946_v13 = vpop.eup %8360 }
 0x2b3   :  { %v1128_v53 = vsel %vm233_vm3, %v8946_v13, 0.0 }
 0x2bd   :  { %1132 = vadd.xlane.f32.xlu1 %v1131_v61 }
 0x2c0   :  { %1129 = vadd.xlane.f32.xlu0 %v1128_v53 }
 0x2d0   :  { %v630_v14 = vpop.xlane.xlu1 %629 }
 0x2d1   :  { %8362 = vrcp.f32 %v630_v14 }
 0x2d5   :  { %v633_v59 = vpop.xlane.xlu0 %632 }
 0x2d6   :  { %8364 = vrcp.f32 %v633_v59  ;;  %v274_v15 = vpop.f32.mrf.mxu1 }
 0x2d7   :  { %v8363_v16 = vpop.eup %8362  ;;  %v297_v38 = vpack.c.bf16 %v274_v15, %v274_v15 }
 0x2d8   :  { %v636_v26 = vmul.f32 %v8363_v16, %v8876_v62 }
 0x2d9   :  { %300 = vst.msk [vmem:[#allocation2] sm:$0xf] %vm299_vm4, %v297_v38 }
 0x2da   :  { %v638_v42 = vpack.c.bf16 %v636_v26, %v636_v26 }
 0x2dc   :  { %v8365_v21 = vpop.eup %8364  ;;  %6215 = vmatmul.msk.bf16.vlgmr.msra.gmra.mxu1 %vm233_vm3, %v638_v42 }
 0x2dd   :  { %v637_v55 = vmul.f32 %v8365_v21, %v8884_v2  ;;  %905 = vmatpush.bf16.msra.mxu1 %v896_v22  ;;  %v755_v58 = vpop.xlane.xlu0 %754 }
 0x2de   :  { %8366 = vrcp.f32 %v755_v58  ;;  %v276_v46 = vpop.f32.mrf.mxu1 }
 0x2df   :  { %v639_v27 = vpack.c.bf16 %v637_v55, %v637_v55  ;;  %v1008_v39 = vpop.xlane.xlu2 %1007 }
 0x2e1   :  { %6216 = vmatmul.msk.bf16.vlgmr.msra.gmra.mxu2 %vm233_vm3, %v639_v27 }
 0x2e2   :  { %926 = vmatpush.bf16.msra.mxu2 %v917_v28 }
 0x2e4   :  { %v8367_v62 = vpop.eup %8366 }
 0x2e5   :  { %v758_v32 = vpop.xlane.xlu0 %757  ;;  %v761_v56 = vmul.f32 %v8367_v62, %v8890_v18 }
 0x2e6   :  { %8368 = vrcp.f32 %v758_v32 }
 0x2e7   :  { %v763_v33 = vpack.c.bf16 %v761_v56, %v761_v56  ;;  %v1162_v18 = vpop.permute.xlu2 %1161 }
 0x2e8   :  { %v1167_v52 = vsel %vm261_vm2, %v1162_v18, 0 }
 0x2ec   :  { %v8369_v34 = vpop.eup %8368  ;;  %6219 = vmatmul.msk.bf16.vlgmr.msrb.gmra.mxu1 %vm233_vm3, %v763_v33 }
 0x2ed   :  { %v762_v2 = vmul.f32 %v8369_v34, %v8899_v24  ;;  %v880_v4 = vpop.xlane.xlu0 %879  ;;  %v883_v37 = vpop.xlane.xlu1 %882 }
 0x2ee   :  { %8370 = vrcp.f32 %v880_v4 }
 0x2ef   :  { %v764_v11 = vpack.c.bf16 %v762_v2, %v762_v2  ;;  %8372 = vrcp.f32 %v883_v37  ;;  %v1141_v20 = vpop.permute.xlu2 %1140 }
 0x2f0   :  { %v1146_v23 = vsel %vm261_vm2, %v1141_v20, 0 }
 0x2f1   :  { %6220 = vmatmul.msk.bf16.vlgmr.msrb.gmra.mxu2 %vm233_vm3, %v764_v11 }
 0x2f4   :  { %v8371_v41 = vpop.eup %8370 }
 0x2f5   :  { %v886_v43 = vmul.f32 %v8371_v41, %v8905_v29  ;;  %v8373_v44 = vpop.eup %8372  ;;  %v1005_v49 = vpop.xlane.xlu0 %1004 }
 0x2f6   :  { %v887_v51 = vmul.f32 %v8373_v44, %v8907_v30  ;;  %8374 = vrcp.f32 %v1005_v49 }
 0x2f7   :  { %v888_v45 = vpack.c.bf16 %v886_v43, %v886_v43  ;;  %8376 = vrcp.f32 %v1008_v39 }
 0x2f8   :  { %v889_v24 = vpack.c.bf16 %v887_v51, %v887_v51 }
 0x2fc   :  { %6223 = vmatmul.msk.bf16.vlgmr.msra.gmra.mxu1 %vm233_vm3, %v888_v45  ;;  %v8375_v47 = vpop.eup %8374 }
 0x2fd   :  { %v1011_v48 = vmul.f32 %v8375_v47, %v8913_v40  ;;  %v8377_v57 = vpop.eup %8376 }
 0x2fe   :  { %v1012_v17 = vmul.f32 %v8377_v57, %v8895_v19 }
 0x2ff   :  { %v1013_v63 = vpack.c.bf16 %v1011_v48, %v1011_v48 }
 0x300   :  { %v1014_v40 = vpack.c.bf16 %v1012_v17, %v1012_v17 }
 0x301   :  { %6224 = vmatmul.msk.bf16.vlgmr.msra.gmra.mxu2 %vm233_vm3, %v889_v24 }
 0x305   :  { %v1016_v54 = vpop.permute.xlu1 %1015 }
 0x306   :  { %v1021_v29 = vsel %vm261_vm2, %v1016_v54, 0 }
 0x307   :  { %1030 = vmatpush.bf16.msrb.mxu1 %v1021_v29 }
 0x308   :  { %v1037_v60 = vpop.permute.xlu0 %1036 }
 0x309   :  { %v1042_v30 = vsel %vm261_vm2, %v1037_v60, 0 }
 0x30a   :  { %1051 = vmatpush.bf16.msrb.mxu2 %v1042_v30 }
 0x30b   :  { %1155 = vmatpush.bf16.msra.mxu1 %v1146_v23 }
 0x30c   :  { %6227 = vmatmul.msk.bf16.vlgmr.msrb.gmra.mxu1 %vm233_vm3, %v1013_v63 }
 0x30e   :  { %1176 = vmatpush.bf16.msra.mxu2 %v1167_v52 }
 0x311   :  { %6228 = vmatmul.msk.bf16.vlgmr.msrb.gmra.mxu2 %vm233_vm3, %v1014_v40 }
 0x316   :  { %v404_v7 = vpop.f32.mrf.mxu1 }
 0x317   :  { %v432_v0 = vpack.c.bf16 %v404_v7, %v404_v7 }
 0x319   :  { %436 = vrot.lane.b32.xlu1 %v432_v0, %s10838_s21 }
 0x31e   :  { %v406_v31 = vpop.f32.mrf.mxu1  ;;  %v428_v35 = vpop.f32.mrf.mxu2 }
 0x31f   :  { %v433_v1 = vpack.c.bf16 %v428_v35, %v428_v35  ;;  %v7953_v31 = vld [vmem:[%s10812_s9 + $0x8] sm:$0xff]  ;;  %v7952_v35 = vld [vmem:[%s10812_s9] sm:$0xff] }
 0x320   :  { %1231 = vmatpush.bf16.msra.mxu3 %v7953_v31 }
 0x321   :  { %438 = vrot.lane.b32.xlu2 %v433_v1, %s10838_s21 }
 0x324   :  { %1232 = vmatpush.bf16.msra.mxu3 %v7952_v35 }
 0x326   :  { %v430_v10 = vpop.f32.mrf.mxu2  ;;  %v532_v3 = vpop.f32.mrf.mxu1 }
 0x327   :  { %v557_v12 = vpack.c.bf16 %v532_v3, %v532_v3 }
 0x329   :  { %561 = vrot.lane.b32.xlu0 %v557_v12, %s10836_s1  ;;  %v8303_v12 = vld [vmem:[%s10813_s10] ss:$0 sm:$0xff] }
 0x32e   :  { %v534_v19 = vpop.f32.mrf.mxu1 }
 0x32f   :  { %v553_v61 = vpop.f32.mrf.mxu2 }
 0x330   :  { %v558_v53 = vpack.c.bf16 %v553_v61, %v553_v61  ;;  %v1133_v50 = vpop.xlane.xlu1 %1132 }
 0x331   :  { %8378 = vrcp.f32 %v1133_v50 }
 0x332   :  { %563 = vrot.lane.b32.xlu2 %v558_v53, %s10836_s1 }
 0x333   :  { %v1130_v14 = vpop.xlane.xlu0 %1129 }
 0x334   :  { %8380 = vrcp.f32 %v1130_v14 }
 0x337   :  { %v8379_v59 = vpop.eup %8378  ;;  %v555_v15 = vpop.f32.mrf.mxu2 }
 0x338   :  { %v1137_v16 = vmul.f32 %v8379_v59, %v8944_v36 }
 0x33a   :  { %v8381_v38 = vpop.eup %8380  ;;  %v1139_v26 = vpack.c.bf16 %v1137_v16, %v1137_v16 }
 0x33b   :  { %v1136_v42 = vmul.f32 %v8381_v38, %v8946_v13  ;;  %v8504_v38 = vmov 32.0  }
 0x33c   :  { %6232 = vmatmul.msk.bf16.vlgmr.msra.gmra.mxu2 %vm233_vm3, %v1139_v26  ;;  %8382 = vrcp.f32 %v8504_v38  ;;  %v7956_v38 = vld [vmem:[%s10814_s11 + $0x14] sm:$0xf] }
 0x33d   :  { %v1138_v21 = vpack.c.bf16 %v1136_v42, %v1136_v42 }
 0x33f   :  { %6231 = vmatmul.msk.bf16.vlgmr.msra.gmra.mxu1 %vm233_vm3, %v1138_v21 }
 0x342   :  { %v8383_v26 = vpop.eup %8382 }
 0x343   :  { %v1250_v42 = vmul.f32 32.0, %v8383_v26  ;;  %vm1254_vm12 = vweird.f32 %v8383_v26 }
 0x345   :  { %v1251_v21 = vsub.f32 1.0, %v1250_v42 }
 0x359   :  { %v657_v22 = vpop.f32.mrf.mxu1 }
 0x35a   :  { %v682_v55 = vpack.c.bf16 %v657_v22, %v657_v22  ;;  %v1252_v22 = vmul.f32 %v8383_v26, %v1251_v21  ;;  %v6266_v21 = vld [vmem:[%s10814_s11 + $0x50] sm:$0xf0] }
 0x35c   :  { %686 = vrot.lane.b32.xlu2 %v682_v55, %s10834_s2  ;;  %v1253_v55 = vadd.f32 %v8383_v26, %v1252_v22  ;;  %v6272_v22 = vld [vmem:[%s10814_s11 + $0x18] sm:$0xf] }
 0x361   :  { %v659_v58 = vpop.f32.mrf.mxu1 }
 0x362   :  { %v9021_v58 = vsel %vm1254_vm12, %v8383_v26, %v1253_v55  ;;  %v7965_v55 = vld [vmem:[%s10814_s11 + $0x54] sm:$0xf0] }
 0x364   :  { %v678_v25 = vpop.f32.mrf.mxu2 }
 0x365   :  { %v683_v46 = vpack.c.bf16 %v678_v25, %v678_v25 }
 0x367   :  { %688 = vrot.lane.b32.xlu1 %v683_v46, %s10834_s2 }
 0x369   :  { %v782_v36 = vpop.f32.mrf.mxu1 }
 0x36a   :  { %v807_v27 = vpack.c.bf16 %v782_v36, %v782_v36 }
 0x36c   :  { %v680_v28 = vpop.f32.mrf.mxu2  ;;  %811 = vrot.lane.b32.xlu2 %v807_v27, %s10832_s23 }
 0x371   :  { %v784_v13 = vpop.f32.mrf.mxu1 }
 0x374   :  { %v803_v62 = vpop.f32.mrf.mxu2 }
 0x375   :  { %v808_v32 = vpack.c.bf16 %v803_v62, %v803_v62 }
 0x377   :  { %813 = vrot.lane.b32.xlu0 %v808_v32, %s10832_s23  ;;  %s10863_s23 = smov 104  }
 0x379   :  { %v907_v56 = vpop.f32.mrf.mxu1 }
 0x37a   :  { %v932_v33 = vpack.c.bf16 %v907_v56, %v907_v56  ;;  %v6312_v56 = vld [vmem:[%s10814_s11 + $0x80] sm:$0xf] }
 0x37b   :  { %v439_v34 = vpop.permute.xlu2 %438 }
 0x37c   :  { %444 = vst.msk [vmem:[#allocation2 + $0x4] sm:$0xf] %vm442_vm5, %v439_v34  ;;  %v805_v2 = vpop.f32.mrf.mxu2  ;;  %936 = vrot.lane.b32.xlu1 %v932_v33, %s10830_s24  ;;  %v7978_v33 = vld [vmem:[%s10814_s11 + $0xbc] sm:$0xf0]  ;;  %v7970_v34 = vld [vmem:[%s10814_s11 + $0x84] sm:$0xf] }
 0x37d   :  { %v6313_v2 = vor.u32 %v7978_v33, %v6312_v56 }
 0x37f   :  { %1542 = vmatpush.bf16.msrb.mxu0 %v6313_v2 }
 0x381   :  { %v909_v4 = vpop.f32.mrf.mxu1 }
 0x382   :  { %v6314_v4 = vld [vmem:[%s10814_s11 + $0xc0] sm:$0xf0] }
 0x384   :  { %v928_v11 = vpop.f32.mrf.mxu2 }
 0x385   :  { %v933_v37 = vpack.c.bf16 %v928_v11, %v928_v11  ;;  %v6320_v11 = vld [vmem:[%s10814_s11 + $0x88] sm:$0xf] }
 0x387   :  { %938 = vrot.lane.b32.xlu2 %v933_v37, %s10830_s24  ;;  %v7979_v37 = vld [vmem:[%s10814_s11 + $0xc4] sm:$0xf0]  ;;  %s10864_s24 = smov 100  }
 0x389   :  { %v1032_v39 = vpop.f32.mrf.mxu1 }
 0x38a   :  { %v1057_v41 = vpack.c.bf16 %v1032_v39, %v1032_v39 }
 0x38b   :  { %v437_v43 = vpop.permute.xlu1 %436 }
 0x38c   :  { %443 = vst.msk [vmem:[#allocation2] sm:$0xf] %vm442_vm5, %v437_v43  ;;  %1061 = vrot.lane.b32.xlu0 %v1057_v41, %s10828_s25  ;;  %v930_v44 = vpop.f32.mrf.mxu2  ;;  %v564_v18 = vpop.permute.xlu2 %563  ;;  %v6317_v41 = vor.u32 %v7970_v34, %v6314_v4  ;;  %v6321_v43 = vor.u32 %v7979_v37, %v6320_v11 }
 0x38d   :  { %569 = vst.msk [vmem:[#allocation2 + $0x4] sm:$0xf] %vm567_vm6, %v564_v18  ;;  %v7971_v44 = vld [vmem:[%s10814_s11 + $0x8c] sm:$0xf] }
 0x38e   :  { %v6322_v18 = vld [vmem:[%s10814_s11 + $0xc8] sm:$0xf0]  ;;  %1556 = vmatpush.bf16.msrb.mxu1 %v6317_v41  ;;  %1570 = vmatpush.bf16.msrb.mxu2 %v6321_v43 }
 0x391   :  { %v1034_v45 = vpop.f32.mrf.mxu1 }
 0x394   :  { %v1053_v49 = vpop.f32.mrf.mxu2 }
 0x395   :  { %v1058_v51 = vpack.c.bf16 %v1053_v49, %v1053_v49  ;;  %v6325_v49 = vor.u32 %v7971_v44, %v6322_v18  ;;  %v8305_v18 = vld [vmem:[%s10819_s16] ss:$0 sm:$0xff] }
 0x397   :  { %1063 = vrot.lane.b32.xlu1 %v1058_v51, %s10828_s25  ;;  %v6248_v51 = vld [vmem:[%s10814_s11] sm:$0xf]  ;;  %1584 = vmatpush.bf16.msrb.mxu3 %v6325_v49  ;;  %s10867_s25 = smov 12  }
 0x39b   :  { %v562_v24 = vpop.permute.xlu0 %561 }
 0x39c   :  { %568 = vst.msk [vmem:[#allocation2] sm:$0xf] %vm567_vm6, %v562_v24  ;;  %v1055_v47 = vpop.f32.mrf.mxu2  ;;  %v7962_v24 = vld [vmem:[%s10814_s11 + $0x3c] sm:$0xf0] }
 0x39d   :  { %v7954_v47 = vld [vmem:[%s10814_s11 + $0x4] sm:$0xf] }
 0x3b6   :  { %v687_v20 = vpop.permute.xlu2 %686 }
 0x3b7   :  { %693 = vst.msk [vmem:[#allocation2] sm:$0xf] %vm692_vm7, %v687_v20 }
 0x3bc   :  { %v1157_v54 = vpop.f32.mrf.mxu1 }
 0x3bd   :  { %v1182_v48 = vpack.c.bf16 %v1157_v54, %v1157_v54  ;;  %v6249_v54 = vor.u32 %v7962_v24, %v6248_v51  ;;  %v6344_v24 = vld [vmem:[%s10814_s11 + $0xa0] sm:$0xf] }
 0x3bf   :  { %v1178_v29 = vpop.f32.mrf.mxu2  ;;  %1186 = vrot.lane.b32.xlu2 %v1182_v48, %s10826_s3  ;;  %v6250_v48 = vld [vmem:[%s10814_s11 + $0x40] sm:$0xf0]  ;;  %1543 = vmatpush.bf16.msrb.mxu0 %v6249_v54 }
 0x3c0   :  { %v1183_v23 = vpack.c.bf16 %v1178_v29, %v1178_v29  ;;  %v6256_v29 = vld [vmem:[%s10814_s11 + $0x8] sm:$0xf] }
 0x3c2   :  { %1188 = vrot.lane.b32.xlu0 %v1183_v23, %s10826_s3  ;;  %v6253_v23 = vor.u32 %v7954_v47, %v6250_v48  ;;  %v7974_v47 = vld [vmem:[%s10814_s11 + $0xa4] sm:$0xf]  ;;  %s6162_s3 = sshll.u32 %s10822_s19, 4  ;;  %s6163_s3 = int_to_ptr.hbm [resolvable:$true] %s6162_s3 }
 0x3c4   :  { %v1159_v57 = vpop.f32.mrf.mxu1  ;;  %1557 = vmatpush.bf16.msrb.mxu1 %v6253_v23  ;;  %v7975_v23 = vld [vmem:[%s10814_s11 + $0xac] sm:$0xf] }
 0x3c5   :  { %v7963_v57 = vld [vmem:[%s10814_s11 + $0x44] sm:$0xf0] }
 0x3c6   :  { %v812_v60 = vpop.permute.xlu2 %811 }
 0x3c7   :  { %818 = vst.msk [vmem:[#allocation2] sm:$0xf] %vm817_vm8, %v812_v60  ;;  %v1180_v30 = vpop.f32.mrf.mxu2  ;;  %v7955_v60 = vld [vmem:[%s10814_s11 + $0xc] sm:$0xf] }
 0x3c8   :  { %v6258_v30 = vld [vmem:[%s10814_s11 + $0x48] sm:$0xf0] }
 0x3d9   :  { %v689_v52 = vpop.permute.xlu1 %688 }
 0x3da   :  { %694 = vst.msk [vmem:[#allocation2 + $0x4] sm:$0xf] %vm692_vm7, %v689_v52  ;;  %v6257_v52 = vor.u32 %v7963_v57, %v6256_v29  ;;  %v7983_v29 = vld [vmem:[%s10814_s11 + $0xe4] sm:$0xf0]  ;;  %v6354_v57 = vld [vmem:[%s10814_s11 + $0xe8] sm:$0xf0] }
 0x3dc   :  { %1571 = vmatpush.bf16.msrb.mxu2 %v6257_v52 }
 0x3e1   :  { %v939_v17 = vpop.permute.xlu2 %938 }
 0x3e9   :  { %v814_v63 = vpop.permute.xlu0 %813 }
 0x3ea   :  { %819 = vst.msk [vmem:[#allocation2 + $0x4] sm:$0xf] %vm817_vm8, %v814_v63  ;;  %v6261_v63 = vor.u32 %v7955_v60, %v6258_v30 }
 0x3eb   :  { %944 = vst.msk [vmem:[#allocation2 + $0x4] sm:$0xf] %vm942_vm9, %v939_v17 }
 0x3ec   :  { %1585 = vmatpush.bf16.msrb.mxu3 %v6261_v63  ;;  %v6280_v63 = vld [vmem:[%s10814_s11 + $0x20] sm:$0xf] }
 0x3ee   :  { %v937_v40 = vpop.permute.xlu1 %936 }
 0x3ef   :  { %943 = vst.msk [vmem:[#allocation2] sm:$0xf] %vm942_vm9, %v937_v40  ;;  %v6328_v40 = vld [vmem:[%s10814_s11 + $0x90] sm:$0xf] }
 0x3fe   :  { %v1062_v7 = vpop.permute.xlu0 %1061 }
 0x3ff   :  { %1068 = vst.msk [vmem:[#allocation2] sm:$0xf] %vm10849_vm10, %v1062_v7  ;;  %v7980_v7 = vld [vmem:[%s10814_s11 + $0xcc] sm:$0xf0] }
 0x400   :  { %v6329_v35 = vor.u32 %v7980_v7, %v6328_v40  ;;  %v6357_v7 = vor.u32 %v7975_v23, %v6354_v57  ;;  %v7989_v23 = vld [vmem:[%s10816_s13 + $0x18] sm:$0xff] }
 0x401   :  { %v7997_v57 = vld [vmem:[%s10816_s13 + $0x58] sm:$0xff] }
 0x402   :  { %1598 = vmatpush.bf16.msra.mxu0 %v6329_v35  ;;  %v6288_v35 = vld [vmem:[%s10814_s11 + $0x28] sm:$0xf] }
 0x409   :  { %v1064_v0 = vpop.permute.xlu1 %1063 }
 0x40a   :  { %1069 = vst.msk [vmem:[#allocation2 + $0x4] sm:$0xf] %vm10849_vm10, %v1064_v0  ;;  %v7972_v0 = vld [vmem:[%s10814_s11 + $0x94] sm:$0xf] }
 0x419   :  { %v1187_v1 = vpop.permute.xlu2 %1186 }
 0x41a   :  { %1193 = vst.msk [vmem:[#allocation2] sm:$0xf] %vm10848_vm11, %v1187_v1  ;;  %v6330_v1 = vld [vmem:[%s10814_s11 + $0xd0] sm:$0xf0] }
 0x434   :  { %v1189_v10 = vpop.permute.xlu0 %1188 }
 0x435   :  { %1194 = vst.msk [vmem:[#allocation2 + $0x4] sm:$0xf] %vm10848_vm11, %v1189_v10  ;;  %v6336_v10 = vld [vmem:[%s10814_s11 + $0x98] sm:$0xf] }
 0x43c   :  { %v7951_v3 = vld [vmem:[#allocation2] sm:$0xff] }
 0x43d   :  { %6245 = vmatmul.msk.bf16.vlgmr.msra.gmra.mxu3 %vm100_vm0, %v7951_v3  ;;  %v7981_v3 = vld [vmem:[%s10814_s11 + $0xd4] sm:$0xf0] }
 0x4c0   :  { %v1234_v19 = vpop.f32.mrf.mxu3 }
 0x4c1   :  { %v1235_v61 = vadd.f32 %v8303_v12, %v1234_v19  ;;  %v6337_v19 = vor.u32 %v7981_v3, %v6336_v10  ;;  %v7959_v10 = vld [vmem:[%s10814_s11 + $0x2c] sm:$0xf] }
 0x4c2   :  { %v6290_v3 = vld [vmem:[%s10814_s11 + $0x68] sm:$0xf0] }
 0x4c3   :  { %v1239_v53 = vadd.f32 %v1235_v61, %v8631_v8  ;;  %v7973_v61 = vld [vmem:[%s10814_s11 + $0x9c] sm:$0xf]  ;;  %1626 = vmatpush.bf16.msra.mxu2 %v6337_v19 }
 0x4c5   :  { %v1243_v50 = vsel %vm100_vm0, %v1239_v53, 0.0 }
 0x4c6   :  { %1244 = vadd.xlane.f32.xlu1 %v1243_v50  ;;  %v6264_v50 = vld [vmem:[%s10814_s11 + $0x10] sm:$0xf] }
 0x4c8   :  { %v1236_v14 = vpop.f32.mrf.mxu3 }
 0x4c9   :  { %v1237_v59 = vadd.f32 %v8303_v12, %v1236_v14  ;;  %v6333_v12 = vor.u32 %v7972_v0, %v6330_v1  ;;  %v7958_v0 = vld [vmem:[%s10814_s11 + $0x24] sm:$0xf]  ;;  %v7967_v1 = vld [vmem:[%s10814_s11 + $0x64] sm:$0xf0] }
 0x4cb   :  { %v1240_v15 = vadd.f32 %v1237_v59, %v8633_v9  ;;  %1612 = vmatpush.bf16.msra.mxu1 %v6333_v12 }
 0x4cd   :  { %v1246_v16 = vsel %vm100_vm0, %v1240_v15, 0.0 }
 0x4ce   :  { %1247 = vadd.xlane.f32.xlu2 %v1246_v16  ;;  %v7964_v16 = vld [vmem:[%s10814_s11 + $0x4c] sm:$0xf0] }
 0x4cf   :  { %v6265_v42 = vor.u32 %v7964_v16, %v6264_v50  ;;  %v6360_v50 = vld [vmem:[%s10814_s11 + $0xb0] sm:$0xf]  ;;  %v6368_v16 = vld [vmem:[%s10814_s11 + $0xb8] sm:$0xf] }
 0x4d1   :  { %1599 = vmatpush.bf16.msra.mxu0 %v6265_v42  ;;  %v6370_v42 = vld [vmem:[%s10814_s11 + $0xf8] sm:$0xf0] }
 0x539   :  { %v1245_v8 = vpop.xlane.xlu1 %1244 }
 0x53a   :  { %v1256_v25 = vmul.f32 %v9021_v58, %v1245_v8  ;;  %v6269_v8 = vor.u32 %v7956_v38, %v6266_v21  ;;  %v7985_v38 = vld [vmem:[%s10814_s11 + $0xf4] sm:$0xf0] }
 0x53c   :  { %v9024_v46 = vsub.f32 %v1239_v53, %v1256_v25  ;;  %v6338_v53 = vld [vmem:[%s10814_s11 + $0xd8] sm:$0xf0]  ;;  %v6273_v25 = vor.u32 %v7965_v55, %v6272_v22  ;;  %1613 = vmatpush.bf16.msra.mxu1 %v6269_v8  ;;  %v6296_v55 = vld [vmem:[%s10814_s11 + $0x30] sm:$0xf] }
 0x53d   :  { %v7968_v8 = vld [vmem:[%s10814_s11 + $0x6c] sm:$0xf0] }
 0x53e   :  { %v1260_v9 = vmul.f32 %v9024_v46, %v9024_v46  ;;  %1627 = vmatpush.bf16.msra.mxu2 %v6273_v25  ;;  %v6369_v25 = vor.u32 %v7985_v38, %v6368_v16  ;;  %v8048_v16 = vld [vmem:[%s10816_s13 + $0x1f0] sm:$0xff]  ;;  %v8023_v38 = vld [vmem:[%s10816_s13 + $0x128] sm:$0xff] }
 0x540   :  { %v1262_v36 = vsel %vm100_vm0, %v1260_v9, 0.0  ;;  %v7957_v9 = vld [vmem:[%s10814_s11 + $0x1c] sm:$0xf] }
 0x541   :  { %v1248_v27 = vpop.xlane.xlu2 %1247  ;;  %1263 = vadd.xlane.f32.xlu0 %v1262_v36  ;;  %v6274_v36 = vld [vmem:[%s10814_s11 + $0x58] sm:$0xf0] }
 0x542   :  { %v1257_v28 = vmul.f32 %v9021_v58, %v1248_v27 }
 0x544   :  { %v9030_v13 = vsub.f32 %v1240_v15, %v1257_v28  ;;  %v6341_v15 = vor.u32 %v7973_v61, %v6338_v53  ;;  %v6277_v28 = vor.u32 %v7957_v9, %v6274_v36  ;;  %v6289_v61 = vor.u32 %v7967_v1, %v6288_v35  ;;  %v7960_v36 = vld [vmem:[%s10814_s11 + $0x34] sm:$0xf]  ;;  %v8011_v35 = vld [vmem:[%s10816_s13 + $0xc8] sm:$0xff]  ;;  %v7986_v1 = vld [vmem:[%s10816_s13] sm:$0xff] }
 0x545   :  { %v6293_v53 = vor.u32 %v7959_v10, %v6290_v3  ;;  %v7994_v10 = vld [vmem:[%s10816_s13 + $0x40] sm:$0xff]  ;;  %v8025_v3 = vld [vmem:[%s10816_s13 + $0x138] sm:$0xff] }
 0x546   :  { %v1261_v62 = vmul.f32 %v9030_v13, %v9030_v13  ;;  %1640 = vmatpush.bf16.msra.mxu3 %v6341_v15  ;;  %v6362_v15 = vld [vmem:[%s10814_s11 + $0xf0] sm:$0xf0] }
 0x548   :  { %v1265_v32 = vsel %vm100_vm0, %v1261_v62, 0.0 }
 0x549   :  { %1266 = vadd.xlane.f32.xlu2 %v1265_v32 }
 0x54a   :  { %1641 = vmatpush.bf16.msra.mxu3 %v6277_v28  ;;  %v6304_v28 = vld [vmem:[%s10814_s11 + $0x38] sm:$0xf] }
 0x5b4   :  { %v1264_v39 = vpop.xlane.xlu0 %1263 }
 0x5b5   :  { %v1268_v45 = vmul.f32 %v1264_v39, %v9021_v58  ;;  %v8304_v39 = vld [vmem:[%s10818_s15] ss:$0 sm:$0xff] }
 0x5b7   :  { %v9069_v20 = vadd.f32 1e-05, %v1268_v45 }
 0x5b9   :  { %8384 = vrsqrt.f32 %v9069_v20  ;;  %vm1278_vm14 = vweird.f32 %v9069_v20 }
 0x5bc   :  { %v1267_v17 = vpop.xlane.xlu2 %1266 }
 0x5bd   :  { %v1269_v31 = vmul.f32 %v1267_v17, %v9021_v58  ;;  %v7966_v17 = vld [vmem:[%s10814_s11 + $0x5c] sm:$0xf0] }
 0x5be   :  { %v6281_v12 = vor.u32 %v7966_v17, %v6280_v63  ;;  %v7988_v63 = vld [vmem:[%s10816_s13 + $0x10] sm:$0xff] }
 0x5bf   :  { %v8385_v14 = vpop.eup %8384  ;;  %v1271_v59 = vadd.f32 1e-05, %v1269_v31  ;;  %v6282_v31 = vld [vmem:[%s10814_s11 + $0x60] sm:$0xf0]  ;;  %v7996_v17 = vld [vmem:[%s10816_s13 + $0x50] sm:$0xff] }
 0x5c0   :  { %v1273_v26 = vmul.f32 %v8385_v14, %v9069_v20  ;;  %vm1279_vm13 = vweird.f32 %v8385_v14  ;;  %v6346_v20 = vld [vmem:[%s10814_s11 + $0xe0] sm:$0xf0]  ;;  %v6285_v19 = vor.u32 %v7958_v0, %v6282_v31  ;;  %v7995_v0 = vld [vmem:[%s10816_s13 + $0x48] sm:$0xff] }
 0x5c1   :  { %8386 = vrsqrt.f32 %v1271_v59  ;;  %vm1280_vm15 = vmor %vm1278_vm14, %vm1279_vm13  ;;  %vm1288_vm11 = vweird.f32 %v1271_v59  ;;  %v6349_v52 = vor.u32 %v7974_v47, %v6346_v20  ;;  %v7990_v47 = vld [vmem:[%s10816_s13 + $0x20] sm:$0xff]  ;;  %v8003_v31 = vld [vmem:[%s10816_s13 + $0x88] sm:$0xff] }
 0x5c2   :  { %v1274_v27 = vmul.f32 %v8385_v14, %v1273_v26  ;;  %v7977_v26 = vld [vmem:[%s10814_s11 + $0xbc] sm:$0xf]  ;;  %v7998_v20 = vld [vmem:[%s10816_s13 + $0x60] sm:$0xff] }
 0x5c3   :  { %v6373_v9 = vor.u32 %v7977_v26, %v6370_v42  ;;  %v8031_v26 = vld [vmem:[%s10816_s13 + $0x168] sm:$0xff]  ;;  %v8022_v42 = vld [vmem:[%s10816_s13 + $0x120] sm:$0xff] }
 0x5c4   :  { %v1275_v62 = vmul.f32 0.5, %v1274_v27  ;;  %v6298_v27 = vld [vmem:[%s10814_s11 + $0x70] sm:$0xf0] }
 0x5c6   :  { %v1276_v32 = vsub.f32 1.5, %v1275_v62  ;;  %v7969_v62 = vld [vmem:[%s10814_s11 + $0x74] sm:$0xf0] }
 0x5c7   :  { %v8387_v56 = vpop.eup %8386 }
 0x5c8   :  { %v1277_v33 = vmul.f32 %v8385_v14, %v1276_v32  ;;  %v1283_v34 = vmul.f32 %v8387_v56, %v1271_v59  ;;  %vm1289_vm12 = vweird.f32 %v8387_v56  ;;  %v7976_v59 = vld [vmem:[%s10814_s11 + $0xb4] sm:$0xf]  ;;  %v7961_v32 = vld [vmem:[%s10814_s11 + $0x3c] sm:$0xf] }
 0x5c9   :  { %vm1290_vm10 = vmor %vm1288_vm11, %vm1289_vm12  ;;  %v6365_v22 = vor.u32 %v7976_v59, %v6362_v15  ;;  %v8032_v59 = vld [vmem:[%s10816_s13 + $0x170] sm:$0xff] }
 0x5ca   :  { %v1284_v2 = vmul.f32 %v8387_v56, %v1283_v34  ;;  %v1281_v4 = vsel %vm1280_vm15, %v8385_v14, %v1277_v33  ;;  %v7984_v14 = vld [vmem:[%s10814_s11 + $0xec] sm:$0xf0]  ;;  %v6297_v33 = vor.u32 %v7968_v8, %v6296_v55  ;;  %v6301_v34 = vor.u32 %v7960_v36, %v6298_v27  ;;  %v8047_v55 = vld [vmem:[%s10816_s13 + $0x1e8] sm:$0xff]  ;;  %v8021_v8 = vld [vmem:[%s10816_s13 + $0x118] sm:$0xff] }
 0x5cb   :  { %v1292_v41 = vmul.f32 %v1281_v4, %v9024_v46  ;;  %v7982_v46 = vld [vmem:[%s10814_s11 + $0xdc] sm:$0xf0]  ;;  %v6361_v21 = vor.u32 %v7984_v14, %v6360_v50  ;;  %v8049_v50 = vld [vmem:[%s10816_s13 + $0x1f8] sm:$0xff]  ;;  %v8024_v14 = vld [vmem:[%s10816_s13 + $0x130] sm:$0xff] }
 0x5cc   :  { %v1285_v11 = vmul.f32 0.5, %v1284_v2  ;;  %v6345_v30 = vor.u32 %v7982_v46, %v6344_v24  ;;  %v6305_v2 = vor.u32 %v7969_v62, %v6304_v28  ;;  %v8007_v24 = vld [vmem:[%s10816_s13 + $0xa8] sm:$0xff]  ;;  %v8040_v15 = vld [vmem:[%s10816_s13 + $0x1b0] sm:$0xff]  ;;  %v8046_v36 = vld [vmem:[%s10816_s13 + $0x1e0] sm:$0xff] }
 0x5cd   :  { %v1297_v45 = vmul.f32 %v8304_v39, %v1292_v41  ;;  %v8017_v41 = vld [vmem:[%s10816_s13 + $0xf8] sm:$0xff]  ;;  %v8015_v46 = vld [vmem:[%s10816_s13 + $0xe8] sm:$0xff]  ;;  %v8020_v27 = vld [vmem:[%s10816_s13 + $0x110] sm:$0xff] }
 0x5ce   :  { %v1286_v37 = vsub.f32 1.5, %v1285_v11  ;;  %v7993_v11 = vld [vmem:[%s10816_s13 + $0x38] sm:$0xff]  ;;  %v8028_v28 = vld [vmem:[%s10816_s13 + $0x150] sm:$0xff] }
 0x5cf   :  { %v9161_v54 = vadd.f32 %v8305_v18, %v1297_v45  ;;  %v8016_v45 = vld [vmem:[%s10816_s13 + $0xf0] sm:$0xff]  ;;  %v8037_v62 = vld [vmem:[%s10816_s13 + $0x198] sm:$0xff] }
 0x5d0   :  { %v1287_v43 = vmul.f32 %v8387_v56, %v1286_v37  ;;  %v8001_v37 = vld [vmem:[%s10816_s13 + $0x78] sm:$0xff] }
 0x5d2   :  { %v1291_v44 = vsel %vm1290_vm10, %v8387_v56, %v1287_v43  ;;  %v6306_v56 = vld [vmem:[%s10814_s11 + $0x78] sm:$0xf0]  ;;  %v7992_v43 = vld [vmem:[%s10816_s13 + $0x30] sm:$0xff] }
 0x5d3   :  { %v1293_v49 = vmul.f32 %v1291_v44, %v9030_v13  ;;  %v6352_v13 = vld [vmem:[%s10814_s11 + $0xa8] sm:$0xf]  ;;  %v6309_v4 = vor.u32 %v7961_v32, %v6306_v56  ;;  %v8000_v44 = vld [vmem:[%s10816_s13 + $0x70] sm:$0xff]  ;;  %v8045_v32 = vld [vmem:[%s10816_s13 + $0x1d8] sm:$0xff] }
 0x5d4   :  { %v6353_v40 = vor.u32 %v7983_v29, %v6352_v13  ;;  %v8006_v13 = vld [vmem:[%s10816_s13 + $0xa0] sm:$0xff]  ;;  %v8019_v56 = vld [vmem:[%s10816_s13 + $0x108] sm:$0xff] }
 0x5d5   :  { %v1298_v51 = vmul.f32 %v8304_v39, %v1293_v49  ;;  %v8009_v39 = vld [vmem:[%s10816_s13 + $0xb8] sm:$0xff]  ;;  %v7991_v49 = vld [vmem:[%s10816_s13 + $0x28] sm:$0xff]  ;;  %v8014_v29 = vld [vmem:[%s10816_s13 + $0xe0] sm:$0xff] }
 0x5d7   :  { %v9163_v48 = vadd.f32 %v8305_v18, %v1298_v51  ;;  %v8008_v18 = vld [vmem:[%s10816_s13 + $0xb0] sm:$0xff]  ;;  %v7999_v51 = vld [vmem:[%s10816_s13 + $0x68] sm:$0xff] }
 0x5d9   :  { %v9176_v60 = vpack.c.bf16 %v9163_v48, %v9161_v54 }
 0x5db   :  { %6374 = vmatmul.msk.bf16.vlgmr.msrb.gmra.mxu0 %vm100_vm0, %v9176_v60  ;;  %6375 = vmatmul.msk.bf16.vlgmr.msrb.gmra.mxu1 %vm100_vm0, %v9176_v60 }
 0x5dc   :  { %6376 = vmatmul.msk.bf16.vlgmr.msrb.gmra.mxu2 %vm100_vm0, %v9176_v60  ;;  %6377 = vmatmul.msk.bf16.vlgmr.msrb.gmra.mxu3 %vm100_vm0, %v9176_v60 }
 0x5dd   :  { %1654 = vmatpush.bf16.msrb.mxu0 %v6345_v30  ;;  %1668 = vmatpush.bf16.msrb.mxu1 %v6349_v52  ;;  %v8005_v30 = vld [vmem:[%s10816_s13 + $0x98] sm:$0xff] }
 0x5de   :  { %1682 = vmatpush.bf16.msrb.mxu2 %v6353_v40  ;;  %1696 = vmatpush.bf16.msrb.mxu3 %v6357_v7  ;;  %v8013_v52 = vld [vmem:[%s10816_s13 + $0xd8] sm:$0xff]  ;;  %v8004_v40 = vld [vmem:[%s10816_s13 + $0x90] sm:$0xff]  ;;  %v7987_v7 = vld [vmem:[%s10816_s13 + $0x8] sm:$0xff] }
 0x5e1   :  { %1655 = vmatpush.bf16.msrb.mxu0 %v6281_v12  ;;  %1669 = vmatpush.bf16.msrb.mxu1 %v6285_v19  ;;  %v8033_v12 = vld [vmem:[%s10816_s13 + $0x178] sm:$0xff]  ;;  %v8002_v19 = vld [vmem:[%s10816_s13 + $0x80] sm:$0xff] }
 0x5e2   :  { %1683 = vmatpush.bf16.msrb.mxu2 %v6289_v61  ;;  %1697 = vmatpush.bf16.msrb.mxu3 %v6293_v53  ;;  %v8010_v61 = vld [vmem:[%s10816_s13 + $0xc0] sm:$0xff]  ;;  %v8041_v53 = vld [vmem:[%s10816_s13 + $0x1b8] sm:$0xff] }
 0x5eb   :  { %6378 = vmatmul.msk.bf16.vlgmr.msra.gmra.mxu0 %vm100_vm0, %v9176_v60  ;;  %6379 = vmatmul.msk.bf16.vlgmr.msra.gmra.mxu1 %vm100_vm0, %v9176_v60 }
 0x5ec   :  { %6380 = vmatmul.msk.bf16.vlgmr.msra.gmra.mxu2 %vm100_vm0, %v9176_v60  ;;  %6381 = vmatmul.msk.bf16.vlgmr.msra.gmra.mxu3 %vm100_vm0, %v9176_v60 }
 0x5ed   :  { %1710 = vmatpush.bf16.msra.mxu0 %v6361_v21  ;;  %1724 = vmatpush.bf16.msra.mxu1 %v6365_v22  ;;  %v8030_v21 = vld [vmem:[%s10816_s13 + $0x160] sm:$0xff]  ;;  %v8039_v22 = vld [vmem:[%s10816_s13 + $0x1a8] sm:$0xff] }
 0x5ee   :  { %1738 = vmatpush.bf16.msra.mxu2 %v6369_v25  ;;  %1752 = vmatpush.bf16.msra.mxu3 %v6373_v9  ;;  %v8029_v25 = vld [vmem:[%s10816_s13 + $0x158] sm:$0xff]  ;;  %v8038_v9 = vld [vmem:[%s10816_s13 + $0x1a0] sm:$0xff] }
 0x5f1   :  { %1711 = vmatpush.bf16.msra.mxu0 %v6297_v33  ;;  %1725 = vmatpush.bf16.msra.mxu1 %v6301_v34  ;;  %v8027_v33 = vld [vmem:[%s10816_s13 + $0x148] sm:$0xff]  ;;  %v8036_v34 = vld [vmem:[%s10816_s13 + $0x190] sm:$0xff] }
 0x5f2   :  { %1739 = vmatpush.bf16.msra.mxu2 %v6305_v2  ;;  %1753 = vmatpush.bf16.msra.mxu3 %v6309_v4  ;;  %v8044_v2 = vld [vmem:[%s10816_s13 + $0x1d0] sm:$0xff]  ;;  %v8018_v4 = vld [vmem:[%s10816_s13 + $0x100] sm:$0xff] }
 0x5fb   :  { %6382 = vmatmul.msk.bf16.vlgmr.msrb.gmra.mxu0 %vm100_vm0, %v9176_v60  ;;  %6383 = vmatmul.msk.bf16.vlgmr.msrb.gmra.mxu1 %vm100_vm0, %v9176_v60 }
 0x5fc   :  { %6384 = vmatmul.msk.bf16.vlgmr.msrb.gmra.mxu2 %vm100_vm0, %v9176_v60  ;;  %6385 = vmatmul.msk.bf16.vlgmr.msrb.gmra.mxu3 %vm100_vm0, %v9176_v60 }
 0x5fd   :  { %2836 = vmatpush.bf16.msrb.mxu0 %v7993_v11  ;;  %2850 = vmatpush.bf16.msrb.mxu1 %v8001_v37  ;;  %v8026_v11 = vld [vmem:[%s10816_s13 + $0x140] sm:$0xff]  ;;  %v8035_v37 = vld [vmem:[%s10816_s13 + $0x188] sm:$0xff] }
 0x5fe   :  { %2864 = vmatpush.bf16.msrb.mxu2 %v8009_v39  ;;  %2878 = vmatpush.bf16.msrb.mxu3 %v8017_v41  ;;  %v8043_v39 = vld [vmem:[%s10816_s13 + $0x1c8] sm:$0xff]  ;;  %v8034_v41 = vld [vmem:[%s10816_s13 + $0x180] sm:$0xff] }
 0x601   :  { %2837 = vmatpush.bf16.msrb.mxu0 %v7992_v43  ;;  %2851 = vmatpush.bf16.msrb.mxu1 %v8000_v44  ;;  %v8042_v43 = vld [vmem:[%s10816_s13 + $0x1c0] sm:$0xff] }
 0x602   :  { %2865 = vmatpush.bf16.msrb.mxu2 %v8008_v18  ;;  %2879 = vmatpush.bf16.msrb.mxu3 %v8016_v45  ;;  %v9477_v44 = vld [vmem:[%s10815_s12] sm:$0xff] }
 0x605   :  { %2838 = vmatpush.bf16.msrb.mxu0 %v7991_v49  ;;  %2852 = vmatpush.bf16.msrb.mxu1 %v7999_v51  ;;  %v1341_v49 = vperm.slane %v9477_v44, 0  ;;  %v1342_v51 = vperm.slane %v9477_v44, 1 }
 0x606   :  { %2866 = vmatpush.bf16.msrb.mxu2 %v8007_v24  ;;  %2880 = vmatpush.bf16.msrb.mxu3 %v8015_v46 }
 0x609   :  { %2839 = vmatpush.bf16.msrb.mxu0 %v7990_v47  ;;  %2853 = vmatpush.bf16.msrb.mxu1 %v7998_v20 }
 0x60a   :  { %2867 = vmatpush.bf16.msrb.mxu2 %v8006_v13  ;;  %2881 = vmatpush.bf16.msrb.mxu3 %v8014_v29 }
 0x60b   :  { %6386 = vmatmul.msk.bf16.vlgmr.msra.gmra.mxu0 %vm100_vm0, %v9176_v60  ;;  %6387 = vmatmul.msk.bf16.vlgmr.msra.gmra.mxu1 %vm100_vm0, %v9176_v60 }
 0x60c   :  { %6388 = vmatmul.msk.bf16.vlgmr.msra.gmra.mxu2 %vm100_vm0, %v9176_v60  ;;  %6389 = vmatmul.msk.bf16.vlgmr.msra.gmra.mxu3 %vm100_vm0, %v9176_v60  ;;  %v8012_v60 = vld [vmem:[%s10816_s13 + $0xd0] sm:$0xff] }
 0x60d   :  { %2840 = vmatpush.bf16.msrb.mxu0 %v7989_v23  ;;  %2854 = vmatpush.bf16.msrb.mxu1 %v7997_v57 }
 0x60e   :  { %2868 = vmatpush.bf16.msrb.mxu2 %v8005_v30  ;;  %2882 = vmatpush.bf16.msrb.mxu3 %v8013_v52  ;;  %v1343_v30 = vperm.slane %v9477_v44, 2  ;;  %v1344_v52 = vperm.slane %v9477_v44, 3 }
 0x611   :  { %2841 = vmatpush.bf16.msrb.mxu0 %v7988_v63  ;;  %2855 = vmatpush.bf16.msrb.mxu1 %v7996_v17 }
 0x612   :  { %2869 = vmatpush.bf16.msrb.mxu2 %v8004_v40  ;;  %2883 = vmatpush.bf16.msrb.mxu3 %v8012_v60 }
 0x615   :  { %2842 = vmatpush.bf16.msrb.mxu0 %v7987_v7  ;;  %2856 = vmatpush.bf16.msrb.mxu1 %v7995_v0  ;;  %v8057_v7 = vld [vmem:[%s10816_s13 + $0x238] sm:$0xff] }
 0x616   :  { %2870 = vmatpush.bf16.msrb.mxu2 %v8003_v31  ;;  %2884 = vmatpush.bf16.msrb.mxu3 %v8011_v35  ;;  %v8065_v0 = vld [vmem:[%s10816_s13 + $0x278] sm:$0xff] }
 0x619   :  { %2843 = vmatpush.bf16.msrb.mxu0 %v7986_v1  ;;  %2857 = vmatpush.bf16.msrb.mxu1 %v7994_v10 }
 0x61a   :  { %2871 = vmatpush.bf16.msrb.mxu2 %v8002_v19  ;;  %2885 = vmatpush.bf16.msrb.mxu3 %v8010_v61 }
 0x61d   :  { %2892 = vmatpush.bf16.msra.mxu0 %v8025_v3  ;;  %2906 = vmatpush.bf16.msra.mxu1 %v8033_v12 }
 0x61e   :  { %2920 = vmatpush.bf16.msra.mxu2 %v8041_v53  ;;  %2934 = vmatpush.bf16.msra.mxu3 %v8049_v50 }
 0x621   :  { %2893 = vmatpush.bf16.msra.mxu0 %v8024_v14  ;;  %2907 = vmatpush.bf16.msra.mxu1 %v8032_v59  ;;  %v8056_v14 = vld [vmem:[%s10816_s13 + $0x230] sm:$0xff] }
 0x622   :  { %2921 = vmatpush.bf16.msra.mxu2 %v8040_v15  ;;  %2935 = vmatpush.bf16.msra.mxu3 %v8048_v16  ;;  %v8064_v59 = vld [vmem:[%s10816_s13 + $0x270] sm:$0xff] }
 0x625   :  { %2894 = vmatpush.bf16.msra.mxu0 %v8023_v38  ;;  %2908 = vmatpush.bf16.msra.mxu1 %v8031_v26 }
 0x626   :  { %2922 = vmatpush.bf16.msra.mxu2 %v8039_v22  ;;  %2936 = vmatpush.bf16.msra.mxu3 %v8047_v55  ;;  %v8073_v22 = vld [vmem:[%s10816_s13 + $0x2b8] sm:$0xff] }
 0x627   :  { %v8081_v55 = vld [vmem:[%s10816_s13 + $0x2f8] sm:$0xff] }
 0x629   :  { %2895 = vmatpush.bf16.msra.mxu0 %v8022_v42  ;;  %2909 = vmatpush.bf16.msra.mxu1 %v8030_v21  ;;  %v1345_v42 = vperm.slane %v9477_v44, 4  ;;  %v1346_v21 = vperm.slane %v9477_v44, 5 }
 0x62a   :  { %2923 = vmatpush.bf16.msra.mxu2 %v8038_v9  ;;  %2937 = vmatpush.bf16.msra.mxu3 %v8046_v36  ;;  %v8055_v9 = vld [vmem:[%s10816_s13 + $0x228] sm:$0xff] }
 0x62b   :  { %v8063_v36 = vld [vmem:[%s10816_s13 + $0x268] sm:$0xff] }
 0x62d   :  { %2896 = vmatpush.bf16.msra.mxu0 %v8021_v8  ;;  %2910 = vmatpush.bf16.msra.mxu1 %v8029_v25 }
 0x62e   :  { %2924 = vmatpush.bf16.msra.mxu2 %v8037_v62  ;;  %2938 = vmatpush.bf16.msra.mxu3 %v8045_v32 }
 0x631   :  { %2897 = vmatpush.bf16.msra.mxu0 %v8020_v27  ;;  %2911 = vmatpush.bf16.msra.mxu1 %v8028_v28 }
 0x632   :  { %2925 = vmatpush.bf16.msra.mxu2 %v8036_v34  ;;  %2939 = vmatpush.bf16.msra.mxu3 %v8044_v2 }
 0x635   :  { %2898 = vmatpush.bf16.msra.mxu0 %v8019_v56  ;;  %2912 = vmatpush.bf16.msra.mxu1 %v8027_v33  ;;  %v8072_v56 = vld [vmem:[%s10816_s13 + $0x2b0] sm:$0xff] }
 0x636   :  { %2926 = vmatpush.bf16.msra.mxu2 %v8035_v37  ;;  %2940 = vmatpush.bf16.msra.mxu3 %v8043_v39  ;;  %v8080_v33 = vld [vmem:[%s10816_s13 + $0x2f0] sm:$0xff] }
 0x639   :  { %2899 = vmatpush.bf16.msra.mxu0 %v8018_v4  ;;  %2913 = vmatpush.bf16.msra.mxu1 %v8026_v11  ;;  %v8054_v4 = vld [vmem:[%s10816_s13 + $0x220] sm:$0xff] }
 0x63a   :  { %2927 = vmatpush.bf16.msra.mxu2 %v8034_v41  ;;  %2941 = vmatpush.bf16.msra.mxu3 %v8042_v43  ;;  %v8062_v11 = vld [vmem:[%s10816_s13 + $0x260] sm:$0xff]  ;;  %v1347_v41 = vperm.slane %v9477_v44, 6  ;;  %v1348_v43 = vperm.slane %v9477_v44, 7  ;;  %v8053_v44 = vld [vmem:[%s10816_s13 + $0x218] sm:$0xff] }
 0x658   :  { %v1545_v18 = vpop.f32.mrf.mxu0  ;;  %v1559_v45 = vpop.f32.mrf.mxu1 }
 0x659   :  { %v1546_v24 = vadd.f32 %v1545_v18, %v1341_v49  ;;  %v1560_v46 = vadd.f32 %v1559_v45, %v1342_v51 }
 0x65b   :  { %v1760_v63 = vmax.f32 %v1546_v24, 0.0  ;;  %v1761_v17 = vmax.f32 %v1560_v46, 0.0  ;;  %v8071_v24 = vld [vmem:[%s10816_s13 + $0x2a8] sm:$0xff] }
 0x65c   :  { %v8079_v46 = vld [vmem:[%s10816_s13 + $0x2e8] sm:$0xff] }
 0x65f   :  { %v1573_v47 = vpop.f32.mrf.mxu2  ;;  %v1587_v20 = vpop.f32.mrf.mxu3 }
 0x660   :  { %v1547_v13 = vpop.f32.mrf.mxu0  ;;  %v1561_v29 = vpop.f32.mrf.mxu1  ;;  %v1574_v1 = vadd.f32 %v1573_v47, %v1343_v30  ;;  %v1588_v10 = vadd.f32 %v1587_v20, %v1344_v52 }
 0x661   :  { %v1548_v23 = vadd.f32 %v1547_v13, %v1341_v49  ;;  %v1562_v57 = vadd.f32 %v1561_v29, %v1342_v51  ;;  %v8061_v13 = vld [vmem:[%s10816_s13 + $0x258] sm:$0xff] }
 0x662   :  { %v1762_v15 = vmax.f32 %v1574_v1, 0.0  ;;  %v1763_v16 = vmax.f32 %v1588_v10, 0.0 }
 0x663   :  { %v1776_v40 = vmax.f32 %v1548_v23, 0.0  ;;  %v1777_v60 = vmax.f32 %v1562_v57, 0.0 }
 0x665   :  { %v2048_v31 = vpack.c.bf16 %v1776_v40, %v1760_v63  ;;  %v2049_v35 = vpack.c.bf16 %v1777_v60, %v1761_v17  ;;  %v8078_v63 = vld [vmem:[%s10816_s13 + $0x2e0] sm:$0xff]  ;;  %v9544_v60 = vld [vmem:[%s10815_s12 + $0x8] sm:$0xff] }
 0x667   :  { %v1575_v3 = vpop.f32.mrf.mxu2  ;;  %v1589_v12 = vpop.f32.mrf.mxu3  ;;  %2844 = vmatmul.bf16.vlgmr.msrb.gmra.mxu0 %v2048_v31  ;;  %2858 = vmatmul.bf16.vlgmr.msrb.gmra.mxu1 %v2049_v35  ;;  %v8052_v31 = vld [vmem:[%s10816_s13 + $0x210] sm:$0xff] }
 0x668   :  { %v1576_v19 = vadd.f32 %v1575_v3, %v1343_v30  ;;  %v1590_v61 = vadd.f32 %v1589_v12, %v1344_v52  ;;  %2948 = vmatpush.bf16.msrb.mxu0 %v8057_v7  ;;  %2962 = vmatpush.bf16.msrb.mxu1 %v8065_v0  ;;  %v1601_v53 = vpop.f32.mrf.mxu0  ;;  %v1615_v50 = vpop.f32.mrf.mxu1  ;;  %v8070_v52 = vld [vmem:[%s10816_s13 + $0x2a0] sm:$0xff]  ;;  %v8060_v35 = vld [vmem:[%s10816_s13 + $0x250] sm:$0xff] }
 0x669   :  { %v1602_v27 = vadd.f32 %v1601_v53, %v1345_v42  ;;  %v1616_v28 = vadd.f32 %v1615_v50, %v1346_v21  ;;  %v8069_v53 = vld [vmem:[%s10816_s13 + $0x298] sm:$0xff] }
 0x66a   :  { %v1778_v38 = vmax.f32 %v1576_v19, 0.0  ;;  %v1779_v26 = vmax.f32 %v1590_v61, 0.0  ;;  %v1349_v19 = vperm.slane %v9544_v60, 0  ;;  %v1350_v61 = vperm.slane %v9544_v60, 1  ;;  %v8077_v50 = vld [vmem:[%s10816_s13 + $0x2d8] sm:$0xff] }
 0x66b   :  { %v1764_v18 = vmax.f32 %v1602_v27, 0.0  ;;  %v1765_v45 = vmax.f32 %v1616_v28, 0.0  ;;  %v8050_v27 = vld [vmem:[%s10816_s13 + $0x200] sm:$0xff] }
 0x66c   :  { %v2050_v8 = vpack.c.bf16 %v1778_v38, %v1762_v15  ;;  %v2051_v25 = vpack.c.bf16 %v1779_v26, %v1763_v16  ;;  %2949 = vmatpush.bf16.msrb.mxu0 %v8056_v14  ;;  %2963 = vmatpush.bf16.msrb.mxu1 %v8064_v59  ;;  %v8051_v15 = vld [vmem:[%s10816_s13 + $0x208] sm:$0xff]  ;;  %v8058_v28 = vld [vmem:[%s10816_s13 + $0x240] sm:$0xff] }
 0x66d   :  { %v8059_v16 = vld [vmem:[%s10816_s13 + $0x248] sm:$0xff] }
 0x66e   :  { %2872 = vmatmul.bf16.vlgmr.msrb.gmra.mxu2 %v2050_v8  ;;  %2886 = vmatmul.bf16.vlgmr.msrb.gmra.mxu3 %v2051_v25 }
 0x66f   :  { %2976 = vmatpush.bf16.msrb.mxu2 %v8073_v22  ;;  %2990 = vmatpush.bf16.msrb.mxu3 %v8081_v55  ;;  %v1629_v62 = vpop.f32.mrf.mxu2  ;;  %v1643_v32 = vpop.f32.mrf.mxu3  ;;  %v8068_v22 = vld [vmem:[%s10816_s13 + $0x290] sm:$0xff] }
 0x670   :  { %2950 = vmatpush.bf16.msrb.mxu0 %v8055_v9  ;;  %2964 = vmatpush.bf16.msrb.mxu1 %v8063_v36  ;;  %v1603_v34 = vpop.f32.mrf.mxu0  ;;  %v1617_v2 = vpop.f32.mrf.mxu1  ;;  %v1630_v29 = vadd.f32 %v1629_v62, %v1347_v41  ;;  %v1644_v23 = vadd.f32 %v1643_v32, %v1348_v43  ;;  %v8076_v55 = vld [vmem:[%s10816_s13 + $0x2d0] sm:$0xff]  ;;  %v1351_v62 = vperm.slane %v9544_v60, 2  ;;  %v1352_v32 = vperm.slane %v9544_v60, 3 }
 0x671   :  { %v1604_v37 = vadd.f32 %v1603_v34, %v1345_v42  ;;  %v1618_v39 = vadd.f32 %v1617_v2, %v1346_v21 }
 0x672   :  { %v1766_v1 = vmax.f32 %v1630_v29, 0.0  ;;  %v1767_v10 = vmax.f32 %v1644_v23, 0.0  ;;  %v8105_v29 = vld [vmem:[%s10816_s13 + $0x3b8] sm:$0xff] }
 0x673   :  { %v1780_v49 = vmax.f32 %v1604_v37, 0.0  ;;  %v1781_v51 = vmax.f32 %v1618_v39, 0.0  ;;  %2977 = vmatpush.bf16.msrb.mxu2 %v8072_v56  ;;  %2991 = vmatpush.bf16.msrb.mxu3 %v8080_v33  ;;  %v8089_v56 = vld [vmem:[%s10816_s13 + $0x338] sm:$0xff]  ;;  %v8067_v37 = vld [vmem:[%s10816_s13 + $0x288] sm:$0xff] }
 0x674   :  { %2951 = vmatpush.bf16.msrb.mxu0 %v8054_v4  ;;  %2965 = vmatpush.bf16.msrb.mxu1 %v8062_v11  ;;  %v8097_v33 = vld [vmem:[%s10816_s13 + $0x378] sm:$0xff]  ;;  %v8075_v39 = vld [vmem:[%s10816_s13 + $0x2c8] sm:$0xff] }
 0x675   :  { %v2052_v47 = vpack.c.bf16 %v1780_v49, %v1764_v18  ;;  %v2053_v20 = vpack.c.bf16 %v1781_v51, %v1765_v45  ;;  %v8088_v49 = vld [vmem:[%s10816_s13 + $0x330] sm:$0xff]  ;;  %v8113_v23 = vld [vmem:[%s10816_s13 + $0x3f8] sm:$0xff] }
 0x676   :  { %v8096_v51 = vld [vmem:[%s10816_s13 + $0x370] sm:$0xff] }
 0x677   :  { %2978 = vmatpush.bf16.msrb.mxu2 %v8071_v24  ;;  %2992 = vmatpush.bf16.msrb.mxu3 %v8079_v46  ;;  %v1631_v57 = vpop.f32.mrf.mxu2  ;;  %v1645_v30 = vpop.f32.mrf.mxu3 }
 0x678   :  { %v1632_v17 = vadd.f32 %v1631_v57, %v1347_v41  ;;  %v1646_v40 = vadd.f32 %v1645_v30, %v1348_v43  ;;  %2900 = vmatmul.bf16.vlgmr.msra.gmra.mxu0 %v2052_v47  ;;  %2914 = vmatmul.bf16.vlgmr.msra.gmra.mxu1 %v2053_v20  ;;  %v1657_v7 = vpop.f32.mrf.mxu0  ;;  %v1671_v0 = vpop.f32.mrf.mxu1  ;;  %v8066_v47 = vld [vmem:[%s10816_s13 + $0x280] sm:$0xff] }
 0x679   :  { %2952 = vmatpush.bf16.msrb.mxu0 %v8053_v44  ;;  %2966 = vmatpush.bf16.msrb.mxu1 %v8061_v13  ;;  %v1658_v38 = vadd.f32 %v1657_v7, %v1349_v19  ;;  %v1672_v26 = vadd.f32 %v1671_v0, %v1350_v61  ;;  %v8074_v20 = vld [vmem:[%s10816_s13 + $0x2c0] sm:$0xff] }
 0x67a   :  { %v1782_v3 = vmax.f32 %v1632_v17, 0.0  ;;  %v1783_v12 = vmax.f32 %v1646_v40, 0.0  ;;  %v8087_v17 = vld [vmem:[%s10816_s13 + $0x328] sm:$0xff] }
 0x67b   :  { %2979 = vmatpush.bf16.msrb.mxu2 %v8070_v52  ;;  %2993 = vmatpush.bf16.msrb.mxu3 %v8078_v63  ;;  %v1768_v34 = vmax.f32 %v1658_v38, 0.0  ;;  %v1769_v2 = vmax.f32 %v1672_v26, 0.0  ;;  %v8095_v40 = vld [vmem:[%s10816_s13 + $0x368] sm:$0xff]  ;;  %v8084_v38 = vld [vmem:[%s10816_s13 + $0x310] sm:$0xff] }
 0x67c   :  { %v2054_v14 = vpack.c.bf16 %v1782_v3, %v1766_v1  ;;  %v2055_v59 = vpack.c.bf16 %v1783_v12, %v1767_v10  ;;  %v8086_v3 = vld [vmem:[%s10816_s13 + $0x320] sm:$0xff]  ;;  %v8092_v26 = vld [vmem:[%s10816_s13 + $0x350] sm:$0xff] }
 0x67d   :  { %2953 = vmatpush.bf16.msrb.mxu0 %v8052_v31  ;;  %2967 = vmatpush.bf16.msrb.mxu1 %v8060_v35  ;;  %v8104_v31 = vld [vmem:[%s10816_s13 + $0x3b0] sm:$0xff]  ;;  %v8094_v12 = vld [vmem:[%s10816_s13 + $0x360] sm:$0xff] }
 0x67e   :  { %2928 = vmatmul.bf16.vlgmr.msra.gmra.mxu2 %v2054_v14  ;;  %2942 = vmatmul.bf16.vlgmr.msra.gmra.mxu3 %v2055_v59  ;;  %v8112_v35 = vld [vmem:[%s10816_s13 + $0x3f0] sm:$0xff] }
 0x67f   :  { %2980 = vmatpush.bf16.msrb.mxu2 %v8069_v53  ;;  %2994 = vmatpush.bf16.msrb.mxu3 %v8077_v50  ;;  %v1685_v42 = vpop.f32.mrf.mxu2  ;;  %v1699_v21 = vpop.f32.mrf.mxu3  ;;  %v8085_v53 = vld [vmem:[%s10816_s13 + $0x318] sm:$0xff] }
 0x680   :  { %v1659_v8 = vpop.f32.mrf.mxu0  ;;  %v1673_v25 = vpop.f32.mrf.mxu1  ;;  %v1686_v18 = vadd.f32 %v1685_v42, %v1351_v62  ;;  %v1700_v45 = vadd.f32 %v1699_v21, %v1352_v32  ;;  %v8093_v50 = vld [vmem:[%s10816_s13 + $0x358] sm:$0xff] }
 0x681   :  { %2954 = vmatpush.bf16.msrb.mxu0 %v8051_v15  ;;  %2968 = vmatpush.bf16.msrb.mxu1 %v8059_v16  ;;  %v1660_v9 = vadd.f32 %v1659_v8, %v1349_v19  ;;  %v1674_v36 = vadd.f32 %v1673_v25, %v1350_v61  ;;  %v8103_v19 = vld [vmem:[%s10816_s13 + $0x3a8] sm:$0xff]  ;;  %v8102_v15 = vld [vmem:[%s10816_s13 + $0x3a0] sm:$0xff]  ;;  %v1353_v8 = vperm.slane %v9544_v60, 4  ;;  %v1354_v25 = vperm.slane %v9544_v60, 5 }
 0x682   :  { %v1770_v57 = vmax.f32 %v1686_v18, 0.0  ;;  %v1771_v30 = vmax.f32 %v1700_v45, 0.0  ;;  %v8111_v61 = vld [vmem:[%s10816_s13 + $0x3e8] sm:$0xff]  ;;  %v8110_v16 = vld [vmem:[%s10816_s13 + $0x3e0] sm:$0xff] }
 0x683   :  { %v1784_v4 = vmax.f32 %v1660_v9, 0.0  ;;  %v1785_v11 = vmax.f32 %v1674_v36, 0.0  ;;  %2981 = vmatpush.bf16.msrb.mxu2 %v8068_v22  ;;  %2995 = vmatpush.bf16.msrb.mxu3 %v8076_v55  ;;  %v8101_v22 = vld [vmem:[%s10816_s13 + $0x398] sm:$0xff]  ;;  %v8083_v9 = vld [vmem:[%s10816_s13 + $0x308] sm:$0xff] }
 0x684   :  { %v8109_v55 = vld [vmem:[%s10816_s13 + $0x3d8] sm:$0xff]  ;;  %v8091_v36 = vld [vmem:[%s10816_s13 + $0x348] sm:$0xff] }
 0x685   :  { %v2056_v41 = vpack.c.bf16 %v1784_v4, %v1768_v34  ;;  %v2057_v43 = vpack.c.bf16 %v1785_v11, %v1769_v2  ;;  %2955 = vmatpush.bf16.msrb.mxu0 %v8050_v27  ;;  %2969 = vmatpush.bf16.msrb.mxu1 %v8058_v28  ;;  %v8082_v4 = vld [vmem:[%s10816_s13 + $0x300] sm:$0xff]  ;;  %v8099_v18 = vld [vmem:[%s10816_s13 + $0x388] sm:$0xff] }
 0x686   :  { %v8090_v11 = vld [vmem:[%s10816_s13 + $0x340] sm:$0xff]  ;;  %v8107_v45 = vld [vmem:[%s10816_s13 + $0x3c8] sm:$0xff] }
 0x687   :  { %2982 = vmatpush.bf16.msrb.mxu2 %v8067_v37  ;;  %2996 = vmatpush.bf16.msrb.mxu3 %v8075_v39  ;;  %v1687_v24 = vpop.f32.mrf.mxu2  ;;  %v1701_v46 = vpop.f32.mrf.mxu3  ;;  %v1355_v37 = vperm.slane %v9544_v60, 6  ;;  %v1356_v39 = vperm.slane %v9544_v60, 7 }
 0x688   :  { %v1688_v44 = vadd.f32 %v1687_v24, %v1351_v62  ;;  %v1702_v13 = vadd.f32 %v1701_v46, %v1352_v32  ;;  %2956 = vmatmul.bf16.vlgmr.msrb.gmra.mxu0 %v2056_v41  ;;  %2970 = vmatmul.bf16.vlgmr.msrb.gmra.mxu1 %v2057_v43  ;;  %v1713_v1 = vpop.f32.mrf.mxu0  ;;  %v1727_v10 = vpop.f32.mrf.mxu1  ;;  %v8100_v62 = vld [vmem:[%s10816_s13 + $0x390] sm:$0xff] }
 0x689   :  { %3004 = vmatpush.bf16.msra.mxu0 %v8089_v56  ;;  %3018 = vmatpush.bf16.msra.mxu1 %v8097_v33  ;;  %v8108_v32 = vld [vmem:[%s10816_s13 + $0x3d0] sm:$0xff]  ;;  %v1714_v56 = vadd.f32 %v1713_v1, %v1353_v8  ;;  %v1728_v33 = vadd.f32 %v1727_v10, %v1354_v25  ;;  %v8306_v10 = vld [vmem:[%s10817_s14] ss:$0 sm:$0xff] }
 0x68a   :  { %v1786_v52 = vmax.f32 %v1688_v44, 0.0  ;;  %v1787_v63 = vmax.f32 %v1702_v13, 0.0  ;;  %v8098_v13 = vld [vmem:[%s10816_s13 + $0x380] sm:$0xff] }
 0x68b   :  { %2983 = vmatpush.bf16.msrb.mxu2 %v8066_v47  ;;  %2997 = vmatpush.bf16.msrb.mxu3 %v8074_v20 }
 0x68c   :  { %v2058_v7 = vpack.c.bf16 %v1786_v52, %v1770_v57  ;;  %v2059_v0 = vpack.c.bf16 %v1787_v63, %v1771_v30 }
 0x68d   :  { %3005 = vmatpush.bf16.msra.mxu0 %v8088_v49  ;;  %3019 = vmatpush.bf16.msra.mxu1 %v8096_v51  ;;  %v1772_v49 = vmax.f32 %v1714_v56, 0.0  ;;  %v1773_v51 = vmax.f32 %v1728_v33, 0.0 }
 0x68e   :  { %2984 = vmatmul.bf16.vlgmr.msrb.gmra.mxu2 %v2058_v7  ;;  %2998 = vmatmul.bf16.vlgmr.msrb.gmra.mxu3 %v2059_v0 }
 0x68f   :  { %3032 = vmatpush.bf16.msra.mxu2 %v8105_v29  ;;  %3046 = vmatpush.bf16.msra.mxu3 %v8113_v23  ;;  %v1741_v14 = vpop.f32.mrf.mxu2  ;;  %v1755_v59 = vpop.f32.mrf.mxu3  ;;  %v8106_v29 = vld [vmem:[%s10816_s13 + $0x3c0] sm:$0xff] }
 0x690   :  { %v1715_v42 = vpop.f32.mrf.mxu0  ;;  %v1729_v21 = vpop.f32.mrf.mxu1  ;;  %v1742_v47 = vadd.f32 %v1741_v14, %v1355_v37  ;;  %v1756_v60 = vadd.f32 %v1755_v59, %v1356_v39 }
 0x691   :  { %3006 = vmatpush.bf16.msra.mxu0 %v8087_v17  ;;  %3020 = vmatpush.bf16.msra.mxu1 %v8095_v40  ;;  %v1716_v27 = vadd.f32 %v1715_v42, %v1353_v8  ;;  %v1730_v28 = vadd.f32 %v1729_v21, %v1354_v25 }
 0x692   :  { %v1774_v30 = vmax.f32 %v1742_v47, 0.0  ;;  %v1775_v52 = vmax.f32 %v1756_v60, 0.0 }
 0x693   :  { %3033 = vmatpush.bf16.msra.mxu2 %v8104_v31  ;;  %3047 = vmatpush.bf16.msra.mxu3 %v8112_v35  ;;  %v1788_v41 = vmax.f32 %v1716_v27, 0.0  ;;  %v1789_v43 = vmax.f32 %v1730_v28, 0.0 }
 0x695   :  { %3007 = vmatpush.bf16.msra.mxu0 %v8086_v3  ;;  %3021 = vmatpush.bf16.msra.mxu1 %v8094_v12  ;;  %v2060_v20 = vpack.c.bf16 %v1788_v41, %v1772_v49  ;;  %v2061_v44 = vpack.c.bf16 %v1789_v43, %v1773_v51 }
 0x697   :  { %3034 = vmatpush.bf16.msra.mxu2 %v8103_v19  ;;  %3048 = vmatpush.bf16.msra.mxu3 %v8111_v61  ;;  %v1743_v34 = vpop.f32.mrf.mxu2  ;;  %v1757_v2 = vpop.f32.mrf.mxu3 }
 0x698   :  { %v1744_v24 = vadd.f32 %v1743_v34, %v1355_v37  ;;  %v1758_v46 = vadd.f32 %v1757_v2, %v1356_v39 }
 0x699   :  { %3008 = vmatpush.bf16.msra.mxu0 %v8085_v53  ;;  %3022 = vmatpush.bf16.msra.mxu1 %v8093_v50 }
 0x69a   :  { %v1790_v23 = vmax.f32 %v1744_v24, 0.0  ;;  %v1791_v57 = vmax.f32 %v1758_v46, 0.0 }
 0x69b   :  { %3035 = vmatpush.bf16.msra.mxu2 %v8102_v15  ;;  %3049 = vmatpush.bf16.msra.mxu3 %v8110_v16 }
 0x69c   :  { %v2062_v63 = vpack.c.bf16 %v1790_v23, %v1774_v30  ;;  %v2063_v17 = vpack.c.bf16 %v1791_v57, %v1775_v52 }
 0x69d   :  { %3009 = vmatpush.bf16.msra.mxu0 %v8084_v38  ;;  %3023 = vmatpush.bf16.msra.mxu1 %v8092_v26 }
 0x69f   :  { %3036 = vmatpush.bf16.msra.mxu2 %v8101_v22  ;;  %3050 = vmatpush.bf16.msra.mxu3 %v8109_v55 }
 0x6a1   :  { %3010 = vmatpush.bf16.msra.mxu0 %v8083_v9  ;;  %3024 = vmatpush.bf16.msra.mxu1 %v8091_v36 }
 0x6a3   :  { %3037 = vmatpush.bf16.msra.mxu2 %v8100_v62  ;;  %3051 = vmatpush.bf16.msra.mxu3 %v8108_v32 }
 0x6a5   :  { %3011 = vmatpush.bf16.msra.mxu0 %v8082_v4  ;;  %3025 = vmatpush.bf16.msra.mxu1 %v8090_v11 }
 0x6a7   :  { %3038 = vmatpush.bf16.msra.mxu2 %v8099_v18  ;;  %3052 = vmatpush.bf16.msra.mxu3 %v8107_v45 }
 0x6a8   :  { %3012 = vmatmul.bf16.vlgmr.msra.gmra.mxu0 %v2060_v20  ;;  %3026 = vmatmul.bf16.vlgmr.msra.gmra.mxu1 %v2061_v44 }
 0x6ab   :  { %3039 = vmatpush.bf16.msra.mxu2 %v8098_v13  ;;  %3053 = vmatpush.bf16.msra.mxu3 %v8106_v29 }
 0x6ae   :  { %3040 = vmatmul.bf16.vlgmr.msra.gmra.mxu2 %v2062_v63  ;;  %3054 = vmatmul.bf16.vlgmr.msra.gmra.mxu3 %v2063_v17 }
 0x6e4   :  { %v2845_v40 = vpop.f32.mrf.mxu0  ;;  %v2859_v7 = vpop.f32.mrf.mxu1 }
 0x6e5   :  { %v2846_v61 = vadd.f32 %v8306_v10, %v2845_v40 }
 0x6e7   :  { %v2860_v50 = vadd.f32 %v2859_v7, %v2846_v61 }
 0x6ec   :  { %v2847_v0 = vpop.f32.mrf.mxu0  ;;  %v2861_v1 = vpop.f32.mrf.mxu1 }
 0x6ed   :  { %v2848_v38 = vadd.f32 %v8306_v10, %v2847_v0 }
 0x6ef   :  { %v2862_v42 = vadd.f32 %v2861_v1, %v2848_v38 }
 0x6f1   :  { %v2873_v31 = vpop.f32.mrf.mxu2  ;;  %v2887_v35 = vpop.f32.mrf.mxu3 }
 0x6f2   :  { %v2874_v14 = vadd.f32 %v2873_v31, %v2860_v50 }
 0x6f4   :  { %v2888_v26 = vadd.f32 %v2887_v35, %v2874_v14 }
 0x6f5   :  { %v2901_v3 = vpop.f32.mrf.mxu0  ;;  %v2915_v53 = vpop.f32.mrf.mxu1 }
 0x6f6   :  { %v2902_v22 = vadd.f32 %v2901_v3, %v2888_v26 }
 0x6f8   :  { %v2916_v36 = vadd.f32 %v2915_v53, %v2902_v22 }
 0x6f9   :  { %v2875_v12 = vpop.f32.mrf.mxu2  ;;  %v2889_v19 = vpop.f32.mrf.mxu3 }
 0x6fa   :  { %v2876_v55 = vadd.f32 %v2875_v12, %v2862_v42  ;;  %v8117_v42 = vld [vmem:[%s10807_s4 + $0x18] sm:$0xff] }
 0x6fb   :  { %3190 = vmatpush.bf16.msrb.mxu1 %v8117_v42 }
 0x6fc   :  { %v2890_v27 = vadd.f32 %v2889_v19, %v2876_v55 }
 0x6fd   :  { %v2903_v59 = vpop.f32.mrf.mxu0  ;;  %v2917_v21 = vpop.f32.mrf.mxu1 }
 0x6fe   :  { %v2904_v62 = vadd.f32 %v2903_v59, %v2890_v27 }
 0x700   :  { %v2918_v33 = vadd.f32 %v2917_v21, %v2904_v62  ;;  %v8119_v21 = vld [vmem:[%s10808_s5 + $0x18] sm:$0xff] }
 0x701   :  { %v2929_v15 = vpop.f32.mrf.mxu2  ;;  %v2943_v16 = vpop.f32.mrf.mxu3  ;;  %3228 = vmatpush.bf16.msrb.mxu2 %v8119_v21 }
 0x702   :  { %v2930_v28 = vadd.f32 %v2929_v15, %v2916_v36 }
 0x704   :  { %v2944_v56 = vadd.f32 %v2943_v16, %v2930_v28 }
 0x705   :  { %v2957_v8 = vpop.f32.mrf.mxu0  ;;  %v2971_v32 = vpop.f32.mrf.mxu1 }
 0x706   :  { %v2958_v11 = vadd.f32 %v2957_v8, %v2944_v56  ;;  %v8114_v8 = vld [vmem:[%s10856_s20 + $0x10] sm:$0xff] }
 0x708   :  { %v2972_v39 = vadd.f32 %v2971_v32, %v2958_v11 }
 0x709   :  { %v2931_v25 = vpop.f32.mrf.mxu2  ;;  %v2945_v9 = vpop.f32.mrf.mxu3 }
 0x70a   :  { %v2932_v37 = vadd.f32 %v2931_v25, %v2918_v33  ;;  %v8116_v25 = vld [vmem:[%s10807_s4 + $0x10] sm:$0xff]  ;;  %s10870_s4 = smov 24  }
 0x70b   :  { %3191 = vmatpush.bf16.msrb.mxu1 %v8116_v25 }
 0x70c   :  { %v2946_v41 = vadd.f32 %v2945_v9, %v2932_v37  ;;  %v8118_v9 = vld [vmem:[%s10808_s5 + $0x10] sm:$0xff]  ;;  %s10871_s5 = smov 28  }
 0x70d   :  { %v2959_v34 = vpop.f32.mrf.mxu0  ;;  %v2973_v43 = vpop.f32.mrf.mxu1  ;;  %3229 = vmatpush.bf16.msrb.mxu2 %v8118_v9 }
 0x70e   :  { %v2960_v49 = vadd.f32 %v2959_v34, %v2946_v41 }
 0x710   :  { %v2974_v47 = vadd.f32 %v2973_v43, %v2960_v49 }
 0x711   :  { %v2985_v2 = vpop.f32.mrf.mxu2  ;;  %v2999_v4 = vpop.f32.mrf.mxu3 }
 0x712   :  { %v2986_v18 = vadd.f32 %v2985_v2, %v2972_v39 }
 0x714   :  { %v3000_v46 = vadd.f32 %v2999_v4, %v2986_v18 }
 0x719   :  { %v2987_v51 = vpop.f32.mrf.mxu2  ;;  %v3001_v24 = vpop.f32.mrf.mxu3 }
 0x71a   :  { %v2988_v44 = vadd.f32 %v2987_v51, %v2974_v47 }
 0x71c   :  { %v3002_v30 = vadd.f32 %v3001_v24, %v2988_v44 }
 0x725   :  { %v3013_v45 = vpop.f32.mrf.mxu0  ;;  %v3027_v20 = vpop.f32.mrf.mxu1 }
 0x726   :  { %v3014_v60 = vadd.f32 %v3013_v45, %v3000_v46  ;;  %v8307_v45 = vld [vmem:[%s10820_s17] ss:$0 sm:$0xff] }
 0x727   :  { %v8308_v46 = vld [vmem:[%s10821_s18] ss:$0 sm:$0xff] }
 0x728   :  { %v3028_v13 = vadd.f32 %v3027_v20, %v3014_v60 }
 0x72d   :  { %v3015_v29 = vpop.f32.mrf.mxu0  ;;  %v3029_v7 = vpop.f32.mrf.mxu1 }
 0x72e   :  { %v3016_v63 = vadd.f32 %v3015_v29, %v3002_v30 }
 0x730   :  { %v3030_v0 = vadd.f32 %v3029_v7, %v3016_v63 }
 0x731   :  { %v3041_v23 = vpop.f32.mrf.mxu2  ;;  %v3055_v57 = vpop.f32.mrf.mxu3 }
 0x732   :  { %v3042_v52 = vadd.f32 %v3041_v23, %v3028_v13  ;;  %v8309_v23 = vld [vmem:[%s10809_s6 + $0x1] ss:$0 sm:$0xff]  ;;  %s10860_s6 = smov 116  }
 0x734   :  { %v3056_v17 = vadd.f32 %v3055_v57, %v3042_v52  ;;  %v8310_v57 = vld [vmem:[%s10810_s7 + $0x1] ss:$0 sm:$0xff]  ;;  %s10861_s7 = smov 112  }
 0x736   :  { %v3060_v40 = vadd.f32 %v3056_v17, %v9161_v54 }
 0x738   :  { %v3064_v31 = vsel %vm100_vm0, %v3060_v40, 0.0 }
 0x739   :  { %v3043_v35 = vpop.f32.mrf.mxu2  ;;  %3065 = vadd.xlane.f32.xlu1 %v3064_v31  ;;  %v3057_v10 = vpop.f32.mrf.mxu3 }
 0x73a   :  { %v3044_v1 = vadd.f32 %v3043_v35, %v3030_v0  ;;  %v8311_v0 = vld [vmem:[%s10811_s8 + $0x1] ss:$0 sm:$0xff]  ;;  %s10862_s8 = smov 108  }
 0x73c   :  { %v3058_v3 = vadd.f32 %v3057_v10, %v3044_v1 }
 0x73e   :  { %v3061_v12 = vadd.f32 %v3058_v3, %v9163_v48  ;;  %v8115_v48 = vld [vmem:[%s10856_s20 + $0x18] sm:$0xff] }
 0x73f   :  { %3150 = vmatpush.bf16.msrb.mxu0 %v8115_v48 }
 0x740   :  { %v3067_v19 = vsel %vm100_vm0, %v3061_v12, 0.0 }
 0x741   :  { %3068 = vadd.xlane.f32.xlu0 %v3067_v19 }
 0x743   :  { %3151 = vmatpush.bf16.msrb.mxu0 %v8114_v8 }
 0x7ac   :  { %v3066_v61 = vpop.xlane.xlu1 %3065 }
 0x7ad   :  { %v3070_v53 = vmul.f32 %v3066_v61, %v9021_v58 }
 0x7af   :  { %v3072_v50 = vsub.f32 %v3060_v40, %v3070_v53 }
 0x7b1   :  { %v3074_v14 = vmul.f32 %v3072_v50, %v3072_v50 }
 0x7b3   :  { %v3076_v54 = vsel %vm100_vm0, %v3074_v14, 0.0 }
 0x7b4   :  { %v3069_v59 = vpop.xlane.xlu0 %3068  ;;  %3077 = vadd.xlane.f32.xlu2 %v3076_v54 }
 0x7b5   :  { %v3071_v15 = vmul.f32 %v3069_v59, %v9021_v58 }
 0x7b7   :  { %v3073_v16 = vsub.f32 %v3061_v12, %v3071_v15 }
 0x7b9   :  { %v3075_v38 = vmul.f32 %v3073_v16, %v3073_v16 }
 0x7bb   :  { %v3079_v26 = vsel %vm100_vm0, %v3075_v38, 0.0 }
 0x7bc   :  { %3080 = vadd.xlane.f32.xlu1 %v3079_v26 }
 0x827   :  { %v3078_v22 = vpop.xlane.xlu2 %3077 }
 0x828   :  { %v3082_v55 = vmul.f32 %v3078_v22, %v9021_v58 }
 0x82a   :  { %v3084_v36 = vadd.f32 1e-05, %v3082_v55 }
 0x82c   :  { %8388 = vrsqrt.f32 %v3084_v36  ;;  %vm3092_vm11 = vweird.f32 %v3084_v36 }
 0x82f   :  { %v3081_v27 = vpop.xlane.xlu1 %3080 }
 0x830   :  { %v3083_v28 = vmul.f32 %v3081_v27, %v9021_v58 }
 0x832   :  { %v8389_v62 = vpop.eup %8388  ;;  %v3085_v32 = vadd.f32 1e-05, %v3083_v28 }
 0x833   :  { %v3087_v56 = vmul.f32 %v8389_v62, %v3084_v36  ;;  %vm3093_vm10 = vweird.f32 %v8389_v62 }
 0x834   :  { %8390 = vrsqrt.f32 %v3085_v32  ;;  %vm3094_vm13 = vmor %vm3092_vm11, %vm3093_vm10  ;;  %vm3102_vm15 = vweird.f32 %v3085_v32 }
 0x835   :  { %v3088_v33 = vmul.f32 %v8389_v62, %v3087_v56 }
 0x837   :  { %v3089_v34 = vmul.f32 0.5, %v3088_v33 }
 0x839   :  { %v3090_v2 = vsub.f32 1.5, %v3089_v34 }
 0x83a   :  { %v8391_v4 = vpop.eup %8390 }
 0x83b   :  { %v3091_v11 = vmul.f32 %v8389_v62, %v3090_v2  ;;  %v3097_v37 = vmul.f32 %v8391_v4, %v3085_v32  ;;  %vm3103_vm14 = vweird.f32 %v8391_v4 }
 0x83c   :  { %vm3104_vm12 = vmor %vm3102_vm15, %vm3103_vm14 }
 0x83d   :  { %v3098_v39 = vmul.f32 %v8391_v4, %v3097_v37  ;;  %v3095_v41 = vsel %vm3094_vm13, %v8389_v62, %v3091_v11 }
 0x83e   :  { %v3106_v49 = vmul.f32 %v3095_v41, %v3072_v50 }
 0x83f   :  { %v3099_v43 = vmul.f32 0.5, %v3098_v39 }
 0x840   :  { %v3111_v47 = vmul.f32 %v8307_v45, %v3106_v49 }
 0x841   :  { %v3100_v18 = vsub.f32 1.5, %v3099_v43 }
 0x842   :  { %v9729_v44 = vadd.f32 %v8308_v46, %v3111_v47 }
 0x843   :  { %v3101_v51 = vmul.f32 %v8391_v4, %v3100_v18 }
 0x845   :  { %v3105_v24 = vsel %vm3104_vm12, %v8391_v4, %v3101_v51 }
 0x846   :  { %v3107_v60 = vmul.f32 %v3105_v24, %v3073_v16 }
 0x848   :  { %v3112_v20 = vmul.f32 %v8307_v45, %v3107_v60 }
 0x84a   :  { %v9731_v13 = vadd.f32 %v8308_v46, %v3112_v20 }
 0x84c   :  { %v3123_v29 = vpack.c.bf16 %v9731_v13, %v9729_v44 }
 0x84e   :  { %6915 = vmatmul.msk.bf16.vlgmr.msrb.gmra.mxu0 %vm100_vm0, %v3123_v29  ;;  %6929 = vmatmul.msk.bf16.vlgmr.msrb.gmra.mxu1 %vm100_vm0, %v3123_v29 }
 0x84f   :  { %6943 = vmatmul.msk.bf16.vlgmr.msrb.gmra.mxu2 %vm100_vm0, %v3123_v29 }
 0x8cb   :  { %v3153_v30 = vpop.f32.mrf.mxu0  ;;  %v3193_v52 = vpop.f32.mrf.mxu1 }
 0x8cc   :  { %v3154_v63 = vadd.f32 %v8309_v23, %v3153_v30  ;;  %v3194_v17 = vadd.f32 %v8310_v57, %v3193_v52 }
 0x8ce   :  { %v3158_v40 = vmul.f32 0.5, %v3154_v63  ;;  %v3198_v7 = vpack.c.bf16 %v3194_v17, %v3194_v17 }
 0x8d0   :  { %v3160_v31 = vpack.c.bf16 %v3158_v40, %v3158_v40  ;;  %v3242_v35 = vsel %vm194_vm1, %v3198_v7, 0  ;;  %v3348_v1 = vunpack.c.l.b16 %v3198_v7 }
 0x8d1   :  { %3251 = vmatpush.bf16.xpose.msrb.mxu3 %v3242_v35 }
 0x8d2   :  { %v3343_v10 = vunpack.c.l.b16 %v3160_v31  ;;  %v3349_v3 = vpack.c.b16 %v3348_v1, %v3348_v1  ;;  %v3231_v12 = vpop.f32.mrf.mxu2 }
 0x8d3   :  { %v3232_v19 = vadd.f32 %v8311_v0, %v3231_v12  ;;  %v3155_v61 = vpop.f32.mrf.mxu0  ;;  %v3195_v53 = vpop.f32.mrf.mxu1 }
 0x8d4   :  { %v3344_v50 = vpack.c.b16 %v3343_v10, %v3343_v10  ;;  %v3156_v14 = vadd.f32 %v8309_v23, %v3155_v61  ;;  %v3196_v54 = vadd.f32 %v8310_v57, %v3195_v53  ;;  %3350 = vrot.lane.b32.xlu0 %v3349_v3, %s8491_s27 }
 0x8d5   :  { %v3236_v59 = vpack.c.bf16 %v3232_v19, %v3232_v19 }
 0x8d6   :  { %v3159_v15 = vmul.f32 0.5, %v3156_v14  ;;  %v3199_v16 = vpack.c.bf16 %v3196_v54, %v3196_v54  ;;  %3345 = vrot.lane.b32.xlu1 %v3344_v50, %s8491_s27 }
 0x8d7   :  { %v3304_v38 = vsel %vm261_vm2, %v3236_v59, 0  ;;  %v3425_v27 = vunpack.c.l.b16 %v3236_v59 }
 0x8d8   :  { %v3161_v26 = vpack.c.bf16 %v3159_v15, %v3159_v15  ;;  %v3377_v48 = vunpack.c.l.b16 %v3199_v16  ;;  %3313 = vmatpush.bf16.msra.mxu1 %v3304_v38  ;;  %6944 = vmatmul.msk.bf16.vlgmr.msrb.gmra.mxu3 %vm194_vm1, %v3160_v31  ;;  %v3261_v42 = vsel %vm194_vm1, %v3199_v16, 0 }
 0x8d9   :  { %3270 = vmatpush.bf16.xpose.msra.mxu0 %v3261_v42  ;;  %v9776_v28 = vpack.c.b16 %v3425_v27, %v3425_v27 }
 0x8da   :  { %v3372_v21 = vunpack.c.l.b16 %v3161_v26  ;;  %v3378_v22 = vpack.c.b16 %v3377_v48, %v3377_v48  ;;  %v3233_v55 = vpop.f32.mrf.mxu2 }
 0x8db   :  { %v3234_v8 = vadd.f32 %v8311_v0, %v3233_v55 }
 0x8dc   :  { %v3373_v25 = vpack.c.b16 %v3372_v21, %v3372_v21  ;;  %3379 = vrot.lane.b32.xlu2 %v3378_v22, %s8491_s27 }
 0x8dd   :  { %v3237_v9 = vpack.c.bf16 %v3234_v8, %v3234_v8 }
 0x8de   :  { %3374 = vrot.lane.b32.xlu0 %v3373_v25, %s8491_s27  ;;  %3484 = vrot.lane.b32.xlu1 %v3344_v50, %s8490_s26 }
 0x8df   :  { %v3323_v36 = vsel %vm261_vm2, %v3237_v9, 0  ;;  %v3449_v62 = vunpack.c.l.b16 %v3237_v9 }
 0x8e0   :  { %3332 = vmatpush.bf16.msra.mxu2 %v3323_v36  ;;  %6945 = vmatmul.msk.bf16.vlgmr.msra.gmra.mxu0 %vm194_vm1, %v3161_v26 }
 0x8e1   :  { %v9786_v32 = vpack.c.b16 %v3449_v62, %v3449_v62 }
 0x8e4   :  { %3486 = vrot.lane.b32.xlu2 %v3349_v3, %s8490_s26 }
 0x8e6   :  { %3509 = vrot.lane.b32.xlu0 %v3378_v22, %s8490_s26  ;;  %3633 = vrot.lane.b32.xlu1 %v3378_v22, %s10860_s6 }
 0x8ec   :  { %3507 = vrot.lane.b32.xlu2 %v3373_v25, %s8490_s26 }
 0x8ee   :  { %3610 = vrot.lane.b32.xlu0 %v3349_v3, %s10860_s6  ;;  %3734 = vrot.lane.b32.xlu1 %v3349_v3, %s10861_s7 }
 0x8f4   :  { %3608 = vrot.lane.b32.xlu2 %v3344_v50, %s10860_s6 }
 0x8f6   :  { %3732 = vrot.lane.b32.xlu0 %v3344_v50, %s10861_s7  ;;  %3755 = vrot.lane.b32.xlu1 %v3373_v25, %s10861_s7 }
 0x8fc   :  { %3757 = vrot.lane.b32.xlu2 %v3378_v22, %s10861_s7 }
 0x8fe   :  { %3631 = vrot.lane.b32.xlu0 %v3373_v25, %s10860_s6  ;;  %3856 = vrot.lane.b32.xlu1 %v3344_v50, %s10862_s8 }
 0x904   :  { %3858 = vrot.lane.b32.xlu2 %v3349_v3, %s10862_s8 }
 0x906   :  { %3881 = vrot.lane.b32.xlu0 %v3378_v22, %s10862_s8  ;;  %4005 = vrot.lane.b32.xlu1 %v3378_v22, %s10863_s23 }
 0x90c   :  { %3980 = vrot.lane.b32.xlu2 %v3344_v50, %s10863_s23 }
 0x90e   :  { %3982 = vrot.lane.b32.xlu0 %v3349_v3, %s10863_s23  ;;  %4106 = vrot.lane.b32.xlu1 %v3349_v3, %s10864_s24 }
 0x914   :  { %3879 = vrot.lane.b32.xlu2 %v3373_v25, %s10862_s8 }
 0x916   :  { %4104 = vrot.lane.b32.xlu0 %v3344_v50, %s10864_s24  ;;  %3678 = vrot.lane.b32.xlu1 %v9776_v28, %s10860_s6 }
 0x91c   :  { %4129 = vrot.lane.b32.xlu2 %v3378_v22, %s10864_s24 }
 0x91e   :  { %3427 = vrot.lane.b32.xlu0 %v9776_v28, %s8491_s27  ;;  %4127 = vrot.lane.b32.xlu1 %v3373_v25, %s10864_s24 }
 0x924   :  { %3699 = vrot.lane.b32.xlu2 %v9786_v32, %s10860_s6 }
 0x926   :  { %3554 = vrot.lane.b32.xlu0 %v9776_v28, %s8490_s26  ;;  %3451 = vrot.lane.b32.xlu1 %v9786_v32, %s8491_s27  ;;  %s10866_s27 = smov 8  }
 0x92e   :  { %4003 = vrot.lane.b32.xlu0 %v3373_v25, %s10863_s23 }
 0x936   :  { %v3380_v56 = vpop.permute.xlu2 %3379  ;;  %3575 = vrot.lane.b32.xlu0 %v9786_v32, %s8490_s26  ;;  %s10865_s26 = smov 4  }
 0x937   :  { %v3385_v33 = vsel %vm194_vm1, %v3380_v56, 0 }
 0x938   :  { %3394 = vmatpush.bf16.xpose.msrb.mxu0 %v3385_v33 }
 0x93e   :  { %v3487_v34 = vpop.permute.xlu2 %3486 }
 0x93f   :  { %v3492_v11 = vsel %vm194_vm1, %v3487_v34, 0 }
 0x946   :  { %v3351_v2 = vpop.permute.xlu0 %3350  ;;  %v3508_v39 = vpop.permute.xlu2 %3507 }
 0x947   :  { %v3356_v4 = vsel %vm194_vm1, %v3351_v2, 0 }
 0x948   :  { %3365 = vmatpush.bf16.xpose.msra.mxu3 %v3356_v4  ;;  %v3346_v37 = vpop.permute.xlu1 %3345 }
 0x94e   :  { %v3609_v18 = vpop.permute.xlu2 %3608 }
 0x94f   :  { %6948 = vmatmul.msk.bf16.vlgmr.msra.gmra.mxu3 %vm194_vm1, %v3346_v37 }
 0x950   :  { %3501 = vmatpush.bf16.xpose.msrb.mxu3 %v3492_v11  ;;  %v3375_v41 = vpop.permute.xlu0 %3374  ;;  %v3485_v43 = vpop.permute.xlu1 %3484 }
 0x951   :  { %6949 = vmatmul.msk.bf16.vlgmr.msrb.gmra.mxu0 %vm194_vm1, %v3375_v41 }
 0x956   :  { %v3758_v20 = vpop.permute.xlu2 %3757 }
 0x957   :  { %v3763_v63 = vsel %vm194_vm1, %v3758_v20, 0 }
 0x958   :  { %v3510_v45 = vpop.permute.xlu0 %3509  ;;  %v3634_v49 = vpop.permute.xlu1 %3633 }
 0x959   :  { %v3515_v51 = vsel %vm194_vm1, %v3510_v45, 0  ;;  %v3639_v24 = vsel %vm194_vm1, %v3634_v49, 0 }
 0x95a   :  { %3524 = vmatpush.bf16.xpose.msra.mxu0 %v3515_v51 }
 0x95b   :  { %v3253_v46 = vpop.f32.mrf.mxu3 }
 0x95c   :  { %v9805_v47 = vadd.f32 %v3253_v46, %v8715_v5 }
 0x95d   :  { %v3272_v60 = vpop.f32.mrf.mxu0 }
 0x95e   :  { %v9808_v29 = vadd.f32 %v3272_v60, %v8717_v6  ;;  %v3276_v23 = vsel %vm233_vm3, %v9805_v47, -inf  ;;  %v3859_v1 = vpop.permute.xlu2 %3858 }
 0x95f   :  { %6952 = vmatmul.msk.bf16.vlgmr.msrb.gmra.mxu3 %vm194_vm1, %v3485_v43  ;;  %v3864_v10 = vsel %vm194_vm1, %v3859_v1, 0 }
 0x960   :  { %v3611_v57 = vpop.permute.xlu0 %3610  ;;  %v3735_v30 = vpop.permute.xlu1 %3734  ;;  %3277 = vmax.xlane.f32.xlu0 %v3276_v23  ;;  %v3279_v52 = vsel %vm233_vm3, %v9808_v29, -inf }
 0x961   :  { %v3616_v17 = vsel %vm194_vm1, %v3611_v57, 0  ;;  %v3740_v40 = vsel %vm194_vm1, %v3735_v30, 0  ;;  %6953 = vmatmul.msk.bf16.vlgmr.msra.gmra.mxu0 %vm194_vm1, %v3508_v39  ;;  %3280 = vmax.xlane.f32.xlu2 %v3279_v52 }
 0x962   :  { %3648 = vmatpush.bf16.xpose.msrb.mxu0 %v3639_v24  ;;  %3625 = vmatpush.bf16.xpose.msra.mxu3 %v3616_v17 }
 0x963   :  { %v3255_v7 = vpop.f32.mrf.mxu3 }
 0x965   :  { %v3274_v0 = vpop.f32.mrf.mxu0 }
 0x966   :  { %v3981_v50 = vpop.permute.xlu2 %3980 }
 0x968   :  { %v3733_v31 = vpop.permute.xlu0 %3732  ;;  %v3756_v35 = vpop.permute.xlu1 %3755 }
 0x96a   :  { %3772 = vmatpush.bf16.xpose.msra.mxu0 %v3763_v63  ;;  %3749 = vmatpush.bf16.xpose.msrb.mxu3 %v3740_v40 }
 0x96e   :  { %v3880_v16 = vpop.permute.xlu2 %3879 }
 0x96f   :  { %6956 = vmatmul.msk.bf16.vlgmr.msra.gmra.mxu3 %vm194_vm1, %v3609_v18 }
 0x970   :  { %v3632_v3 = vpop.permute.xlu0 %3631  ;;  %v3857_v12 = vpop.permute.xlu1 %3856 }
 0x971   :  { %6957 = vmatmul.msk.bf16.vlgmr.msrb.gmra.mxu0 %vm194_vm1, %v3632_v3 }
 0x972   :  { %3873 = vmatpush.bf16.xpose.msra.mxu3 %v3864_v10 }
 0x974   :  { %3802 = vrot.lane.b32.xlu0 %v9776_v28, %s10861_s7 }
 0x976   :  { %v4130_v48 = vpop.permute.xlu2 %4129 }
 0x977   :  { %v4135_v55 = vsel %vm194_vm1, %v4130_v48, 0 }
 0x978   :  { %v3882_v19 = vpop.permute.xlu0 %3881  ;;  %v4006_v61 = vpop.permute.xlu1 %4005 }
 0x979   :  { %v3887_v53 = vsel %vm194_vm1, %v3882_v19, 0  ;;  %v4011_v59 = vsel %vm194_vm1, %v4006_v61, 0 }
 0x97a   :  { %3896 = vmatpush.bf16.xpose.msrb.mxu0 %v3887_v53 }
 0x97e   :  { %v9845_v56 = vpop.permute.xlu2 %3699 }
 0x97f   :  { %6960 = vmatmul.msk.bf16.vlgmr.msrb.gmra.mxu3 %vm194_vm1, %v3733_v31 }
 0x980   :  { %v3983_v14 = vpop.permute.xlu0 %3982  ;;  %v4107_v54 = vpop.permute.xlu1 %4106 }
 0x981   :  { %v3988_v15 = vsel %vm194_vm1, %v3983_v14, 0  ;;  %6961 = vmatmul.msk.bf16.vlgmr.msra.gmra.mxu0 %vm194_vm1, %v3756_v35  ;;  %v4112_v42 = vsel %vm194_vm1, %v4107_v54, 0 }
 0x982   :  { %4020 = vmatpush.bf16.xpose.msra.mxu0 %v4011_v59  ;;  %3997 = vmatpush.bf16.xpose.msrb.mxu3 %v3988_v15 }
 0x988   :  { %v4105_v38 = vpop.permute.xlu0 %4104  ;;  %v9829_v26 = vpop.permute.xlu1 %3678 }
 0x98f   :  { %6964 = vmatmul.msk.bf16.vlgmr.msra.gmra.mxu3 %vm194_vm1, %v3857_v12 }
 0x990   :  { %4121 = vmatpush.bf16.xpose.msra.mxu3 %v4112_v42  ;;  %v3428_v21 = vpop.permute.xlu0 %3427  ;;  %v4128_v22 = vpop.permute.xlu1 %4127 }
 0x991   :  { %v3433_v8 = vsel %vm261_vm2, %v3428_v21, 0  ;;  %6965 = vmatmul.msk.bf16.vlgmr.msrb.gmra.mxu0 %vm194_vm1, %v3880_v16 }
 0x992   :  { %4144 = vmatpush.bf16.xpose.msrb.mxu0 %v4135_v55  ;;  %3442 = vmatpush.bf16.msrb.mxu1 %v3433_v8 }
 0x998   :  { %v9836_v25 = vpop.permute.xlu0 %3554  ;;  %v3452_v9 = vpop.permute.xlu1 %3451 }
 0x999   :  { %v3457_v36 = vsel %vm261_vm2, %v3452_v9, 0 }
 0x99a   :  { %3466 = vmatpush.bf16.msrb.mxu2 %v3457_v36 }
 0x99f   :  { %6968 = vmatmul.msk.bf16.vlgmr.msrb.gmra.mxu3 %vm194_vm1, %v3981_v50 }
 0x9a0   :  { %v4004_v27 = vpop.permute.xlu0 %4003 }
 0x9a1   :  { %6969 = vmatmul.msk.bf16.vlgmr.msra.gmra.mxu0 %vm194_vm1, %v4004_v27 }
 0x9a8   :  { %v9843_v62 = vpop.permute.xlu0 %3575 }
 0x9af   :  { %6972 = vmatmul.msk.bf16.vlgmr.msra.gmra.mxu3 %vm194_vm1, %v4105_v38 }
 0x9b1   :  { %6973 = vmatmul.msk.bf16.vlgmr.msrb.gmra.mxu0 %vm194_vm1, %v4128_v22  ;;  %vm10872_vm1 = vcmask 224448  }
 0x9ce   :  { %v3396_v33 = vpop.f32.mrf.mxu0 }
 0x9cf   :  { %v9848_v34 = vadd.f32 %v3396_v33, %v8717_v6 }
 0x9d1   :  { %v3403_v2 = vsel %vm233_vm3, %v9848_v34, -inf }
 0x9d2   :  { %3404 = vmax.xlane.f32.xlu1 %v3403_v2  ;;  %v3367_v4 = vpop.f32.mrf.mxu3 }
 0x9d3   :  { %v9853_v11 = vadd.f32 %v3367_v4, %v8715_v5  ;;  %v3278_v37 = vpop.xlane.xlu0 %3277 }
 0x9d4   :  { %v3282_v39 = vsub.f32 %v9805_v47, %v3278_v37  ;;  %v3281_v41 = vpop.xlane.xlu2 %3280 }
 0x9d5   :  { %v3283_v43 = vsub.f32 %v9808_v29, %v3281_v41  ;;  %v3400_v18 = vsel %vm233_vm3, %v9853_v11, -inf }
 0x9d6   :  { %v3284_v45 = vmul.f32 1.442695, %v3282_v39  ;;  %v3398_v49 = vpop.f32.mrf.mxu0  ;;  %3401 = vmax.xlane.f32.xlu2 %v3400_v18 }
 0x9d7   :  { %v3286_v51 = vmul.f32 1.442695, %v3283_v43 }
 0x9d8   :  { %8392 = vpow2.f32 %v3284_v45 }
 0x9d9   :  { %8394 = vpow2.f32 %v3286_v51 }
 0x9da   :  { %v3369_v24 = vpop.f32.mrf.mxu3 }
 0x9de   :  { %v9859_v46 = vpop.eup %8392  ;;  %v3526_v60 = vpop.f32.mrf.mxu0 }
 0x9df   :  { %v9861_v20 = vpop.eup %8394  ;;  %v3288_v47 = vsel %vm233_vm3, %v9859_v46, 0.0  ;;  %v9868_v57 = vadd.f32 %v3526_v60, %v8717_v6 }
 0x9e0   :  { %3289 = vadd.xlane.f32.xlu2 %v3288_v47  ;;  %v3291_v29 = vsel %vm233_vm3, %v9861_v20, 0.0 }
 0x9e1   :  { %3292 = vadd.xlane.f32.xlu0 %v3291_v29  ;;  %v3533_v52 = vsel %vm233_vm3, %v9868_v57, -inf }
 0x9e2   :  { %v3503_v23 = vpop.f32.mrf.mxu3 }
 0x9e3   :  { %v9890_v54 = vadd.f32 %v3503_v23, %v8715_v5 }
 0x9e5   :  { %v3530_v16 = vsel %vm233_vm3, %v9890_v54, -inf }
 0x9e6   :  { %v3528_v30 = vpop.f32.mrf.mxu0 }
 0x9e9   :  { %3534 = vmax.xlane.f32.xlu0 %v3533_v52  ;;  %v9933_v52 = vpop.permute.xlu0 %3802 }
 0x9ea   :  { %v3505_v63 = vpop.f32.mrf.mxu3 }
 0x9eb   :  { %3823 = vrot.lane.b32.xlu1 %v9786_v32, %s10861_s7 }
 0x9ee   :  { %v3650_v17 = vpop.f32.mrf.mxu0 }
 0x9ef   :  { %v9875_v40 = vadd.f32 %v3650_v17, %v8717_v6 }
 0x9f1   :  { %v3657_v7 = vsel %vm233_vm3, %v9875_v40, -inf }
 0x9f2   :  { %v3627_v0 = vpop.f32.mrf.mxu3  ;;  %3658 = vmax.xlane.f32.xlu2 %v3657_v7 }
 0x9f3   :  { %v9900_v42 = vadd.f32 %v3627_v0, %v8715_v5 }
 0x9f5   :  { %v3654_v55 = vsel %vm233_vm3, %v9900_v42, -inf }
 0x9f6   :  { %v3652_v31 = vpop.f32.mrf.mxu0 }
 0x9fa   :  { %v3629_v35 = vpop.f32.mrf.mxu3 }
 0x9fe   :  { %v3774_v1 = vpop.f32.mrf.mxu0 }
 0x9ff   :  { %v9880_v10 = vadd.f32 %v3774_v1, %v8717_v6 }
 0xa01   :  { %v3781_v3 = vsel %vm233_vm3, %v9880_v10, -inf }
 0xa02   :  { %v3751_v12 = vpop.f32.mrf.mxu3  ;;  %3782 = vmax.xlane.f32.xlu0 %v3781_v3 }
 0xa03   :  { %v9885_v19 = vadd.f32 %v3751_v12, %v8715_v5 }
 0xa05   :  { %v3778_v61 = vsel %vm233_vm3, %v9885_v19, -inf }
 0xa06   :  { %v3776_v53 = vpop.f32.mrf.mxu0  ;;  %3779 = vmax.xlane.f32.xlu2 %v3778_v61 }
 0xa0a   :  { %v3753_v50 = vpop.f32.mrf.mxu3 }
 0xa0e   :  { %v3898_v14 = vpop.f32.mrf.mxu0 }
 0xa0f   :  { %v9903_v21 = vadd.f32 %v3898_v14, %v8717_v6  ;;  %v3560_v14 = vsel %vm261_vm2, %v9836_v25, 0 }
 0xa11   :  { %v3905_v8 = vsel %vm233_vm3, %v9903_v21, -inf }
 0xa12   :  { %v3875_v59 = vpop.f32.mrf.mxu3 }
 0xa13   :  { %v9893_v15 = vadd.f32 %v3875_v59, %v8715_v5 }
 0xa15   :  { %3531 = vmax.xlane.f32.xlu1 %v3530_v16  ;;  %v3902_v38 = vsel %vm233_vm3, %v9893_v15, -inf  ;;  %v3581_v16 = vsel %vm261_vm2, %v9843_v62, 0 }
 0xa16   :  { %v3900_v48 = vpop.f32.mrf.mxu0  ;;  %3903 = vmax.xlane.f32.xlu2 %v3902_v38 }
 0xa1a   :  { %v3877_v22 = vpop.f32.mrf.mxu3 }
 0xa1d   :  { %3655 = vmax.xlane.f32.xlu1 %v3654_v55 }
 0xa1e   :  { %v4022_v9 = vpop.f32.mrf.mxu0  ;;  %3906 = vmax.xlane.f32.xlu2 %v3905_v8 }
 0xa1f   :  { %v9910_v36 = vadd.f32 %v4022_v9, %v8717_v6 }
 0xa21   :  { %v4029_v4 = vsel %vm233_vm3, %v9910_v36, -inf }
 0xa22   :  { %v3999_v27 = vpop.f32.mrf.mxu3 }
 0xa23   :  { %v9913_v33 = vadd.f32 %v3999_v27, %v8715_v5 }
 0xa25   :  { %v4026_v2 = vsel %vm233_vm3, %v9913_v33, -inf }
 0xa26   :  { %v4024_v37 = vpop.f32.mrf.mxu0  ;;  %4027 = vmax.xlane.f32.xlu0 %v4026_v2  ;;  %4030 = vmax.xlane.f32.xlu2 %v4029_v4 }
 0xa2a   :  { %v4001_v39 = vpop.f32.mrf.mxu3 }
 0xa2e   :  { %v4146_v41 = vpop.f32.mrf.mxu0 }
 0xa2f   :  { %v9920_v43 = vadd.f32 %v4146_v41, %v8717_v6 }
 0xa31   :  { %v4153_v18 = vsel %vm233_vm3, %v9920_v43, -inf }
 0xa32   :  { %v4123_v45 = vpop.f32.mrf.mxu3  ;;  %4154 = vmax.xlane.f32.xlu1 %v4153_v18 }
 0xa33   :  { %v9925_v49 = vadd.f32 %v4123_v45, %v8715_v5 }
 0xa35   :  { %v4150_v51 = vsel %vm233_vm3, %v9925_v49, -inf }
 0xa36   :  { %v4148_v24 = vpop.f32.mrf.mxu0  ;;  %4151 = vmax.xlane.f32.xlu0 %v4150_v51 }
 0xa3a   :  { %v4125_v60 = vpop.f32.mrf.mxu3 }
 0xa3e   :  { %3926 = vrot.lane.b32.xlu2 %v9776_v28, %s10862_s8 }
 0xa45   :  { %v3405_v47 = vpop.xlane.xlu1 %3404 }
 0xa46   :  { %v3407_v6 = vsub.f32 %v9848_v34, %v3405_v47 }
 0xa48   :  { %v3410_v29 = vmul.f32 1.442695, %v3407_v6 }
 0xa49   :  { %v3402_v23 = vpop.xlane.xlu2 %3401 }
 0xa4a   :  { %8396 = vpow2.f32 %v3410_v29  ;;  %v3406_v30 = vsub.f32 %v9853_v11, %v3402_v23 }
 0xa4c   :  { %v3408_v5 = vmul.f32 1.442695, %v3406_v30 }
 0xa4e   :  { %8398 = vpow2.f32 %v3408_v5 }
 0xa50   :  { %v9935_v63 = vpop.eup %8396 }
 0xa51   :  { %v3415_v17 = vsel %vm233_vm3, %v9935_v63, 0.0 }
 0xa52   :  { %3416 = vadd.xlane.f32.xlu1 %v3415_v17 }
 0xa53   :  { %v3290_v7 = vpop.xlane.xlu2 %3289 }
 0xa54   :  { %v9939_v0 = vpop.eup %8398  ;;  %8400 = vrcp.f32 %v3290_v7  ;;  %v3293_v34 = vpop.xlane.xlu0 %3292 }
 0xa55   :  { %8402 = vrcp.f32 %v3293_v34  ;;  %v3412_v31 = vsel %vm233_vm3, %v9939_v0, 0.0 }
 0xa56   :  { %3413 = vadd.xlane.f32.xlu0 %v3412_v31 }
 0xa5a   :  { %v8401_v11 = vpop.eup %8400 }
 0xa5b   :  { %v8403_v35 = vpop.eup %8402  ;;  %v3296_v1 = vmul.f32 %v8401_v11, %v9859_v46 }
 0xa5c   :  { %v3297_v3 = vmul.f32 %v8403_v35, %v9861_v20  ;;  %v3535_v12 = vpop.xlane.xlu0 %3534 }
 0xa5d   :  { %v3298_v61 = vpack.c.bf16 %v3296_v1, %v3296_v1  ;;  %v3537_v53 = vsub.f32 %v9868_v57, %v3535_v12  ;;  %v9958_v38 = vpop.permute.xlu1 %3823 }
 0xa5e   :  { %v3299_v50 = vpack.c.bf16 %v3297_v3, %v3297_v3 }
 0xa5f   :  { %v3540_v59 = vmul.f32 1.442695, %v3537_v53  ;;  %6946 = vmatmul.msk.bf16.vlgmr.msra.gmra.mxu1 %vm233_vm3, %v3298_v61 }
 0xa60   :  { %3569 = vmatpush.bf16.msra.mxu1 %v3560_v14  ;;  %6947 = vmatmul.msk.bf16.vlgmr.msra.gmra.mxu2 %vm233_vm3, %v3299_v50 }
 0xa61   :  { %8404 = vpow2.f32 %v3540_v59  ;;  %3590 = vmatpush.bf16.msra.mxu2 %v3581_v16 }
 0xa65   :  { %v3659_v25 = vpop.xlane.xlu2 %3658 }
 0xa66   :  { %v3661_v41 = vsub.f32 %v9875_v40, %v3659_v25 }
 0xa67   :  { %v9952_v46 = vpop.eup %8404 }
 0xa68   :  { %v3545_v20 = vsel %vm233_vm3, %v9952_v46, 0.0  ;;  %v3664_v45 = vmul.f32 1.442695, %v3661_v41 }
 0xa69   :  { %3546 = vadd.xlane.f32.xlu2 %v3545_v20 }
 0xa6a   :  { %3947 = vrot.lane.b32.xlu0 %v9786_v32, %s10862_s8 }
 0xa75   :  { %v3783_v51 = vpop.xlane.xlu0 %3782 }
 0xa76   :  { %v3785_v40 = vsub.f32 %v9880_v10, %v3783_v51  ;;  %v3829_v51 = vsel %vm261_vm2, %v9958_v38, 0 }
 0xa78   :  { %v3788_v29 = vmul.f32 1.442695, %v3785_v40 }
 0xa79   :  { %v3780_v57 = vpop.xlane.xlu2 %3779 }
 0xa7a   :  { %v3784_v62 = vsub.f32 %v9885_v19, %v3780_v57 }
 0xa7c   :  { %v3786_v48 = vmul.f32 1.442695, %v3784_v62 }
 0xa7e   :  { %8406 = vpow2.f32 %v3786_v48 }
 0xa84   :  { %v9962_v27 = vpop.eup %8406 }
 0xa85   :  { %v3790_v19 = vsel %vm233_vm3, %v9962_v27, 0.0 }
 0xa88   :  { %v3532_v22 = vpop.xlane.xlu1 %3531 }
 0xa89   :  { %v3536_v55 = vsub.f32 %v9890_v54, %v3532_v22  ;;  %v3904_v8 = vpop.xlane.xlu2 %3903 }
 0xa8a   :  { %v3908_v5 = vsub.f32 %v9893_v15, %v3904_v8 }
 0xa8b   :  { %v3538_v9 = vmul.f32 1.442695, %v3536_v55 }
 0xa8c   :  { %v3910_v7 = vmul.f32 1.442695, %v3908_v5 }
 0xa8d   :  { %8408 = vpow2.f32 %v3538_v9 }
 0xa90   :  { %v3656_v2 = vpop.xlane.xlu1 %3655 }
 0xa91   :  { %v3660_v4 = vsub.f32 %v9900_v42, %v3656_v2  ;;  %v3907_v37 = vpop.xlane.xlu2 %3906 }
 0xa92   :  { %v3909_v50 = vsub.f32 %v9903_v21, %v3907_v37  ;;  %v3705_v21 = vsel %vm261_vm2, %v9845_v56, 0 }
 0xa93   :  { %v9965_v39 = vpop.eup %8408  ;;  %v3662_v18 = vmul.f32 1.442695, %v3660_v4 }
 0xa94   :  { %3791 = vadd.xlane.f32.xlu0 %v3790_v19  ;;  %v3542_v54 = vsel %vm233_vm3, %v9965_v39, 0.0  ;;  %v3912_v59 = vmul.f32 1.442695, %v3909_v50 }
 0xa95   :  { %8410 = vpow2.f32 %v3662_v18  ;;  %3543 = vadd.xlane.f32.xlu1 %v3542_v54 }
 0xa96   :  { %8412 = vpow2.f32 %v3664_v45 }
 0xa99   :  { %v4031_v24 = vpop.xlane.xlu2 %4030  ;;  %v4028_v30 = vpop.xlane.xlu0 %4027 }
 0xa9a   :  { %v4033_v42 = vsub.f32 %v9910_v36, %v4031_v24  ;;  %v4032_v25 = vsub.f32 %v9913_v33, %v4028_v30  ;;  %v3808_v30 = vsel %vm261_vm2, %v9933_v52, 0 }
 0xa9b   :  { %v9973_v60 = vpop.eup %8410 }
 0xa9c   :  { %v4036_v47 = vmul.f32 1.442695, %v4033_v42  ;;  %v3666_v6 = vsel %vm233_vm3, %v9973_v60, 0.0  ;;  %v9978_v23 = vpop.eup %8412  ;;  %v4034_v22 = vmul.f32 1.442695, %v4032_v25 }
 0xa9d   :  { %3667 = vadd.xlane.f32.xlu2 %v3666_v6  ;;  %v3669_v36 = vsel %vm233_vm3, %v9978_v23, 0.0 }
 0xa9e   :  { %8414 = vpow2.f32 %v4036_v47 }
 0xa9f   :  { %8416 = vpow2.f32 %v3788_v29 }
 0xaa0   :  { %8418 = vpow2.f32 %v3910_v7 }
 0xaa4   :  { %v9981_v17 = vpop.eup %8414 }
 0xaa5   :  { %3670 = vadd.xlane.f32.xlu2 %v3669_v36  ;;  %v4041_v10 = vsel %vm233_vm3, %v9981_v17, 0.0  ;;  %v9987_v34 = vpop.eup %8416  ;;  %v4155_v61 = vpop.xlane.xlu1 %4154 }
 0xaa6   :  { %4042 = vadd.xlane.f32.xlu0 %v4041_v10  ;;  %v3793_v15 = vsel %vm233_vm3, %v9987_v34, 0.0  ;;  %v9994_v1 = vpop.eup %8418  ;;  %v4157_v41 = vsub.f32 %v9920_v43, %v4155_v61 }
 0xaa7   :  { %v3914_v12 = vsel %vm233_vm3, %v9994_v1, 0.0 }
 0xaa8   :  { %v4160_v24 = vmul.f32 1.442695, %v4157_v41 }
 0xaa9   :  { %v4152_v31 = vpop.xlane.xlu0 %4151 }
 0xaaa   :  { %v4156_v11 = vsub.f32 %v9925_v49, %v4152_v31 }
 0xaac   :  { %v4158_v35 = vmul.f32 1.442695, %v4156_v11 }
 0xaad   :  { %3794 = vadd.xlane.f32.xlu2 %v3793_v15 }
 0xaae   :  { %8420 = vpow2.f32 %v4158_v35  ;;  %4050 = vrot.lane.b32.xlu1 %v9776_v28, %s10863_s23 }
 0xab4   :  { %v9996_v3 = vpop.eup %8420 }
 0xab5   :  { %3915 = vadd.xlane.f32.xlu2 %v3914_v12  ;;  %v4162_v49 = vsel %vm233_vm3, %v9996_v3, 0.0 }
 0xab6   :  { %4163 = vadd.xlane.f32.xlu0 %v4162_v49 }
 0xac5   :  { %v3417_v53 = vpop.xlane.xlu1 %3416 }
 0xac6   :  { %8422 = vrcp.f32 %v3417_v53 }
 0xac9   :  { %v3414_v14 = vpop.xlane.xlu0 %3413 }
 0xaca   :  { %8424 = vrcp.f32 %v3414_v14  ;;  %4195 = vrot.lane.b32.xlu0 %v9786_v32, %s10864_s24 }
 0xacb   :  { %8426 = vpow2.f32 %v3912_v59 }
 0xacc   :  { %v8423_v16 = vpop.eup %8422  ;;  %8428 = vpow2.f32 %v4034_v22 }
 0xacd   :  { %v3421_v20 = vmul.f32 %v8423_v16, %v9935_v63  ;;  %4071 = vrot.lane.b32.xlu2 %v9786_v32, %s10863_s23  ;;  %v3927_v63 = vpop.permute.xlu2 %3926  ;;  %v3684_v32 = vsel %vm261_vm2, %v9829_v26, 0 }
 0xace   :  { %v3932_v12 = vsel %vm261_vm2, %v3927_v63, 0 }
 0xacf   :  { %v3423_v57 = vpack.c.bf16 %v3421_v20, %v3421_v20 }
 0xad0   :  { %v8425_v62 = vpop.eup %8424 }
 0xad1   :  { %v3420_v48 = vmul.f32 %v8425_v62, %v9939_v0  ;;  %6951 = vmatmul.msk.bf16.vlgmr.msrb.gmra.mxu2 %vm233_vm3, %v3423_v57  ;;  %v10013_v8 = vpop.eup %8426 }
 0xad2   :  { %3714 = vmatpush.bf16.msrb.mxu2 %v3705_v21  ;;  %v3917_v56 = vsel %vm233_vm3, %v10013_v8, 0.0  ;;  %v10020_v33 = vpop.eup %8428 }
 0xad3   :  { %v3422_v55 = vpack.c.bf16 %v3420_v48, %v3420_v48  ;;  %v4038_v4 = vsel %vm233_vm3, %v10020_v33, 0.0 }
 0xad5   :  { %6950 = vmatmul.msk.bf16.vlgmr.msrb.gmra.mxu1 %vm233_vm3, %v3422_v55 }
 0xad6   :  { %3693 = vmatpush.bf16.msrb.mxu1 %v3684_v32 }
 0xad8   :  { %3918 = vadd.xlane.f32.xlu1 %v3917_v56 }
 0xadc   :  { %v3315_v0 = vpop.f32.mrf.mxu1  ;;  %v3547_v9 = vpop.xlane.xlu2 %3546 }
 0xadd   :  { %v3338_v2 = vpack.c.bf16 %v3315_v0, %v3315_v0  ;;  %8430 = vrcp.f32 %v3547_v9  ;;  %v3948_v36 = vpop.permute.xlu0 %3947 }
 0xade   :  { %8432 = vpow2.f32 %v4160_v24  ;;  %v3953_v52 = vsel %vm261_vm2, %v3948_v36, 0 }
 0xadf   :  { %3340 = vst.msk [vmem:[#allocation2] sm:$0xf] %vm299_vm4, %v3338_v2 }
 0xae0   :  { %4039 = vadd.xlane.f32.xlu1 %v4038_v4 }
 0xae3   :  { %v8431_v26 = vpop.eup %8430  ;;  %v3334_v37 = vpop.f32.mrf.mxu2 }
 0xae4   :  { %v3551_v18 = vmul.f32 %v8431_v26, %v9952_v46  ;;  %v3339_v19 = vpack.c.bf16 %v3334_v37, %v3334_v37  ;;  %v3317_v54 = vpop.f32.mrf.mxu1  ;;  %v10031_v40 = vpop.eup %8432 }
 0xae5   :  { %v4165_v43 = vsel %vm233_vm3, %v10031_v40, 0.0 }
 0xae6   :  { %v3553_v45 = vpack.c.bf16 %v3551_v18, %v3551_v18  ;;  %3341 = vst.msk [vmem:[#allocation2 + $0x4] sm:$0xf] %vm299_vm4, %v3339_v19 }
 0xae8   :  { %6955 = vmatmul.msk.bf16.vlgmr.msra.gmra.mxu2 %vm233_vm3, %v3553_v45 }
 0xae9   :  { %3838 = vmatpush.bf16.msra.mxu2 %v3829_v51 }
 0xaeb   :  { %v3336_v42 = vpop.f32.mrf.mxu2 }
 0xaf6   :  { %4166 = vadd.xlane.f32.xlu2 %v4165_v43 }
 0xaf9   :  { %4174 = vrot.lane.b32.xlu1 %v9776_v28, %s10864_s24 }
 0xb08   :  { %v3544_v46 = vpop.xlane.xlu1 %3543 }
 0xb09   :  { %8434 = vrcp.f32 %v3544_v46 }
 0xb0f   :  { %v8435_v47 = vpop.eup %8434 }
 0xb10   :  { %v3550_v38 = vmul.f32 %v8435_v47, %v9965_v39  ;;  %v3668_v6 = vpop.xlane.xlu2 %3667  ;;  %v3792_v39 = vpop.xlane.xlu0 %3791 }
 0xb11   :  { %8436 = vrcp.f32 %v3668_v6 }
 0xb12   :  { %v3552_v29 = vpack.c.bf16 %v3550_v38, %v3550_v38 }
 0xb14   :  { %6954 = vmatmul.msk.bf16.vlgmr.msra.gmra.mxu1 %vm233_vm3, %v3552_v29 }
 0xb15   :  { %3817 = vmatpush.bf16.msra.mxu1 %v3808_v30 }
 0xb17   :  { %v8437_v10 = vpop.eup %8436 }
 0xb18   :  { %v3671_v5 = vpop.xlane.xlu2 %3670  ;;  %v3674_v28 = vmul.f32 %v8437_v10, %v9973_v60 }
 0xb19   :  { %8438 = vrcp.f32 %v3671_v5 }
 0xb1a   :  { %v3676_v35 = vpack.c.bf16 %v3674_v28, %v3674_v28  ;;  %8440 = vrcp.f32 %v3792_v39 }
 0xb1f   :  { %v8439_v7 = vpop.eup %8438 }
 0xb20   :  { %v3675_v31 = vmul.f32 %v8439_v7, %v9978_v23  ;;  %v3795_v11 = vpop.xlane.xlu2 %3794  ;;  %v8441_v49 = vpop.eup %8440 }
 0xb21   :  { %8442 = vrcp.f32 %v3795_v11  ;;  %v3798_v23 = vmul.f32 %v8441_v49, %v9962_v27  ;;  %v4051_v50 = vpop.permute.xlu1 %4050 }
 0xb22   :  { %v3677_v15 = vpack.c.bf16 %v3675_v31, %v3675_v31  ;;  %v4056_v20 = vsel %vm261_vm2, %v4051_v50, 0 }
 0xb23   :  { %v3800_v59 = vpack.c.bf16 %v3798_v23, %v3798_v23 }
 0xb24   :  { %6958 = vmatmul.msk.bf16.vlgmr.msrb.gmra.mxu1 %vm233_vm3, %v3676_v35  ;;  %6959 = vmatmul.msk.bf16.vlgmr.msrb.gmra.mxu2 %vm233_vm3, %v3677_v15 }
 0xb25   :  { %3941 = vmatpush.bf16.msrb.mxu1 %v3932_v12  ;;  %3962 = vmatpush.bf16.msrb.mxu2 %v3953_v52 }
 0xb27   :  { %v8443_v61 = vpop.eup %8442 }
 0xb28   :  { %v3916_v60 = vpop.xlane.xlu2 %3915  ;;  %v3799_v53 = vmul.f32 %v8443_v61, %v9987_v34  ;;  %v4043_v34 = vpop.xlane.xlu0 %4042 }
 0xb29   :  { %8444 = vrcp.f32 %v3916_v60 }
 0xb2a   :  { %v3801_v16 = vpack.c.bf16 %v3799_v53, %v3799_v53 }
 0xb2f   :  { %v8445_v57 = vpop.eup %8444 }
 0xb30   :  { %v4072_v14 = vpop.permute.xlu2 %4071  ;;  %v3922_v27 = vmul.f32 %v8445_v57, %v9994_v1  ;;  %v4164_v48 = vpop.xlane.xlu0 %4163 }
 0xb31   :  { %v4077_v25 = vsel %vm261_vm2, %v4072_v14, 0 }
 0xb32   :  { %v3924_v62 = vpack.c.bf16 %v3922_v27, %v3922_v27 }
 0xb34   :  { %6962 = vmatmul.msk.bf16.vlgmr.msra.gmra.mxu1 %vm233_vm3, %v3800_v59  ;;  %6963 = vmatmul.msk.bf16.vlgmr.msra.gmra.mxu2 %vm233_vm3, %v3801_v16 }
 0xb35   :  { %4065 = vmatpush.bf16.msra.mxu1 %v4056_v20  ;;  %4086 = vmatpush.bf16.msra.mxu2 %v4077_v25 }
 0xb3c   :  { %v4196_v0 = vpop.permute.xlu0 %4195 }
 0xb3d   :  { %v4201_v1 = vsel %vm261_vm2, %v4196_v0, 0 }
 0xb44   :  { %6966 = vmatmul.msk.bf16.vlgmr.msrb.gmra.mxu1 %vm233_vm3, %v3924_v62 }
 0xb4b   :  { %v3919_v21 = vpop.xlane.xlu1 %3918 }
 0xb4c   :  { %8446 = vrcp.f32 %v3919_v21 }
 0xb52   :  { %v8447_v22 = vpop.eup %8446  ;;  %v3444_v55 = vpop.f32.mrf.mxu1 }
 0xb53   :  { %v3923_v63 = vmul.f32 %v8447_v22, %v10013_v8  ;;  %v3472_v32 = vpack.c.bf16 %v3444_v55, %v3444_v55  ;;  %v4040_v56 = vpop.xlane.xlu1 %4039 }
 0xb54   :  { %8448 = vrcp.f32 %v4040_v56  ;;  %v3468_v9 = vpop.f32.mrf.mxu2 }
 0xb55   :  { %v3925_v2 = vpack.c.bf16 %v3923_v63, %v3923_v63  ;;  %v3473_v4 = vpack.c.bf16 %v3468_v9, %v3468_v9  ;;  %3476 = vrot.lane.b32.xlu1 %v3472_v32, %s10865_s26  ;;  %8450 = vrcp.f32 %v4043_v34 }
 0xb56   :  { %8452 = vrcp.f32 %v4164_v48 }
 0xb57   :  { %3478 = vrot.lane.b32.xlu0 %v3473_v4, %s10865_s26  ;;  %6967 = vmatmul.msk.bf16.vlgmr.msrb.gmra.mxu2 %vm233_vm3, %v3925_v2 }
 0xb58   :  { %4210 = vmatpush.bf16.msrb.mxu2 %v4201_v1 }
 0xb5a   :  { %v8449_v26 = vpop.eup %8448  ;;  %v3446_v37 = vpop.f32.mrf.mxu1 }
 0xb5b   :  { %v4046_v8 = vmul.f32 %v8449_v26, %v10020_v33  ;;  %v8451_v19 = vpop.eup %8450 }
 0xb5c   :  { %v3470_v41 = vpop.f32.mrf.mxu2  ;;  %v4047_v54 = vmul.f32 %v8451_v19, %v9981_v17  ;;  %v8453_v51 = vpop.eup %8452 }
 0xb5d   :  { %v4048_v18 = vpack.c.bf16 %v4046_v8, %v4046_v8  ;;  %v4170_v42 = vmul.f32 %v8453_v51, %v9996_v3  ;;  %v8122_v8 = vld [vmem:[%s10812_s9 + $0x18] sm:$0xff]  ;;  %v8121_v41 = vld [vmem:[%s10812_s9 + $0x10] sm:$0xff] }
 0xb5e   :  { %v4049_v45 = vpack.c.bf16 %v4047_v54, %v4047_v54  ;;  %4266 = vmatpush.bf16.msrb.mxu3 %v8122_v8 }
 0xb5f   :  { %6970 = vmatmul.msk.bf16.vlgmr.msra.gmra.mxu1 %vm233_vm3, %v4048_v18  ;;  %v4172_v38 = vpack.c.bf16 %v4170_v42, %v4170_v42 }
 0xb62   :  { %4267 = vmatpush.bf16.msrb.mxu3 %v8121_v41  ;;  %v8142_v41 = vld [vmem:[%s10814_s11 + $0x19c] sm:$0xf] }
 0xb67   :  { %6971 = vmatmul.msk.bf16.vlgmr.msra.gmra.mxu2 %vm233_vm3, %v4049_v45 }
 0xb69   :  { %v4167_v24 = vpop.xlane.xlu2 %4166 }
 0xb6a   :  { %8454 = vrcp.f32 %v4167_v24  ;;  %v8312_v24 = vld [vmem:[%s10813_s10 + $0x1] ss:$0 sm:$0xff] }
 0xb6b   :  { %v3592_v43 = vpop.f32.mrf.mxu2  ;;  %v4175_v46 = vpop.permute.xlu1 %4174 }
 0xb6c   :  { %v3597_v47 = vpack.c.bf16 %v3592_v43, %v3592_v43  ;;  %v4180_v33 = vsel %vm261_vm2, %v4175_v46, 0  ;;  %vm10873_vm2 = vmmov %vm10872_vm1 }
 0xb6d   :  { %4189 = vmatpush.bf16.msrb.mxu1 %v4180_v33 }
 0xb6e   :  { %3602 = vrot.lane.b32.xlu2 %v3597_v47, %s10866_s27 }
 0xb70   :  { %v8455_v6 = vpop.eup %8454  ;;  %6974 = vmatmul.msk.bf16.vlgmr.msrb.gmra.mxu1 %vm233_vm3, %v4172_v38 }
 0xb71   :  { %v4171_v17 = vmul.f32 %v8455_v6, %v10031_v40 }
 0xb73   :  { %v3594_v29 = vpop.f32.mrf.mxu2  ;;  %v4173_v30 = vpack.c.bf16 %v4171_v17, %v4171_v17 }
 0xb77   :  { %6975 = vmatmul.msk.bf16.vlgmr.msrb.gmra.mxu2 %vm233_vm3, %v4173_v30  ;;  %vm10874_vm3 = vcmask 257248  }
 0xb78   :  { %vm10875_vm4 = vmmov %vm10874_vm3 }
 0xb91   :  { %v3571_v3 = vpop.f32.mrf.mxu1 }
 0xb92   :  { %v3596_v5 = vpack.c.bf16 %v3571_v3, %v3571_v3 }
 0xb94   :  { %3600 = vrot.lane.b32.xlu1 %v3596_v5, %s10866_s27 }
 0xb99   :  { %v3573_v36 = vpop.f32.mrf.mxu1 }
 0xba1   :  { %v3695_v10 = vpop.f32.mrf.mxu1 }
 0xba2   :  { %v3720_v28 = vpack.c.bf16 %v3695_v10, %v3695_v10 }
 0xba4   :  { %3724 = vrot.lane.b32.xlu0 %v3720_v28, %s10867_s25 }
 0xba7   :  { %v3716_v7 = vpop.f32.mrf.mxu2 }
 0xba8   :  { %v3721_v31 = vpack.c.bf16 %v3716_v7, %v3716_v7 }
 0xba9   :  { %v3697_v11 = vpop.f32.mrf.mxu1 }
 0xbaa   :  { %3726 = vrot.lane.b32.xlu1 %v3721_v31, %s10867_s25  ;;  %v7096_v31 = vld [vmem:[%s10814_s11 + $0x180] sm:$0xf] }
 0xbab   :  { %v8147_v11 = vld [vmem:[%s10814_s11 + $0x1bc] sm:$0xf0] }
 0xbaf   :  { %v3718_v39 = vpop.f32.mrf.mxu2 }
 0xbb0   :  { %v8139_v39 = vld [vmem:[%s10814_s11 + $0x184] sm:$0xf] }
 0xbb1   :  { %v3819_v40 = vpop.f32.mrf.mxu1 }
 0xbb2   :  { %v3844_v35 = vpack.c.bf16 %v3819_v40, %v3819_v40  ;;  %v7097_v40 = vor.u32 %v8147_v11, %v7096_v31 }
 0xbb4   :  { %3848 = vrot.lane.b32.xlu0 %v3844_v35, %s10868_s0  ;;  %v7098_v35 = vld [vmem:[%s10814_s11 + $0x1c0] sm:$0xf0]  ;;  %4574 = vmatpush.bf16.msra.mxu0 %v7097_v40 }
 0xbb7   :  { %v3840_v15 = vpop.f32.mrf.mxu2 }
 0xbb8   :  { %v3845_v12 = vpack.c.bf16 %v3840_v15, %v3840_v15  ;;  %v7104_v15 = vld [vmem:[%s10814_s11 + $0x188] sm:$0xf] }
 0xbb9   :  { %v3821_v52 = vpop.f32.mrf.mxu1 }
 0xbba   :  { %3850 = vrot.lane.b32.xlu1 %v3845_v12, %s10868_s0  ;;  %v8148_v12 = vld [vmem:[%s10814_s11 + $0x1c4] sm:$0xf0] }
 0xbbf   :  { %v3842_v60 = vpop.f32.mrf.mxu2 }
 0xbc0   :  { %v7101_v60 = vor.u32 %v8139_v39, %v7098_v35 }
 0xbc1   :  { %v3943_v49 = vpop.f32.mrf.mxu1 }
 0xbc2   :  { %v3968_v61 = vpack.c.bf16 %v3943_v49, %v3943_v49  ;;  %v7105_v49 = vor.u32 %v8148_v12, %v7104_v15  ;;  %4588 = vmatpush.bf16.msra.mxu1 %v7101_v60  ;;  %v8313_v15 = vld [vmem:[%s10818_s15 + $0x1] ss:$0 sm:$0xff] }
 0xbc4   :  { %3972 = vrot.lane.b32.xlu0 %v3968_v61, %s10869_s29  ;;  %v8140_v61 = vld [vmem:[%s10814_s11 + $0x18c] sm:$0xf]  ;;  %4602 = vmatpush.bf16.msra.mxu2 %v7105_v49  ;;  %v8314_v49 = vld [vmem:[%s10819_s16 + $0x1] ss:$0 sm:$0xff] }
 0xbc7   :  { %v3477_v23 = vpop.permute.xlu1 %3476 }
 0xbc8   :  { %3482 = vst.msk [vmem:[#allocation2] sm:$0xf] %vm442_vm5, %v3477_v23  ;;  %v3603_v14 = vpop.permute.xlu2 %3602  ;;  %v7106_v23 = vld [vmem:[%s10814_s11 + $0x1c8] sm:$0xf0] }
 0xbc9   :  { %v3945_v53 = vpop.f32.mrf.mxu1  ;;  %v3479_v50 = vpop.permute.xlu0 %3478 }
 0xbca   :  { %3483 = vst.msk [vmem:[#allocation2 + $0x4] sm:$0xf] %vm442_vm5, %v3479_v50  ;;  %v7109_v50 = vor.u32 %v8140_v61, %v7106_v23 }
 0xbcb   :  { %3607 = vst.msk [vmem:[#allocation2 + $0x4] sm:$0xf] %vm567_vm6, %v3603_v14  ;;  %v7032_v14 = vld [vmem:[%s10814_s11 + $0x100] sm:$0xf] }
 0xbcc   :  { %4616 = vmatpush.bf16.msra.mxu3 %v7109_v50  ;;  %v7128_v50 = vld [vmem:[%s10814_s11 + $0x1a0] sm:$0xf] }
 0xbda   :  { %v3964_v59 = vpop.f32.mrf.mxu2 }
 0xbdb   :  { %v3969_v16 = vpack.c.bf16 %v3964_v59, %v3964_v59  ;;  %v8131_v59 = vld [vmem:[%s10814_s11 + $0x13c] sm:$0xf0] }
 0xbdc   :  { %v4067_v20 = vpop.f32.mrf.mxu1 }
 0xbdd   :  { %v4092_v25 = vpack.c.bf16 %v4067_v20, %v4067_v20  ;;  %3974 = vrot.lane.b32.xlu1 %v3969_v16, %s10869_s29  ;;  %v8123_v16 = vld [vmem:[%s10814_s11 + $0x104] sm:$0xf] }
 0xbdf   :  { %4096 = vrot.lane.b32.xlu2 %v4092_v25, %s10870_s4  ;;  %v7033_v25 = vor.u32 %v8131_v59, %v7032_v14  ;;  %v8143_v14 = vld [vmem:[%s10814_s11 + $0x1a4] sm:$0xf] }
 0xbe0   :  { %v7130_v59 = vld [vmem:[%s10814_s11 + $0x1e0] sm:$0xf0] }
 0xbe1   :  { %4575 = vmatpush.bf16.msra.mxu0 %v7033_v25  ;;  %v8152_v25 = vld [vmem:[%s10814_s11 + $0x1e4] sm:$0xf0] }
 0xbe2   :  { %v3966_v57 = vpop.f32.mrf.mxu2 }
 0xbe3   :  { %v7034_v57 = vld [vmem:[%s10814_s11 + $0x140] sm:$0xf0] }
 0xbe4   :  { %v4069_v27 = vpop.f32.mrf.mxu1 }
 0xbe5   :  { %v7040_v27 = vld [vmem:[%s10814_s11 + $0x108] sm:$0xf] }
 0xbea   :  { %v4088_v62 = vpop.f32.mrf.mxu2 }
 0xbeb   :  { %v4093_v34 = vpack.c.bf16 %v4088_v62, %v4088_v62  ;;  %v7037_v62 = vor.u32 %v8123_v16, %v7034_v57  ;;  %v8144_v57 = vld [vmem:[%s10814_s11 + $0x1ac] sm:$0xf] }
 0xbed   :  { %4098 = vrot.lane.b32.xlu0 %v4093_v34, %s10870_s4  ;;  %v4191_v21 = vpop.f32.mrf.mxu1  ;;  %v8132_v34 = vld [vmem:[%s10814_s11 + $0x144] sm:$0xf0]  ;;  %4589 = vmatpush.bf16.msra.mxu1 %v7037_v62 }
 0xbee   :  { %v4216_v48 = vpack.c.bf16 %v4191_v21, %v4191_v21  ;;  %v8124_v21 = vld [vmem:[%s10814_s11 + $0x10c] sm:$0xf] }
 0xbf0   :  { %4220 = vrot.lane.b32.xlu1 %v4216_v48, %s10871_s5  ;;  %v7042_v48 = vld [vmem:[%s10814_s11 + $0x148] sm:$0xf0] }
 0xbf2   :  { %v4090_v22 = vpop.f32.mrf.mxu2 }
 0xbf3   :  { %v7041_v22 = vor.u32 %v8132_v34, %v7040_v27  ;;  %v7138_v27 = vld [vmem:[%s10814_s11 + $0x1e8] sm:$0xf0] }
 0xbf5   :  { %v4193_v55 = vpop.f32.mrf.mxu1  ;;  %4603 = vmatpush.bf16.msra.mxu2 %v7041_v22  ;;  %v8135_v22 = vld [vmem:[%s10814_s11 + $0x15c] sm:$0xf0] }
 0xbf6   :  { %v7045_v55 = vor.u32 %v8124_v21, %v7042_v48  ;;  %v7133_v21 = vor.u32 %v8143_v14, %v7130_v59  ;;  %v7064_v48 = vld [vmem:[%s10814_s11 + $0x120] sm:$0xf] }
 0xbf7   :  { %v8175_v14 = vld [vmem:[%s10816_s13 + $0x4a0] sm:$0xff] }
 0xbf8   :  { %4617 = vmatpush.bf16.msra.mxu3 %v7045_v55  ;;  %v8183_v59 = vld [vmem:[%s10816_s13 + $0x4e0] sm:$0xff] }
 0xbfa   :  { %v4212_v63 = vpop.f32.mrf.mxu2 }
 0xbfb   :  { %v4217_v32 = vpack.c.bf16 %v4212_v63, %v4212_v63 }
 0xbfd   :  { %4222 = vrot.lane.b32.xlu2 %v4217_v32, %s10871_s5  ;;  %v7112_v32 = vld [vmem:[%s10814_s11 + $0x190] sm:$0xf] }
 0xc02   :  { %v4214_v56 = vpop.f32.mrf.mxu2 }
 0xc03   :  { %v8149_v56 = vld [vmem:[%s10814_s11 + $0x1cc] sm:$0xf0] }
 0xc06   :  { %v3601_v0 = vpop.permute.xlu1 %3600 }
 0xc07   :  { %3606 = vst.msk [vmem:[#allocation2] sm:$0xf] %vm567_vm6, %v3601_v0  ;;  %v8141_v0 = vld [vmem:[%s10814_s11 + $0x194] sm:$0xf] }
 0xc16   :  { %v3725_v9 = vpop.permute.xlu0 %3724 }
 0xc17   :  { %3730 = vst.msk [vmem:[#allocation2] sm:$0xf] %vm692_vm7, %v3725_v9 }
 0xc1c   :  { %v3727_v2 = vpop.permute.xlu1 %3726 }
 0xc1d   :  { %3731 = vst.msk [vmem:[#allocation2 + $0x4] sm:$0xf] %vm692_vm7, %v3727_v2  ;;  %v7113_v2 = vor.u32 %v8149_v56, %v7112_v32  ;;  %v8127_v32 = vld [vmem:[%s10814_s11 + $0x124] sm:$0xf] }
 0xc1e   :  { %v7066_v56 = vld [vmem:[%s10814_s11 + $0x160] sm:$0xf0] }
 0xc1f   :  { %4630 = vmatpush.bf16.msrb.mxu0 %v7113_v2  ;;  %v8128_v2 = vld [vmem:[%s10814_s11 + $0x12c] sm:$0xf] }
 0xc26   :  { %v3849_v4 = vpop.permute.xlu0 %3848 }
 0xc27   :  { %3854 = vst.msk [vmem:[#allocation2] sm:$0xf] %vm817_vm8, %v3849_v4  ;;  %v7114_v4 = vld [vmem:[%s10814_s11 + $0x1d0] sm:$0xf0] }
 0xc2c   :  { %v3851_v1 = vpop.permute.xlu1 %3850 }
 0xc2d   :  { %3855 = vst.msk [vmem:[#allocation2 + $0x4] sm:$0xf] %vm817_vm8, %v3851_v1  ;;  %v7120_v1 = vld [vmem:[%s10814_s11 + $0x198] sm:$0xf] }
 0xc36   :  { %v3973_v26 = vpop.permute.xlu0 %3972 }
 0xc37   :  { %3978 = vst.msk [vmem:[#allocation2] sm:$0xf] %vm942_vm9, %v3973_v26  ;;  %v8150_v26 = vld [vmem:[%s10814_s11 + $0x1d4] sm:$0xf0] }
 0xc38   :  { %v7121_v8 = vor.u32 %v8150_v26, %v7120_v1  ;;  %v7065_v1 = vor.u32 %v8135_v22, %v7064_v48  ;;  %v7069_v26 = vor.u32 %v8127_v32, %v7066_v56  ;;  %v8173_v48 = vld [vmem:[%s10816_s13 + $0x490] sm:$0xff]  ;;  %v8156_v22 = vld [vmem:[%s10816_s13 + $0x408] sm:$0xff]  ;;  %v8155_v56 = vld [vmem:[%s10816_s13 + $0x400] sm:$0xff] }
 0xc39   :  { %v4097_v37 = vpop.permute.xlu2 %4096  ;;  %v8180_v32 = vld [vmem:[%s10816_s13 + $0x4c8] sm:$0xff] }
 0xc3a   :  { %4102 = vst.msk [vmem:[#allocation2] sm:$0xf] %vm10872_vm1, %v4097_v37  ;;  %v7117_v37 = vor.u32 %v8141_v0, %v7114_v4  ;;  %4658 = vmatpush.bf16.msrb.mxu2 %v7121_v8  ;;  %v7072_v0 = vld [vmem:[%s10814_s11 + $0x128] sm:$0xf]  ;;  %v7074_v4 = vld [vmem:[%s10814_s11 + $0x168] sm:$0xf0] }
 0xc3b   :  { %v7077_v8 = vor.u32 %v8128_v2, %v7074_v4  ;;  %v8202_v2 = vld [vmem:[%s10816_s13 + $0x578] sm:$0xff]  ;;  %v8171_v4 = vld [vmem:[%s10816_s13 + $0x480] sm:$0xff] }
 0xc3c   :  { %4644 = vmatpush.bf16.msrb.mxu1 %v7117_v37 }
 0xc4f   :  { %v3975_v18 = vpop.permute.xlu1 %3974 }
 0xc50   :  { %3979 = vst.msk [vmem:[#allocation2 + $0x4] sm:$0xf] %vm942_vm9, %v3975_v18  ;;  %v7122_v18 = vld [vmem:[%s10814_s11 + $0x1d8] sm:$0xf0] }
 0xc57   :  { %v4223_v54 = vpop.permute.xlu2 %4222 }
 0xc5f   :  { %v4099_v19 = vpop.permute.xlu0 %4098 }
 0xc60   :  { %4103 = vst.msk [vmem:[#allocation2 + $0x4] sm:$0xf] %vm10873_vm2, %v4099_v19  ;;  %v7048_v19 = vld [vmem:[%s10814_s11 + $0x110] sm:$0xf] }
 0xc61   :  { %4227 = vst.msk [vmem:[#allocation2 + $0x4] sm:$0xf] %vm10874_vm3, %v4223_v54 }
 0xc62   :  { %v4221_v45 = vpop.permute.xlu1 %4220 }
 0xc63   :  { %4226 = vst.msk [vmem:[#allocation2] sm:$0xf] %vm10875_vm4, %v4221_v45 }
 0xc6a   :  { %v8120_v51 = vld [vmem:[#allocation2] sm:$0xff] }
 0xc6b   :  { %6993 = vmatmul.msk.bf16.vlgmr.msrb.gmra.mxu3 %vm100_vm0, %v8120_v51  ;;  %v7125_v51 = vor.u32 %v8142_v41, %v7122_v18  ;;  %v7144_v41 = vld [vmem:[%s10814_s11 + $0x1b0] sm:$0xf] }
 0xc6c   :  { %v8153_v18 = vld [vmem:[%s10814_s11 + $0x1ec] sm:$0xf0] }
 0xc6d   :  { %4672 = vmatpush.bf16.msrb.mxu3 %v7125_v51  ;;  %v8154_v51 = vld [vmem:[%s10814_s11 + $0x1f4] sm:$0xf0] }
 0xcee   :  { %v4269_v42 = vpop.f32.mrf.mxu3 }
 0xcef   :  { %v4270_v43 = vadd.f32 %v8312_v24, %v4269_v42  ;;  %v8125_v42 = vld [vmem:[%s10814_s11 + $0x114] sm:$0xf] }
 0xcf1   :  { %v4274_v46 = vadd.f32 %v4270_v43, %v9729_v44 }
 0xcf3   :  { %v4280_v47 = vsel %vm100_vm0, %v4274_v46, 0.0 }
 0xcf4   :  { %4281 = vadd.xlane.f32.xlu0 %v4280_v47  ;;  %v7050_v47 = vld [vmem:[%s10814_s11 + $0x150] sm:$0xf0] }
 0xcf6   :  { %v4271_v33 = vpop.f32.mrf.mxu3 }
 0xcf7   :  { %v4272_v38 = vadd.f32 %v8312_v24, %v4271_v33  ;;  %v8133_v24 = vld [vmem:[%s10814_s11 + $0x14c] sm:$0xf0]  ;;  %v7056_v33 = vld [vmem:[%s10814_s11 + $0x118] sm:$0xf] }
 0xcf9   :  { %v4275_v6 = vadd.f32 %v4272_v38, %v9731_v13  ;;  %v8134_v38 = vld [vmem:[%s10814_s11 + $0x154] sm:$0xf0] }
 0xcfb   :  { %v4283_v17 = vsel %vm100_vm0, %v4275_v6, 0.0 }
 0xcfc   :  { %4284 = vadd.xlane.f32.xlu1 %v4283_v17  ;;  %v7057_v17 = vor.u32 %v8134_v38, %v7056_v33  ;;  %v8137_v33 = vld [vmem:[%s10814_s11 + $0x16c] sm:$0xf0] }
 0xcfe   :  { %4659 = vmatpush.bf16.msrb.mxu2 %v7057_v17  ;;  %v8129_v17 = vld [vmem:[%s10814_s11 + $0x134] sm:$0xf] }
 0xd67   :  { %v4282_v29 = vpop.xlane.xlu0 %4281 }
 0xd68   :  { %v4286_v30 = vmul.f32 %v4282_v29, %v9021_v58  ;;  %v8126_v29 = vld [vmem:[%s10814_s11 + $0x11c] sm:$0xf] }
 0xd6a   :  { %v10110_v3 = vsub.f32 %v4274_v46, %v4286_v30  ;;  %v7049_v46 = vor.u32 %v8133_v24, %v7048_v19  ;;  %v7058_v30 = vld [vmem:[%s10814_s11 + $0x158] sm:$0xf0]  ;;  %v8145_v19 = vld [vmem:[%s10814_s11 + $0x1b4] sm:$0xf] }
 0xd6b   :  { %v8146_v24 = vld [vmem:[%s10814_s11 + $0x1bc] sm:$0xf] }
 0xd6c   :  { %v4290_v5 = vmul.f32 %v10110_v3, %v10110_v3  ;;  %4631 = vmatpush.bf16.msrb.mxu0 %v7049_v46 }
 0xd6e   :  { %v4292_v44 = vsel %vm100_vm0, %v4290_v5, 0.0 }
 0xd6f   :  { %v4285_v36 = vpop.xlane.xlu1 %4284  ;;  %4293 = vadd.xlane.f32.xlu2 %v4292_v44  ;;  %v7061_v44 = vor.u32 %v8126_v29, %v7058_v30  ;;  %v7082_v29 = vld [vmem:[%s10814_s11 + $0x170] sm:$0xf0]  ;;  %v7088_v30 = vld [vmem:[%s10814_s11 + $0x138] sm:$0xf] }
 0xd70   :  { %v4287_v10 = vmul.f32 %v4285_v36, %v9021_v58 }
 0xd71   :  { %4673 = vmatpush.bf16.msrb.mxu3 %v7061_v44  ;;  %v8130_v44 = vld [vmem:[%s10814_s11 + $0x13c] sm:$0xf] }
 0xd72   :  { %v10116_v28 = vsub.f32 %v4275_v6, %v4287_v10  ;;  %v7053_v6 = vor.u32 %v8125_v42, %v7050_v47  ;;  %v7154_v42 = vld [vmem:[%s10814_s11 + $0x1f8] sm:$0xf0]  ;;  %v7080_v47 = vld [vmem:[%s10814_s11 + $0x130] sm:$0xf] }
 0xd74   :  { %v4291_v13 = vmul.f32 %v10116_v28, %v10116_v28  ;;  %4645 = vmatpush.bf16.msrb.mxu1 %v7053_v6  ;;  %v7157_v6 = vor.u32 %v8146_v24, %v7154_v42  ;;  %v8199_v24 = vld [vmem:[%s10816_s13 + $0x560] sm:$0xff]  ;;  %v8208_v42 = vld [vmem:[%s10816_s13 + $0x5a8] sm:$0xff] }
 0xd76   :  { %v4295_v7 = vsel %vm100_vm0, %v4291_v13, 0.0 }
 0xd77   :  { %4296 = vadd.xlane.f32.xlu2 %v4295_v7 }
 0xde2   :  { %v4294_v52 = vpop.xlane.xlu2 %4293 }
 0xde3   :  { %v4298_v53 = vmul.f32 %v4294_v52, %v9021_v58 }
 0xde5   :  { %v10155_v20 = vadd.f32 1e-05, %v4298_v53 }
 0xde7   :  { %8456 = vrsqrt.f32 %v10155_v20  ;;  %vm4308_vm6 = vweird.f32 %v10155_v20 }
 0xdea   :  { %v4297_v63 = vpop.xlane.xlu2 %4296 }
 0xdeb   :  { %v4299_v9 = vmul.f32 %v4297_v63, %v9021_v58  ;;  %v7141_v63 = vor.u32 %v8144_v57, %v7138_v27  ;;  %v8174_v57 = vld [vmem:[%s10816_s13 + $0x498] sm:$0xff] }
 0xdec   :  { %v8182_v27 = vld [vmem:[%s10816_s13 + $0x4d8] sm:$0xff] }
 0xded   :  { %v8457_v54 = vpop.eup %8456  ;;  %v4301_v45 = vadd.f32 1e-05, %v4299_v9  ;;  %v8136_v9 = vld [vmem:[%s10814_s11 + $0x164] sm:$0xf0] }
 0xdee   :  { %v4303_v43 = vmul.f32 %v8457_v54, %v10155_v20  ;;  %vm4309_vm5 = vweird.f32 %v8457_v54  ;;  %v7073_v37 = vor.u32 %v8136_v9, %v7072_v0  ;;  %v8163_v0 = vld [vmem:[%s10816_s13 + $0x440] sm:$0xff]  ;;  %v8194_v9 = vld [vmem:[%s10816_s13 + $0x538] sm:$0xff] }
 0xdef   :  { %8458 = vrsqrt.f32 %v4301_v45  ;;  %vm4310_vm7 = vmor %vm4308_vm6, %vm4309_vm5  ;;  %vm4318_vm9 = vweird.f32 %v4301_v45 }
 0xdf0   :  { %v4304_v5 = vmul.f32 %v8457_v54, %v4303_v43  ;;  %v7145_v43 = vor.u32 %v8153_v18, %v7144_v41  ;;  %v8201_v41 = vld [vmem:[%s10816_s13 + $0x570] sm:$0xff] }
 0xdf1   :  { %v8209_v18 = vld [vmem:[%s10816_s13 + $0x5b0] sm:$0xff] }
 0xdf2   :  { %v4305_v36 = vmul.f32 0.5, %v4304_v5  ;;  %v8138_v5 = vld [vmem:[%s10814_s11 + $0x174] sm:$0xf0] }
 0xdf4   :  { %v4306_v10 = vsub.f32 1.5, %v4305_v36  ;;  %v7090_v36 = vld [vmem:[%s10814_s11 + $0x178] sm:$0xf0] }
 0xdf5   :  { %v8459_v13 = vpop.eup %8458 }
 0xdf6   :  { %v4307_v7 = vmul.f32 %v8457_v54, %v4306_v10  ;;  %v4313_v31 = vmul.f32 %v8459_v13, %v4301_v45  ;;  %vm4319_vm8 = vweird.f32 %v8459_v13  ;;  %v7152_v45 = vld [vmem:[%s10814_s11 + $0x1b8] sm:$0xf]  ;;  %v7081_v10 = vor.u32 %v8137_v33, %v7080_v47  ;;  %v8207_v33 = vld [vmem:[%s10816_s13 + $0x5a0] sm:$0xff] }
 0xdf7   :  { %vm4320_vm10 = vmor %vm4318_vm9, %vm4319_vm8  ;;  %v7153_v38 = vor.u32 %v8154_v51, %v7152_v45  ;;  %v8200_v45 = vld [vmem:[%s10816_s13 + $0x568] sm:$0xff]  ;;  %v8191_v51 = vld [vmem:[%s10816_s13 + $0x520] sm:$0xff] }
 0xdf8   :  { %v4314_v11 = vmul.f32 %v8459_v13, %v4313_v31  ;;  %v4311_v39 = vsel %vm4310_vm7, %v8457_v54, %v4307_v7  ;;  %v7146_v54 = vld [vmem:[%s10814_s11 + $0x1f0] sm:$0xf0]  ;;  %v7089_v7 = vor.u32 %v8138_v5, %v7088_v30  ;;  %v7093_v31 = vor.u32 %v8130_v44, %v7090_v36  ;;  %v8198_v47 = vld [vmem:[%s10816_s13 + $0x558] sm:$0xff]  ;;  %v8188_v5 = vld [vmem:[%s10816_s13 + $0x508] sm:$0xff] }
 0xdf9   :  { %v4322_v12 = vmul.f32 %v4311_v39, %v10110_v3  ;;  %v8151_v3 = vld [vmem:[%s10814_s11 + $0x1dc] sm:$0xf0]  ;;  %v7149_v46 = vor.u32 %v8145_v19, %v7146_v54  ;;  %v8170_v39 = vld [vmem:[%s10816_s13 + $0x478] sm:$0xff]  ;;  %v8217_v19 = vld [vmem:[%s10816_s13 + $0x5f0] sm:$0xff] }
 0xdfa   :  { %v4315_v40 = vmul.f32 0.5, %v4314_v11  ;;  %v7129_v34 = vor.u32 %v8151_v3, %v7128_v50  ;;  %v8162_v11 = vld [vmem:[%s10816_s13 + $0x438] sm:$0xff]  ;;  %v8159_v50 = vld [vmem:[%s10816_s13 + $0x420] sm:$0xff]  ;;  %v8192_v54 = vld [vmem:[%s10816_s13 + $0x528] sm:$0xff] }
 0xdfb   :  { %v4327_v61 = vmul.f32 %v8313_v15, %v4322_v12  ;;  %v8169_v12 = vld [vmem:[%s10816_s13 + $0x470] sm:$0xff]  ;;  %v8167_v3 = vld [vmem:[%s10816_s13 + $0x460] sm:$0xff]  ;;  %v8214_v30 = vld [vmem:[%s10816_s13 + $0x5d8] sm:$0xff] }
 0xdfc   :  { %v4316_v35 = vsub.f32 1.5, %v4315_v40  ;;  %v8178_v40 = vld [vmem:[%s10816_s13 + $0x4b8] sm:$0xff]  ;;  %v8196_v44 = vld [vmem:[%s10816_s13 + $0x548] sm:$0xff]  ;;  %v8205_v36 = vld [vmem:[%s10816_s13 + $0x590] sm:$0xff] }
 0xdfd   :  { %v10247_v16 = vadd.f32 %v8314_v49, %v4327_v61  ;;  %v8168_v61 = vld [vmem:[%s10816_s13 + $0x468] sm:$0xff] }
 0xdfe   :  { %v4317_v52 = vmul.f32 %v8459_v13, %v4316_v35  ;;  %v8186_v35 = vld [vmem:[%s10816_s13 + $0x4f8] sm:$0xff] }
 0xe00   :  { %v4321_v60 = vsel %vm4320_vm10, %v8459_v13, %v4317_v52  ;;  %v7085_v13 = vor.u32 %v8129_v17, %v7082_v29  ;;  %v8177_v52 = vld [vmem:[%s10816_s13 + $0x4b0] sm:$0xff]  ;;  %v8206_v29 = vld [vmem:[%s10816_s13 + $0x598] sm:$0xff] }
 0xe01   :  { %v4323_v23 = vmul.f32 %v4321_v60, %v10116_v28  ;;  %v7136_v28 = vld [vmem:[%s10814_s11 + $0x1a8] sm:$0xf]  ;;  %v8185_v60 = vld [vmem:[%s10816_s13 + $0x4f0] sm:$0xff] }
 0xe02   :  { %v7137_v55 = vor.u32 %v8152_v25, %v7136_v28  ;;  %v8158_v28 = vld [vmem:[%s10816_s13 + $0x418] sm:$0xff]  ;;  %v8197_v17 = vld [vmem:[%s10816_s13 + $0x550] sm:$0xff] }
 0xe03   :  { %v4328_v53 = vmul.f32 %v8313_v15, %v4323_v23  ;;  %v8161_v15 = vld [vmem:[%s10816_s13 + $0x430] sm:$0xff]  ;;  %v8176_v23 = vld [vmem:[%s10816_s13 + $0x4a8] sm:$0xff]  ;;  %v8166_v25 = vld [vmem:[%s10816_s13 + $0x458] sm:$0xff] }
 0xe05   :  { %v10249_v20 = vadd.f32 %v8314_v49, %v4328_v53  ;;  %v8160_v49 = vld [vmem:[%s10816_s13 + $0x428] sm:$0xff] }
 0xe06   :  { %v8184_v53 = vld [vmem:[%s10816_s13 + $0x4e8] sm:$0xff] }
 0xe07   :  { %v10262_v62 = vpack.c.bf16 %v10249_v20, %v10247_v16 }
 0xe09   :  { %7158 = vmatmul.msk.bf16.vlgmr.msra.gmra.mxu0 %vm100_vm0, %v10262_v62  ;;  %7159 = vmatmul.msk.bf16.vlgmr.msra.gmra.mxu1 %vm100_vm0, %v10262_v62 }
 0xe0a   :  { %7160 = vmatmul.msk.bf16.vlgmr.msra.gmra.mxu2 %vm100_vm0, %v10262_v62  ;;  %7161 = vmatmul.msk.bf16.vlgmr.msra.gmra.mxu3 %vm100_vm0, %v10262_v62 }
 0xe0b   :  { %4686 = vmatpush.bf16.msra.mxu0 %v7129_v34  ;;  %4700 = vmatpush.bf16.msra.mxu1 %v7133_v21  ;;  %v8157_v34 = vld [vmem:[%s10816_s13 + $0x410] sm:$0xff] }
 0xe0c   :  { %4714 = vmatpush.bf16.msra.mxu2 %v7137_v55  ;;  %4728 = vmatpush.bf16.msra.mxu3 %v7141_v63  ;;  %v8165_v21 = vld [vmem:[%s10816_s13 + $0x450] sm:$0xff]  ;;  %v8164_v55 = vld [vmem:[%s10816_s13 + $0x448] sm:$0xff] }
 0xe0d   :  { %v8172_v63 = vld [vmem:[%s10816_s13 + $0x488] sm:$0xff] }
 0xe0f   :  { %4687 = vmatpush.bf16.msra.mxu0 %v7065_v1  ;;  %4701 = vmatpush.bf16.msra.mxu1 %v7069_v26  ;;  %v8179_v1 = vld [vmem:[%s10816_s13 + $0x4c0] sm:$0xff]  ;;  %v8210_v26 = vld [vmem:[%s10816_s13 + $0x5b8] sm:$0xff] }
 0xe10   :  { %4715 = vmatpush.bf16.msra.mxu2 %v7073_v37  ;;  %4729 = vmatpush.bf16.msra.mxu3 %v7077_v8  ;;  %v8218_v37 = vld [vmem:[%s10816_s13 + $0x5f8] sm:$0xff]  ;;  %v8193_v8 = vld [vmem:[%s10816_s13 + $0x530] sm:$0xff] }
 0xe19   :  { %7162 = vmatmul.msk.bf16.vlgmr.msrb.gmra.mxu0 %vm100_vm0, %v10262_v62  ;;  %7163 = vmatmul.msk.bf16.vlgmr.msrb.gmra.mxu1 %vm100_vm0, %v10262_v62 }
 0xe1a   :  { %7164 = vmatmul.msk.bf16.vlgmr.msrb.gmra.mxu2 %vm100_vm0, %v10262_v62  ;;  %7165 = vmatmul.msk.bf16.vlgmr.msrb.gmra.mxu3 %vm100_vm0, %v10262_v62 }
 0xe1b   :  { %4742 = vmatpush.bf16.msrb.mxu0 %v7145_v43  ;;  %4756 = vmatpush.bf16.msrb.mxu1 %v7149_v46  ;;  %v8216_v43 = vld [vmem:[%s10816_s13 + $0x5e8] sm:$0xff]  ;;  %v8190_v46 = vld [vmem:[%s10816_s13 + $0x518] sm:$0xff] }
 0xe1c   :  { %4770 = vmatpush.bf16.msrb.mxu2 %v7153_v38  ;;  %4784 = vmatpush.bf16.msrb.mxu3 %v7157_v6  ;;  %v8215_v38 = vld [vmem:[%s10816_s13 + $0x5e0] sm:$0xff]  ;;  %v8189_v6 = vld [vmem:[%s10816_s13 + $0x510] sm:$0xff] }
 0xe1f   :  { %4743 = vmatpush.bf16.msrb.mxu0 %v7081_v10  ;;  %4757 = vmatpush.bf16.msrb.mxu1 %v7085_v13  ;;  %v8213_v10 = vld [vmem:[%s10816_s13 + $0x5d0] sm:$0xff]  ;;  %v8187_v13 = vld [vmem:[%s10816_s13 + $0x500] sm:$0xff] }
 0xe20   :  { %4771 = vmatpush.bf16.msrb.mxu2 %v7089_v7  ;;  %4785 = vmatpush.bf16.msrb.mxu3 %v7093_v31  ;;  %v8195_v7 = vld [vmem:[%s10816_s13 + $0x540] sm:$0xff]  ;;  %v8204_v31 = vld [vmem:[%s10816_s13 + $0x588] sm:$0xff] }
 0xe29   :  { %7166 = vmatmul.msk.bf16.vlgmr.msra.gmra.mxu0 %vm100_vm0, %v10262_v62  ;;  %7167 = vmatmul.msk.bf16.vlgmr.msra.gmra.mxu1 %vm100_vm0, %v10262_v62 }
 0xe2a   :  { %7168 = vmatmul.msk.bf16.vlgmr.msra.gmra.mxu2 %vm100_vm0, %v10262_v62  ;;  %7169 = vmatmul.msk.bf16.vlgmr.msra.gmra.mxu3 %vm100_vm0, %v10262_v62 }
 0xe2b   :  { %5870 = vmatpush.bf16.msra.mxu0 %v8162_v11  ;;  %5884 = vmatpush.bf16.msra.mxu1 %v8170_v39  ;;  %v8212_v11 = vld [vmem:[%s10816_s13 + $0x5c8] sm:$0xff]  ;;  %v8203_v39 = vld [vmem:[%s10816_s13 + $0x580] sm:$0xff] }
 0xe2c   :  { %5898 = vmatpush.bf16.msra.mxu2 %v8178_v40  ;;  %5912 = vmatpush.bf16.msra.mxu3 %v8186_v35  ;;  %v8211_v40 = vld [vmem:[%s10816_s13 + $0x5c0] sm:$0xff]  ;;  %v10563_v35 = vld [vmem:[%s10815_s12 + $0x10] sm:$0xff] }
 0xe2f   :  { %5871 = vmatpush.bf16.msra.mxu0 %v8161_v15  ;;  %5885 = vmatpush.bf16.msra.mxu1 %v8169_v12 }
 0xe30   :  { %5899 = vmatpush.bf16.msra.mxu2 %v8177_v52  ;;  %5913 = vmatpush.bf16.msra.mxu3 %v8185_v60  ;;  %v4373_v52 = vperm.slane %v10563_v35, 0  ;;  %v4374_v60 = vperm.slane %v10563_v35, 1 }
 0xe33   :  { %5872 = vmatpush.bf16.msra.mxu0 %v8160_v49  ;;  %5886 = vmatpush.bf16.msra.mxu1 %v8168_v61 }
 0xe34   :  { %5900 = vmatpush.bf16.msra.mxu2 %v8176_v23  ;;  %5914 = vmatpush.bf16.msra.mxu3 %v8184_v53 }
 0xe37   :  { %5873 = vmatpush.bf16.msra.mxu0 %v8159_v50  ;;  %5887 = vmatpush.bf16.msra.mxu1 %v8167_v3 }
 0xe38   :  { %5901 = vmatpush.bf16.msra.mxu2 %v8175_v14  ;;  %5915 = vmatpush.bf16.msra.mxu3 %v8183_v59 }
 0xe39   :  { %7170 = vmatmul.msk.bf16.vlgmr.msrb.gmra.mxu0 %vm100_vm0, %v10262_v62  ;;  %7171 = vmatmul.msk.bf16.vlgmr.msrb.gmra.mxu1 %vm100_vm0, %v10262_v62 }
 0xe3a   :  { %7172 = vmatmul.msk.bf16.vlgmr.msrb.gmra.mxu2 %vm100_vm0, %v10262_v62  ;;  %7173 = vmatmul.msk.bf16.vlgmr.msrb.gmra.mxu3 %vm100_vm0, %v10262_v62  ;;  %v8181_v62 = vld [vmem:[%s10816_s13 + $0x4d0] sm:$0xff] }
 0xe3b   :  { %5874 = vmatpush.bf16.msra.mxu0 %v8158_v28  ;;  %5888 = vmatpush.bf16.msra.mxu1 %v8166_v25  ;;  %v4375_v28 = vperm.slane %v10563_v35, 2  ;;  %v4376_v25 = vperm.slane %v10563_v35, 3 }
 0xe3c   :  { %5902 = vmatpush.bf16.msra.mxu2 %v8174_v57  ;;  %5916 = vmatpush.bf16.msra.mxu3 %v8182_v27 }
 0xe3f   :  { %5875 = vmatpush.bf16.msra.mxu0 %v8157_v34  ;;  %5889 = vmatpush.bf16.msra.mxu1 %v8165_v21 }
 0xe40   :  { %5903 = vmatpush.bf16.msra.mxu2 %v8173_v48  ;;  %5917 = vmatpush.bf16.msra.mxu3 %v8181_v62  ;;  %v8226_v48 = vld [vmem:[%s10816_s13 + $0x638] sm:$0xff] }
 0xe41   :  { %v8234_v62 = vld [vmem:[%s10816_s13 + $0x678] sm:$0xff] }
 0xe43   :  { %5876 = vmatpush.bf16.msra.mxu0 %v8156_v22  ;;  %5890 = vmatpush.bf16.msra.mxu1 %v8164_v55 }
 0xe44   :  { %5904 = vmatpush.bf16.msra.mxu2 %v8172_v63  ;;  %5918 = vmatpush.bf16.msra.mxu3 %v8180_v32 }
 0xe47   :  { %5877 = vmatpush.bf16.msra.mxu0 %v8155_v56  ;;  %5891 = vmatpush.bf16.msra.mxu1 %v8163_v0 }
 0xe48   :  { %5905 = vmatpush.bf16.msra.mxu2 %v8171_v4  ;;  %5919 = vmatpush.bf16.msra.mxu3 %v8179_v1 }
 0xe4b   :  { %5926 = vmatpush.bf16.msrb.mxu0 %v8194_v9  ;;  %5940 = vmatpush.bf16.msrb.mxu1 %v8202_v2 }
 0xe4c   :  { %5954 = vmatpush.bf16.msrb.mxu2 %v8210_v26  ;;  %5968 = vmatpush.bf16.msrb.mxu3 %v8218_v37  ;;  %v8225_v26 = vld [vmem:[%s10816_s13 + $0x630] sm:$0xff] }
 0xe4d   :  { %v8233_v37 = vld [vmem:[%s10816_s13 + $0x670] sm:$0xff] }
 0xe4f   :  { %5927 = vmatpush.bf16.msrb.mxu0 %v8193_v8  ;;  %5941 = vmatpush.bf16.msrb.mxu1 %v8201_v41 }
 0xe50   :  { %5955 = vmatpush.bf16.msrb.mxu2 %v8209_v18  ;;  %5969 = vmatpush.bf16.msrb.mxu3 %v8217_v19 }
 0xe53   :  { %5928 = vmatpush.bf16.msrb.mxu0 %v8192_v54  ;;  %5942 = vmatpush.bf16.msrb.mxu1 %v8200_v45  ;;  %v4377_v54 = vperm.slane %v10563_v35, 4  ;;  %v4378_v45 = vperm.slane %v10563_v35, 5 }
 0xe54   :  { %5956 = vmatpush.bf16.msrb.mxu2 %v8208_v42  ;;  %5970 = vmatpush.bf16.msrb.mxu3 %v8216_v43 }
 0xe57   :  { %5929 = vmatpush.bf16.msrb.mxu0 %v8191_v51  ;;  %5943 = vmatpush.bf16.msrb.mxu1 %v8199_v24  ;;  %v8242_v51 = vld [vmem:[%s10816_s13 + $0x6b8] sm:$0xff] }
 0xe58   :  { %5957 = vmatpush.bf16.msrb.mxu2 %v8207_v33  ;;  %5971 = vmatpush.bf16.msrb.mxu3 %v8215_v38  ;;  %v8250_v24 = vld [vmem:[%s10816_s13 + $0x6f8] sm:$0xff] }
 0xe5b   :  { %5930 = vmatpush.bf16.msrb.mxu0 %v8190_v46  ;;  %5944 = vmatpush.bf16.msrb.mxu1 %v8198_v47  ;;  %v8224_v46 = vld [vmem:[%s10816_s13 + $0x628] sm:$0xff] }
 0xe5c   :  { %5958 = vmatpush.bf16.msrb.mxu2 %v8206_v29  ;;  %5972 = vmatpush.bf16.msrb.mxu3 %v8214_v30  ;;  %v8232_v47 = vld [vmem:[%s10816_s13 + $0x668] sm:$0xff]  ;;  %v8241_v29 = vld [vmem:[%s10816_s13 + $0x6b0] sm:$0xff] }
 0xe5d   :  { %v8249_v30 = vld [vmem:[%s10816_s13 + $0x6f0] sm:$0xff] }
 0xe5f   :  { %5931 = vmatpush.bf16.msrb.mxu0 %v8189_v6  ;;  %5945 = vmatpush.bf16.msrb.mxu1 %v8197_v17 }
 0xe60   :  { %5959 = vmatpush.bf16.msrb.mxu2 %v8205_v36  ;;  %5973 = vmatpush.bf16.msrb.mxu3 %v8213_v10  ;;  %v8223_v36 = vld [vmem:[%s10816_s13 + $0x620] sm:$0xff] }
 0xe61   :  { %v8231_v10 = vld [vmem:[%s10816_s13 + $0x660] sm:$0xff] }
 0xe63   :  { %5932 = vmatpush.bf16.msrb.mxu0 %v8188_v5  ;;  %5946 = vmatpush.bf16.msrb.mxu1 %v8196_v44 }
 0xe64   :  { %5960 = vmatpush.bf16.msrb.mxu2 %v8204_v31  ;;  %5974 = vmatpush.bf16.msrb.mxu3 %v8212_v11  ;;  %v4379_v31 = vperm.slane %v10563_v35, 6  ;;  %v4380_v11 = vperm.slane %v10563_v35, 7  ;;  %v8222_v35 = vld [vmem:[%s10816_s13 + $0x618] sm:$0xff] }
 0xe67   :  { %5933 = vmatpush.bf16.msrb.mxu0 %v8187_v13  ;;  %5947 = vmatpush.bf16.msrb.mxu1 %v8195_v7 }
 0xe68   :  { %5961 = vmatpush.bf16.msrb.mxu2 %v8203_v39  ;;  %5975 = vmatpush.bf16.msrb.mxu3 %v8211_v40 }
 0xe86   :  { %v4577_v15 = vpop.f32.mrf.mxu0  ;;  %v4591_v12 = vpop.f32.mrf.mxu1 }
 0xe87   :  { %v4578_v49 = vadd.f32 %v4577_v15, %v4373_v52  ;;  %v4592_v61 = vadd.f32 %v4591_v12, %v4374_v60 }
 0xe89   :  { %v4792_v57 = vmax.f32 %v4578_v49, 0.0  ;;  %v4793_v27 = vmax.f32 %v4592_v61, 0.0 }
 0xe8d   :  { %v4605_v23 = vpop.f32.mrf.mxu2  ;;  %v4619_v53 = vpop.f32.mrf.mxu3 }
 0xe8e   :  { %v4579_v50 = vpop.f32.mrf.mxu0  ;;  %v4593_v3 = vpop.f32.mrf.mxu1  ;;  %v4606_v63 = vadd.f32 %v4605_v23, %v4375_v28  ;;  %v4620_v32 = vadd.f32 %v4619_v53, %v4376_v25  ;;  %v8230_v23 = vld [vmem:[%s10816_s13 + $0x658] sm:$0xff] }
 0xe8f   :  { %v4580_v14 = vadd.f32 %v4579_v50, %v4373_v52  ;;  %v4594_v59 = vadd.f32 %v4593_v3, %v4374_v60  ;;  %v8240_v52 = vld [vmem:[%s10816_s13 + $0x6a8] sm:$0xff] }
 0xe90   :  { %v4794_v8 = vmax.f32 %v4606_v63, 0.0  ;;  %v4795_v41 = vmax.f32 %v4620_v32, 0.0  ;;  %v8248_v60 = vld [vmem:[%s10816_s13 + $0x6e8] sm:$0xff] }
 0xe91   :  { %v4808_v34 = vmax.f32 %v4580_v14, 0.0  ;;  %v4809_v21 = vmax.f32 %v4594_v59, 0.0  ;;  %v8239_v59 = vld [vmem:[%s10816_s13 + $0x6a0] sm:$0xff] }
 0xe93   :  { %v5081_v22 = vpack.c.bf16 %v4808_v34, %v4792_v57  ;;  %v5082_v55 = vpack.c.bf16 %v4809_v21, %v4793_v27  ;;  %v10630_v27 = vld [vmem:[%s10815_s12 + $0x18] sm:$0xff] }
 0xe95   :  { %v4607_v56 = vpop.f32.mrf.mxu2  ;;  %v4621_v0 = vpop.f32.mrf.mxu3  ;;  %5878 = vmatmul.bf16.vlgmr.msra.gmra.mxu0 %v5081_v22  ;;  %5892 = vmatmul.bf16.vlgmr.msra.gmra.mxu1 %v5082_v55 }
 0xe96   :  { %v4608_v9 = vadd.f32 %v4607_v56, %v4375_v28  ;;  %v4622_v2 = vadd.f32 %v4621_v0, %v4376_v25  ;;  %5982 = vmatpush.bf16.msra.mxu0 %v8226_v48  ;;  %5996 = vmatpush.bf16.msra.mxu1 %v8234_v62  ;;  %v4633_v4 = vpop.f32.mrf.mxu0  ;;  %v4647_v1 = vpop.f32.mrf.mxu1  ;;  %v8247_v28 = vld [vmem:[%s10816_s13 + $0x6e0] sm:$0xff]  ;;  %v8221_v48 = vld [vmem:[%s10816_s13 + $0x610] sm:$0xff]  ;;  %v4381_v56 = vperm.slane %v10630_v27, 0  ;;  %v4382_v0 = vperm.slane %v10630_v27, 1 }
 0xe97   :  { %v4634_v33 = vadd.f32 %v4633_v4, %v4377_v54  ;;  %v4648_v38 = vadd.f32 %v4647_v1, %v4378_v45  ;;  %v8229_v62 = vld [vmem:[%s10816_s13 + $0x650] sm:$0xff] }
 0xe98   :  { %v4810_v18 = vmax.f32 %v4608_v9, 0.0  ;;  %v4811_v19 = vmax.f32 %v4622_v2, 0.0  ;;  %v8238_v9 = vld [vmem:[%s10816_s13 + $0x698] sm:$0xff] }
 0xe99   :  { %v4796_v39 = vmax.f32 %v4634_v33, 0.0  ;;  %v4797_v40 = vmax.f32 %v4648_v38, 0.0  ;;  %v8246_v2 = vld [vmem:[%s10816_s13 + $0x6d8] sm:$0xff]  ;;  %v4383_v33 = vperm.slane %v10630_v27, 2  ;;  %v4384_v38 = vperm.slane %v10630_v27, 3 }
 0xe9a   :  { %v5083_v42 = vpack.c.bf16 %v4810_v18, %v4794_v8  ;;  %v5084_v43 = vpack.c.bf16 %v4811_v19, %v4795_v41  ;;  %5983 = vmatpush.bf16.msra.mxu0 %v8225_v26  ;;  %5997 = vmatpush.bf16.msra.mxu1 %v8233_v37  ;;  %v8220_v26 = vld [vmem:[%s10816_s13 + $0x608] sm:$0xff] }
 0xe9b   :  { %v8228_v37 = vld [vmem:[%s10816_s13 + $0x648] sm:$0xff] }
 0xe9c   :  { %5906 = vmatmul.bf16.vlgmr.msra.gmra.mxu2 %v5083_v42  ;;  %5920 = vmatmul.bf16.vlgmr.msra.gmra.mxu3 %v5084_v43 }
 0xe9d   :  { %6010 = vmatpush.bf16.msra.mxu2 %v8242_v51  ;;  %6024 = vmatpush.bf16.msra.mxu3 %v8250_v24  ;;  %v4661_v6 = vpop.f32.mrf.mxu2  ;;  %v4675_v17 = vpop.f32.mrf.mxu3 }
 0xe9e   :  { %5984 = vmatpush.bf16.msra.mxu0 %v8224_v46  ;;  %5998 = vmatpush.bf16.msra.mxu1 %v8232_v47  ;;  %v4635_v5 = vpop.f32.mrf.mxu0  ;;  %v4649_v44 = vpop.f32.mrf.mxu1  ;;  %v4662_v53 = vadd.f32 %v4661_v6, %v4379_v31  ;;  %v4676_v50 = vadd.f32 %v4675_v17, %v4380_v11  ;;  %v8219_v46 = vld [vmem:[%s10816_s13 + $0x600] sm:$0xff]  ;;  %v8258_v6 = vld [vmem:[%s10816_s13 + $0x738] sm:$0xff] }
 0xe9f   :  { %v4636_v13 = vadd.f32 %v4635_v5, %v4377_v54  ;;  %v4650_v7 = vadd.f32 %v4649_v44, %v4378_v45  ;;  %v8237_v54 = vld [vmem:[%s10816_s13 + $0x690] sm:$0xff]  ;;  %v8227_v47 = vld [vmem:[%s10816_s13 + $0x640] sm:$0xff]  ;;  %v8266_v17 = vld [vmem:[%s10816_s13 + $0x778] sm:$0xff] }
 0xea0   :  { %v4798_v22 = vmax.f32 %v4662_v53, 0.0  ;;  %v4799_v55 = vmax.f32 %v4676_v50, 0.0  ;;  %v8245_v45 = vld [vmem:[%s10816_s13 + $0x6d0] sm:$0xff] }
 0xea1   :  { %v4812_v15 = vmax.f32 %v4636_v13, 0.0  ;;  %v4813_v12 = vmax.f32 %v4650_v7, 0.0  ;;  %6011 = vmatpush.bf16.msra.mxu2 %v8241_v29  ;;  %6025 = vmatpush.bf16.msra.mxu3 %v8249_v30 }
 0xea2   :  { %5985 = vmatpush.bf16.msra.mxu0 %v8223_v36  ;;  %5999 = vmatpush.bf16.msra.mxu1 %v8231_v10  ;;  %v8236_v36 = vld [vmem:[%s10816_s13 + $0x688] sm:$0xff] }
 0xea3   :  { %v5085_v49 = vpack.c.bf16 %v4812_v15, %v4796_v39  ;;  %v5086_v61 = vpack.c.bf16 %v4813_v12, %v4797_v40  ;;  %v8244_v10 = vld [vmem:[%s10816_s13 + $0x6c8] sm:$0xff]  ;;  %v8257_v39 = vld [vmem:[%s10816_s13 + $0x730] sm:$0xff] }
 0xea4   :  { %v8265_v40 = vld [vmem:[%s10816_s13 + $0x770] sm:$0xff] }
 0xea5   :  { %6012 = vmatpush.bf16.msra.mxu2 %v8240_v52  ;;  %6026 = vmatpush.bf16.msra.mxu3 %v8248_v60  ;;  %v4663_v3 = vpop.f32.mrf.mxu2  ;;  %v4677_v14 = vpop.f32.mrf.mxu3  ;;  %v8235_v52 = vld [vmem:[%s10816_s13 + $0x680] sm:$0xff] }
 0xea6   :  { %v4664_v25 = vadd.f32 %v4663_v3, %v4379_v31  ;;  %v4678_v57 = vadd.f32 %v4677_v14, %v4380_v11  ;;  %5934 = vmatmul.bf16.vlgmr.msrb.gmra.mxu0 %v5085_v49  ;;  %5948 = vmatmul.bf16.vlgmr.msrb.gmra.mxu1 %v5086_v61  ;;  %v4689_v34 = vpop.f32.mrf.mxu0  ;;  %v4703_v21 = vpop.f32.mrf.mxu1  ;;  %v8243_v60 = vld [vmem:[%s10816_s13 + $0x6c0] sm:$0xff] }
 0xea7   :  { %5986 = vmatpush.bf16.msra.mxu0 %v8222_v35  ;;  %6000 = vmatpush.bf16.msra.mxu1 %v8230_v23  ;;  %v4690_v8 = vadd.f32 %v4689_v34, %v4381_v56  ;;  %v4704_v41 = vadd.f32 %v4703_v21, %v4382_v0  ;;  %v8274_v35 = vld [vmem:[%s10816_s13 + $0x7b8] sm:$0xff]  ;;  %v8273_v34 = vld [vmem:[%s10816_s13 + $0x7b0] sm:$0xff] }
 0xea8   :  { %v4814_v63 = vmax.f32 %v4664_v25, 0.0  ;;  %v4815_v32 = vmax.f32 %v4678_v57, 0.0  ;;  %v8282_v23 = vld [vmem:[%s10816_s13 + $0x7f8] sm:$0xff]  ;;  %v8281_v21 = vld [vmem:[%s10816_s13 + $0x7f0] sm:$0xff] }
 0xea9   :  { %6013 = vmatpush.bf16.msra.mxu2 %v8239_v59  ;;  %6027 = vmatpush.bf16.msra.mxu3 %v8247_v28  ;;  %v4800_v29 = vmax.f32 %v4690_v8, 0.0  ;;  %v4801_v30 = vmax.f32 %v4704_v41, 0.0  ;;  %v8256_v59 = vld [vmem:[%s10816_s13 + $0x728] sm:$0xff] }
 0xeaa   :  { %v5087_v4 = vpack.c.bf16 %v4814_v63, %v4798_v22  ;;  %v5088_v1 = vpack.c.bf16 %v4815_v32, %v4799_v55  ;;  %v8264_v28 = vld [vmem:[%s10816_s13 + $0x768] sm:$0xff]  ;;  %v8255_v22 = vld [vmem:[%s10816_s13 + $0x720] sm:$0xff] }
 0xeab   :  { %5987 = vmatpush.bf16.msra.mxu0 %v8221_v48  ;;  %6001 = vmatpush.bf16.msra.mxu1 %v8229_v62  ;;  %v8263_v55 = vld [vmem:[%s10816_s13 + $0x760] sm:$0xff]  ;;  %v8272_v63 = vld [vmem:[%s10816_s13 + $0x7a8] sm:$0xff] }
 0xeac   :  { %5962 = vmatmul.bf16.vlgmr.msrb.gmra.mxu2 %v5087_v4  ;;  %5976 = vmatmul.bf16.vlgmr.msrb.gmra.mxu3 %v5088_v1  ;;  %v8280_v32 = vld [vmem:[%s10816_s13 + $0x7e8] sm:$0xff]  ;;  %v8271_v4 = vld [vmem:[%s10816_s13 + $0x7a0] sm:$0xff] }
 0xead   :  { %6014 = vmatpush.bf16.msra.mxu2 %v8238_v9  ;;  %6028 = vmatpush.bf16.msra.mxu3 %v8246_v2  ;;  %v4717_v18 = vpop.f32.mrf.mxu2  ;;  %v4731_v19 = vpop.f32.mrf.mxu3  ;;  %v8279_v1 = vld [vmem:[%s10816_s13 + $0x7e0] sm:$0xff] }
 0xeae   :  { %v4691_v51 = vpop.f32.mrf.mxu0  ;;  %v4705_v24 = vpop.f32.mrf.mxu1  ;;  %v4718_v31 = vadd.f32 %v4717_v18, %v4383_v33  ;;  %v4732_v11 = vadd.f32 %v4731_v19, %v4384_v38  ;;  %v8270_v18 = vld [vmem:[%s10816_s13 + $0x798] sm:$0xff] }
 0xeaf   :  { %5988 = vmatpush.bf16.msra.mxu0 %v8220_v26  ;;  %6002 = vmatpush.bf16.msra.mxu1 %v8228_v37  ;;  %v4692_v42 = vadd.f32 %v4691_v51, %v4381_v56  ;;  %v4706_v43 = vadd.f32 %v4705_v24, %v4382_v0  ;;  %v8254_v56 = vld [vmem:[%s10816_s13 + $0x718] sm:$0xff]  ;;  %v8253_v26 = vld [vmem:[%s10816_s13 + $0x710] sm:$0xff]  ;;  %v8252_v51 = vld [vmem:[%s10816_s13 + $0x708] sm:$0xff] }
 0xeb0   :  { %v4802_v53 = vmax.f32 %v4718_v31, 0.0  ;;  %v4803_v50 = vmax.f32 %v4732_v11, 0.0  ;;  %v8262_v0 = vld [vmem:[%s10816_s13 + $0x758] sm:$0xff]  ;;  %v8261_v37 = vld [vmem:[%s10816_s13 + $0x750] sm:$0xff]  ;;  %v8260_v24 = vld [vmem:[%s10816_s13 + $0x748] sm:$0xff] }
 0xeb1   :  { %v4816_v5 = vmax.f32 %v4692_v42, 0.0  ;;  %v4817_v44 = vmax.f32 %v4706_v43, 0.0  ;;  %6015 = vmatpush.bf16.msra.mxu2 %v8237_v54  ;;  %6029 = vmatpush.bf16.msra.mxu3 %v8245_v45  ;;  %v8278_v19 = vld [vmem:[%s10816_s13 + $0x7d8] sm:$0xff]  ;;  %v4385_v54 = vperm.slane %v10630_v27, 4  ;;  %v4386_v45 = vperm.slane %v10630_v27, 5 }
 0xeb3   :  { %v5089_v13 = vpack.c.bf16 %v4816_v5, %v4800_v29  ;;  %v5090_v7 = vpack.c.bf16 %v4817_v44, %v4801_v30  ;;  %5989 = vmatpush.bf16.msra.mxu0 %v8219_v46  ;;  %6003 = vmatpush.bf16.msra.mxu1 %v8227_v47  ;;  %v8269_v46 = vld [vmem:[%s10816_s13 + $0x790] sm:$0xff]  ;;  %v8251_v29 = vld [vmem:[%s10816_s13 + $0x700] sm:$0xff]  ;;  %v4387_v5 = vperm.slane %v10630_v27, 6  ;;  %v4388_v44 = vperm.slane %v10630_v27, 7 }
 0xeb4   :  { %v8277_v47 = vld [vmem:[%s10816_s13 + $0x7d0] sm:$0xff]  ;;  %v8259_v30 = vld [vmem:[%s10816_s13 + $0x740] sm:$0xff] }
 0xeb5   :  { %6016 = vmatpush.bf16.msra.mxu2 %v8236_v36  ;;  %6030 = vmatpush.bf16.msra.mxu3 %v8244_v10  ;;  %v4719_v15 = vpop.f32.mrf.mxu2  ;;  %v4733_v12 = vpop.f32.mrf.mxu3 }
 0xeb6   :  { %v4720_v49 = vadd.f32 %v4719_v15, %v4383_v33  ;;  %v4734_v61 = vadd.f32 %v4733_v12, %v4384_v38  ;;  %5990 = vmatmul.bf16.vlgmr.msra.gmra.mxu0 %v5089_v13  ;;  %6004 = vmatmul.bf16.vlgmr.msra.gmra.mxu1 %v5090_v7  ;;  %v4745_v48 = vpop.f32.mrf.mxu0  ;;  %v4759_v62 = vpop.f32.mrf.mxu1  ;;  %v8268_v13 = vld [vmem:[%s10816_s13 + $0x788] sm:$0xff] }
 0xeb7   :  { %6038 = vmatpush.bf16.msrb.mxu0 %v8258_v6  ;;  %6052 = vmatpush.bf16.msrb.mxu1 %v8266_v17  ;;  %v4746_v33 = vadd.f32 %v4745_v48, %v4385_v54  ;;  %v4760_v38 = vadd.f32 %v4759_v62, %v4386_v45  ;;  %v8276_v7 = vld [vmem:[%s10816_s13 + $0x7c8] sm:$0xff] }
 0xeb8   :  { %v4818_v3 = vmax.f32 %v4720_v49, 0.0  ;;  %v4819_v14 = vmax.f32 %v4734_v61, 0.0  ;;  %v8275_v49 = vld [vmem:[%s10816_s13 + $0x7c0] sm:$0xff] }
 0xeb9   :  { %6017 = vmatpush.bf16.msra.mxu2 %v8235_v52  ;;  %6031 = vmatpush.bf16.msra.mxu3 %v8243_v60  ;;  %v4804_v31 = vmax.f32 %v4746_v33, 0.0  ;;  %v4805_v11 = vmax.f32 %v4760_v38, 0.0  ;;  %v8267_v60 = vld [vmem:[%s10816_s13 + $0x780] sm:$0xff] }
 0xeba   :  { %v5091_v25 = vpack.c.bf16 %v4818_v3, %v4802_v53  ;;  %v5092_v57 = vpack.c.bf16 %v4819_v14, %v4803_v50 }
 0xebb   :  { %6039 = vmatpush.bf16.msrb.mxu0 %v8257_v39  ;;  %6053 = vmatpush.bf16.msrb.mxu1 %v8265_v40 }
 0xebc   :  { %6018 = vmatmul.bf16.vlgmr.msra.gmra.mxu2 %v5091_v25  ;;  %6032 = vmatmul.bf16.vlgmr.msra.gmra.mxu3 %v5092_v57 }
 0xebd   :  { %6066 = vmatpush.bf16.msrb.mxu2 %v8274_v35  ;;  %6080 = vmatpush.bf16.msrb.mxu3 %v8282_v23  ;;  %v4773_v9 = vpop.f32.mrf.mxu2  ;;  %v4787_v2 = vpop.f32.mrf.mxu3 }
 0xebe   :  { %v4747_v8 = vpop.f32.mrf.mxu0  ;;  %v4761_v41 = vpop.f32.mrf.mxu1  ;;  %v4774_v15 = vadd.f32 %v4773_v9, %v4387_v5  ;;  %v4788_v27 = vadd.f32 %v4787_v2, %v4388_v44 }
 0xebf   :  { %6040 = vmatpush.bf16.msrb.mxu0 %v8256_v59  ;;  %6054 = vmatpush.bf16.msrb.mxu1 %v8264_v28  ;;  %v4748_v42 = vadd.f32 %v4747_v8, %v4385_v54  ;;  %v4762_v43 = vadd.f32 %v4761_v41, %v4386_v45 }
 0xec0   :  { %v4806_v23 = vmax.f32 %v4774_v15, 0.0  ;;  %v4807_v53 = vmax.f32 %v4788_v27, 0.0 }
 0xec1   :  { %6067 = vmatpush.bf16.msrb.mxu2 %v8273_v34  ;;  %6081 = vmatpush.bf16.msrb.mxu3 %v8281_v21  ;;  %v4820_v36 = vmax.f32 %v4748_v42, 0.0  ;;  %v4821_v10 = vmax.f32 %v4762_v43, 0.0  ;;  %v8315_v21 = vld [vmem:[%s10817_s14 + $0x1] ss:$0 sm:$0xff] }
 0xec3   :  { %6041 = vmatpush.bf16.msrb.mxu0 %v8255_v22  ;;  %6055 = vmatpush.bf16.msrb.mxu1 %v8263_v55  ;;  %v5093_v12 = vpack.c.bf16 %v4820_v36, %v4804_v31  ;;  %v5094_v52 = vpack.c.bf16 %v4821_v10, %v4805_v11 }
 0xec5   :  { %6068 = vmatpush.bf16.msrb.mxu2 %v8272_v63  ;;  %6082 = vmatpush.bf16.msrb.mxu3 %v8280_v32  ;;  %v4775_v6 = vpop.f32.mrf.mxu2  ;;  %v4789_v17 = vpop.f32.mrf.mxu3 }
 0xec6   :  { %v4776_v39 = vadd.f32 %v4775_v6, %v4387_v5  ;;  %v4790_v40 = vadd.f32 %v4789_v17, %v4388_v44 }
 0xec7   :  { %6042 = vmatpush.bf16.msrb.mxu0 %v8254_v56  ;;  %6056 = vmatpush.bf16.msrb.mxu1 %v8262_v0 }
 0xec8   :  { %v4822_v61 = vmax.f32 %v4776_v39, 0.0  ;;  %v4823_v35 = vmax.f32 %v4790_v40, 0.0 }
 0xec9   :  { %6069 = vmatpush.bf16.msrb.mxu2 %v8271_v4  ;;  %6083 = vmatpush.bf16.msrb.mxu3 %v8279_v1 }
 0xeca   :  { %v5095_v50 = vpack.c.bf16 %v4822_v61, %v4806_v23  ;;  %v5096_v3 = vpack.c.bf16 %v4823_v35, %v4807_v53 }
 0xecb   :  { %6043 = vmatpush.bf16.msrb.mxu0 %v8253_v26  ;;  %6057 = vmatpush.bf16.msrb.mxu1 %v8261_v37 }
 0xecd   :  { %6070 = vmatpush.bf16.msrb.mxu2 %v8270_v18  ;;  %6084 = vmatpush.bf16.msrb.mxu3 %v8278_v19 }
 0xecf   :  { %6044 = vmatpush.bf16.msrb.mxu0 %v8252_v51  ;;  %6058 = vmatpush.bf16.msrb.mxu1 %v8260_v24 }
 0xed1   :  { %6071 = vmatpush.bf16.msrb.mxu2 %v8269_v46  ;;  %6085 = vmatpush.bf16.msrb.mxu3 %v8277_v47 }
 0xed3   :  { %6045 = vmatpush.bf16.msrb.mxu0 %v8251_v29  ;;  %6059 = vmatpush.bf16.msrb.mxu1 %v8259_v30 }
 0xed5   :  { %6072 = vmatpush.bf16.msrb.mxu2 %v8268_v13  ;;  %6086 = vmatpush.bf16.msrb.mxu3 %v8276_v7 }
 0xed6   :  { %6046 = vmatmul.bf16.vlgmr.msrb.gmra.mxu0 %v5093_v12  ;;  %6060 = vmatmul.bf16.vlgmr.msrb.gmra.mxu1 %v5094_v52 }
 0xed9   :  { %6073 = vmatpush.bf16.msrb.mxu2 %v8267_v60  ;;  %6087 = vmatpush.bf16.msrb.mxu3 %v8275_v49 }
 0xedc   :  { %6074 = vmatmul.bf16.vlgmr.msrb.gmra.mxu2 %v5095_v50  ;;  %6088 = vmatmul.bf16.vlgmr.msrb.gmra.mxu3 %v5096_v3 }
 0xf12   :  { %v5879_v14 = vpop.f32.mrf.mxu0  ;;  %v5893_v59 = vpop.f32.mrf.mxu1 }
 0xf13   :  { %v5880_v55 = vadd.f32 %v8315_v21, %v5879_v14 }
 0xf15   :  { %v5894_v32 = vadd.f32 %v5893_v59, %v5880_v55 }
 0xf1a   :  { %v5881_v28 = vpop.f32.mrf.mxu0  ;;  %v5895_v34 = vpop.f32.mrf.mxu1 }
 0xf1b   :  { %v5882_v4 = vadd.f32 %v8315_v21, %v5881_v28 }
 0xf1d   :  { %v5896_v26 = vadd.f32 %v5895_v34, %v5882_v4 }
 0xf1f   :  { %v5907_v25 = vpop.f32.mrf.mxu2  ;;  %v5921_v57 = vpop.f32.mrf.mxu3 }
 0xf20   :  { %v5908_v56 = vadd.f32 %v5907_v25, %v5894_v32 }
 0xf22   :  { %v5922_v1 = vadd.f32 %v5921_v57, %v5908_v56 }
 0xf23   :  { %v5935_v48 = vpop.f32.mrf.mxu0  ;;  %v5949_v63 = vpop.f32.mrf.mxu1 }
 0xf24   :  { %v5936_v8 = vadd.f32 %v5935_v48, %v5922_v1 }
 0xf26   :  { %v5950_v45 = vadd.f32 %v5949_v63, %v5936_v8 }
 0xf27   :  { %v5909_v62 = vpop.f32.mrf.mxu2  ;;  %v5923_v22 = vpop.f32.mrf.mxu3 }
 0xf28   :  { %v5910_v41 = vadd.f32 %v5909_v62, %v5896_v26 }
 0xf2a   :  { %v5924_v51 = vadd.f32 %v5923_v22, %v5910_v41 }
 0xf2b   :  { %v5937_v0 = vpop.f32.mrf.mxu0  ;;  %v5951_v37 = vpop.f32.mrf.mxu1 }
 0xf2c   :  { %v5938_v42 = vadd.f32 %v5937_v0, %v5924_v51 }
 0xf2e   :  { %v5952_v47 = vadd.f32 %v5951_v37, %v5938_v42 }
 0xf2f   :  { %v5963_v9 = vpop.f32.mrf.mxu2  ;;  %v5977_v2 = vpop.f32.mrf.mxu3 }
 0xf30   :  { %v5964_v24 = vadd.f32 %v5963_v9, %v5950_v45 }
 0xf32   :  { %v5978_v46 = vadd.f32 %v5977_v2, %v5964_v24 }
 0xf33   :  { %v5991_v18 = vpop.f32.mrf.mxu0  ;;  %v6005_v43 = vpop.f32.mrf.mxu1 }
 0xf34   :  { %v5992_v17 = vadd.f32 %v5991_v18, %v5978_v46 }
 0xf36   :  { %v6006_v30 = vadd.f32 %v6005_v43, %v5992_v17  ;;  %v8316_v43 = vld [vmem:[%s10820_s17 + $0x1] ss:$0 sm:$0xff]  ;;  %s8505_s17 = smov [#allocation3]  }
 0xf37   :  { %v5965_v19 = vpop.f32.mrf.mxu2  ;;  %v5979_v54 = vpop.f32.mrf.mxu3  ;;  %s6160_s22 = sshll.u32 %s8505_s17, 4  ;;  %s6161_s22 = int_to_ptr.vmem [resolvable:$true] %s6160_s22 }
 0xf38   :  { %v5966_v29 = vadd.f32 %v5965_v19, %v5952_v47 }
 0xf3a   :  { %v5980_v5 = vadd.f32 %v5979_v54, %v5966_v29 }
 0xf3b   :  { %v5993_v33 = vpop.f32.mrf.mxu0  ;;  %v6007_v44 = vpop.f32.mrf.mxu1 }
 0xf3c   :  { %v5994_v13 = vadd.f32 %v5993_v33, %v5980_v5  ;;  %v8317_v33 = vld [vmem:[%s10821_s18 + $0x1] ss:$0 sm:$0xff]  ;;  %s8506_s18 = smov 128  }
 0xf3e   :  { %v6008_v39 = vadd.f32 %v6007_v44, %v5994_v13 }
 0xf3f   :  { %v6019_v38 = vpop.f32.mrf.mxu2  ;;  %v6033_v6 = vpop.f32.mrf.mxu3 }
 0xf40   :  { %v6020_v36 = vadd.f32 %v6019_v38, %v6006_v30 }
 0xf42   :  { %v6034_v11 = vadd.f32 %v6033_v6, %v6020_v36 }
 0xf47   :  { %v6021_v7 = vpop.f32.mrf.mxu2  ;;  %v6035_v31 = vpop.f32.mrf.mxu3 }
 0xf48   :  { %v6022_v27 = vadd.f32 %v6021_v7, %v6008_v39 }
 0xf4a   :  { %v6036_v61 = vadd.f32 %v6035_v31, %v6022_v27 }
 0xf53   :  { %v6047_v10 = vpop.f32.mrf.mxu0  ;;  %v6061_v15 = vpop.f32.mrf.mxu1 }
 0xf54   :  { %v6048_v40 = vadd.f32 %v6047_v10, %v6034_v11 }
 0xf56   :  { %v6062_v12 = vadd.f32 %v6061_v15, %v6048_v40 }
 0xf5b   :  { %v6049_v52 = vpop.f32.mrf.mxu0  ;;  %v6063_v3 = vpop.f32.mrf.mxu1 }
 0xf5c   :  { %v6050_v23 = vadd.f32 %v6049_v52, %v6036_v61 }
 0xf5e   :  { %v6064_v14 = vadd.f32 %v6063_v3, %v6050_v23 }
 0xf5f   :  { %v6075_v60 = vpop.f32.mrf.mxu2  ;;  %v6089_v49 = vpop.f32.mrf.mxu3 }
 0xf60   :  { %v6076_v35 = vadd.f32 %v6075_v60, %v6062_v12 }
 0xf62   :  { %v6090_v53 = vadd.f32 %v6089_v49, %v6076_v35 }
 0xf64   :  { %v6094_v50 = vadd.f32 %v6090_v53, %v10247_v16 }
 0xf66   :  { %v6100_v59 = vsel %vm100_vm0, %v6094_v50, 0.0 }
 0xf67   :  { %v6077_v28 = vpop.f32.mrf.mxu2  ;;  %6101 = vadd.xlane.f32.xlu0 %v6100_v59  ;;  %v6091_v57 = vpop.f32.mrf.mxu3 }
 0xf68   :  { %v6078_v25 = vadd.f32 %v6077_v28, %v6064_v14 }
 0xf6a   :  { %v6092_v34 = vadd.f32 %v6091_v57, %v6078_v25 }
 0xf6c   :  { %v6095_v21 = vadd.f32 %v6092_v34, %v10249_v20 }
 0xf6e   :  { %v6103_v48 = vsel %vm100_vm0, %v6095_v21, 0.0 }
 0xf6f   :  { %6104 = vadd.xlane.f32.xlu1 %v6103_v48 }
 0xfda   :  { %v6102_v62 = vpop.xlane.xlu0 %6101 }
 0xfdb   :  { %v6106_v22 = vmul.f32 %v6102_v62, %v9021_v58 }
 0xfdd   :  { %v6108_v55 = vsub.f32 %v6094_v50, %v6106_v22 }
 0xfdf   :  { %v6110_v63 = vmul.f32 %v6108_v55, %v6108_v55 }
 0xfe1   :  { %v6112_v16 = vsel %vm100_vm0, %v6110_v63, 0.0 }
 0xfe2   :  { %v6105_v32 = vpop.xlane.xlu1 %6104  ;;  %6113 = vadd.xlane.f32.xlu2 %v6112_v16 }
 0xfe3   :  { %v6107_v56 = vmul.f32 %v6105_v32, %v9021_v58 }
 0xfe5   :  { %v6109_v0 = vsub.f32 %v6095_v21, %v6107_v56 }
 0xfe7   :  { %v6111_v9 = vmul.f32 %v6109_v0, %v6109_v0 }
 0xfe9   :  { %v6115_v2 = vsel %vm100_vm0, %v6111_v9, 0.0 }
 0xfea   :  { %6116 = vadd.xlane.f32.xlu0 %v6115_v2 }
0x1055   :  { %v6114_v20 = vpop.xlane.xlu2 %6113 }
0x1056   :  { %v6118_v4 = vmul.f32 %v6114_v20, %v9021_v58 }
0x1058   :  { %v6120_v1 = vadd.f32 1e-05, %v6118_v4 }
0x105a   :  { %8460 = vrsqrt.f32 %v6120_v1  ;;  %vm6128_vm13 = vweird.f32 %v6120_v1 }
0x105d   :  { %v6117_v26 = vpop.xlane.xlu0 %6116 }
0x105e   :  { %v6119_v37 = vmul.f32 %v6117_v26, %v9021_v58 }
0x1060   :  { %v8461_v8 = vpop.eup %8460  ;;  %v6121_v41 = vadd.f32 1e-05, %v6119_v37 }
0x1061   :  { %v6123_v18 = vmul.f32 %v8461_v8, %v6120_v1  ;;  %vm6129_vm11 = vweird.f32 %v8461_v8 }
0x1062   :  { %8462 = vrsqrt.f32 %v6121_v41  ;;  %vm6130_vm14 = vmor %vm6128_vm13, %vm6129_vm11  ;;  %vm6138_vm12 = vweird.f32 %v6121_v41 }
0x1063   :  { %v6124_v19 = vmul.f32 %v8461_v8, %v6123_v18 }
0x1065   :  { %v6125_v54 = vmul.f32 0.5, %v6124_v19 }
0x1067   :  { %v6126_v45 = vsub.f32 1.5, %v6125_v54 }
0x1068   :  { %v8463_v51 = vpop.eup %8462 }
0x1069   :  { %v6127_v24 = vmul.f32 %v8461_v8, %v6126_v45  ;;  %v6133_v42 = vmul.f32 %v8463_v51, %v6121_v41  ;;  %vm6139_vm15 = vweird.f32 %v8463_v51 }
0x106a   :  { %vm6140_vm1 = vmor %vm6138_vm12, %vm6139_vm15 }
0x106b   :  { %v6131_v46 = vsel %vm6130_vm14, %v8461_v8, %v6127_v24  ;;  %v6134_v47 = vmul.f32 %v8463_v51, %v6133_v42 }
0x106c   :  { %v6142_v58 = vmul.f32 %v6131_v46, %v6108_v55 }
0x106d   :  { %v6135_v38 = vmul.f32 0.5, %v6134_v47 }
0x106e   :  { %v6147_v6 = vmul.f32 %v8316_v43, %v6142_v58 }
0x106f   :  { %v6136_v17 = vsub.f32 1.5, %v6135_v38 }
0x1070   :  { %v6152_v29 = vadd.f32 %v8317_v33, %v6147_v6 }
0x1071   :  { %v6137_v30 = vmul.f32 %v8463_v51, %v6136_v17 }
0x1072   :  { %6154 = vst.msk [vmem:[#allocation3] sm:$0xff] %vm100_vm0, %v6152_v29 }
0x1073   :  { %v6141_v5 = vsel %vm6140_vm1, %v8463_v51, %v6137_v30 }
0x1074   :  { %v6143_v44 = vmul.f32 %v6141_v5, %v6109_v0 }
0x1076   :  { %v6148_v36 = vmul.f32 %v8316_v43, %v6143_v44 }
0x1078   :  { %v6153_v10 = vadd.f32 %v8317_v33, %v6148_v36 }
0x107a   :  { %6155 = vst.msk [vmem:[#allocation3 + $0x8] sm:$0xff] %vm100_vm0, %v6153_v10 }
0x107b   :  { %6168 = dma.vmem_to_hbm [thread:$0]  %s6161_s22, 256, %s6163_s3, [#allocation4], %s8506_s18, %s8506_s18, %s10866_s27  }
0x107c   :  { %8488 = dma.done.wait [#allocation4], 256  }
0x107d   :  { %8489 = vsyncadd [#allocation4], 4294967040 }
0x107e   :  { %6173 = vsyncpa [#allocation4], 1 }

</bundles_post_ra>
